<compile_context>
chip_gen: v7x
topology: tpu7x:2x2x1
jax: 0.10.0
libtpu: 0.0.40
codegen_flags: <defaults>
</compile_context>

<pallas_src>
import functools

import jax
import jax.numpy as jnp
from jax.experimental import pallas as pl
from jax.experimental.pallas import tpu as pltpu

NUM_CLASSES = 10
_VMEM_LIMIT = 64 * 1024 * 1024


def _round_up(x, m):
    return (x + m - 1) // m * m


def _cparams(*sems):
    return pltpu.CompilerParams(dimension_semantics=sems or None,
                                vmem_limit_bytes=_VMEM_LIMIT)


def _vmem_spec():
    return pl.BlockSpec(memory_space=pltpu.MemorySpace.VMEM)


# ----------------------------------------------------------------------------
# Tiled matmul + (BN) + activation epilogue
# ----------------------------------------------------------------------------
def _mm_kernel(*refs, act, n_k, use_scale):
    if use_scale:
        a_ref, b_ref, scale_ref, shift_ref, o_ref = refs[:5]
    else:
        a_ref, b_ref, shift_ref, o_ref = refs[:4]
        scale_ref = None

    part = jnp.dot(a_ref[...], b_ref[...], preferred_element_type=jnp.float32)

    def _epilogue(v):
        y = v
        if use_scale:
            y = y * scale_ref[...]
        y = y + shift_ref[...]
        if act == "silu":
            y = y * jax.nn.sigmoid(y)
        elif act == "sigmoid":
            y = jax.nn.sigmoid(y)
        return y

    if n_k == 1:
        # Single K step: skip the accumulator scratch round trip entirely.
        o_ref[...] = _epilogue(part)
    else:
        acc_ref = refs[-1]

        @pl.when(pl.program_id(2) == 0)
        def _init():
            acc_ref[...] = jnp.zeros_like(acc_ref)

        acc_ref[...] += part

        @pl.when(pl.program_id(2) == n_k - 1)
        def _store():
            o_ref[...] = _epilogue(acc_ref[...])


def matmul_bn_act(a, b, shift, scale=None, act="linear"):
    """act((a @ b) [* scale] + shift), tiled over (M, N, K), bf16 MXU / f32 acc.

    M/K/N are zero-padded to tile multiples (lane-dense outputs) and the result
    is sliced back to (M, N) in the wrapper.
    """
    m, k = a.shape
    kb, n = b.shape
    assert k == kb

    mp = _round_up(m, 16)
    if mp > 128:
        mp = _round_up(m, 128)
    tm = min(128, mp)
    kp = _round_up(k, 128)
    tk = 512 if kp % 512 == 0 else (256 if kp % 256 == 0 else 128)
    np_ = _round_up(n, 128)
    tn = 256 if np_ % 256 == 0 else 128

    a_p = jnp.pad(a.astype(jnp.bfloat16), ((0, mp - m), (0, kp - k)))
    b_p = jnp.pad(b.astype(jnp.bfloat16), ((0, kp - k), (0, np_ - n)))
    shift_p = jnp.pad(shift.reshape(1, n).astype(jnp.float32),
                      ((0, 0), (0, np_ - n)))

    ops = [a_p, b_p]
    in_specs = [pl.BlockSpec((tm, tk), lambda i, j, kk: (i, kk)),
                pl.BlockSpec((tk, tn), lambda i, j, kk: (kk, j))]
    if scale is not None:
        scale_p = jnp.pad(scale.reshape(1, n).astype(jnp.float32),
                          ((0, 0), (0, np_ - n)))
        ops.append(scale_p)
        in_specs.append(pl.BlockSpec((1, tn), lambda i, j, kk: (0, j)))
    ops.append(shift_p)
    in_specs.append(pl.BlockSpec((1, tn), lambda i, j, kk: (0, j)))

    n_k = kp // tk
    scratch = [pltpu.VMEM((tm, tn), jnp.float32)] if n_k > 1 else []
    out = pl.pallas_call(
        functools.partial(_mm_kernel, act=act, n_k=n_k,
                          use_scale=scale is not None),
        grid=(mp // tm, np_ // tn, n_k),
        out_shape=jax.ShapeDtypeStruct((mp, np_), jnp.float32),
        in_specs=in_specs,
        out_specs=pl.BlockSpec((tm, tn), lambda i, j, kk: (i, j)),
        scratch_shapes=scratch,
        compiler_params=_cparams("parallel", "parallel", "arbitrary"),
    )(*ops)
    return out[:m, :n]


# ----------------------------------------------------------------------------
# Depthwise 3x3 conv + folded BN + SiLU, fused with the SE squeeze (masked GAP)
# ----------------------------------------------------------------------------
def _dw_kernel(x_ref, w_ref, scale_ref, shift_ref, mask_ref, o_ref, pool_ref,
               *, wp, lp, inv_hw):
    x = x_ref[0]                       # (lp, C) f32, flattened padded spatial
    w = w_ref[...]                     # (9, C) depthwise taps
    acc = jnp.zeros(x.shape, jnp.float32)
    for i in range(3):
        for j in range(3):
            off = i * wp + j
            xs = x if off == 0 else pltpu.roll(x, shift=lp - off, axis=0)
            acc = acc + xs * w[i * 3 + j:i * 3 + j + 1, :]
    y = acc * scale_ref[...] + shift_ref[...]
    y = y * jax.nn.sigmoid(y)
    o_ref[0] = y
    # SE squeeze: masked mean over the valid spatial positions only.
    pool_ref[0] = jnp.sum(y * mask_ref[...], axis=0, keepdims=True) * inv_hw


def depthwise_bn_silu_gap(x, w9c, scale, shift):
    """Returns (depthwise+BN+SiLU activation, per-channel global average pool)."""
    n, h, w, c = x.shape
    hp, wp = h + 2, w + 2
    flat = hp * wp
    lp = _round_up(flat, 8)            # sublane-aligned flattened length
    xp = jnp.pad(x, ((0, 0), (1, 1), (1, 1), (0, 0)))
    xf = jnp.pad(xp.reshape(n, flat, c), ((0, 0), (0, lp - flat), (0, 0)))
    valid = ((jnp.arange(hp) < h)[:, None] & (jnp.arange(wp) < w)[None, :])
    mask = jnp.pad(valid.astype(jnp.float32).reshape(flat, 1),
                   ((0, lp - flat), (0, 0)))
    out, pooled = pl.pallas_call(
        functools.partial(_dw_kernel, wp=wp, lp=lp, inv_hw=1.0 / float(h * w)),
        grid=(n,),
        out_shape=(jax.ShapeDtypeStruct((n, lp, c), jnp.float32),
                   jax.ShapeDtypeStruct((n, 1, c), jnp.float32)),
        in_specs=[pl.BlockSpec((1, lp, c), lambda b: (b, 0, 0)),
                  pl.BlockSpec((9, c), lambda b: (0, 0)),
                  pl.BlockSpec((1, c), lambda b: (0, 0)),
                  pl.BlockSpec((1, c), lambda b: (0, 0)),
                  pl.BlockSpec((lp, 1), lambda b: (0, 0))],
        out_specs=[pl.BlockSpec((1, lp, c), lambda b: (b, 0, 0)),
                   pl.BlockSpec((1, 1, c), lambda b: (b, 0, 0))],
        compiler_params=_cparams("parallel"),
    )(xf, w9c, scale, shift, mask)
    y = out[:, :flat, :].reshape(n, hp, wp, c)[:, :h, :w, :]
    return y, pooled[:, 0, :]


# ----------------------------------------------------------------------------
# Squeeze-and-Excite: FC1 + SiLU + FC2 + sigmoid fused in one kernel
# ----------------------------------------------------------------------------
def _se_kernel(p_ref, w1_ref, b1_ref, w2_ref, b2_ref, o_ref):
    t = jnp.dot(p_ref[...].astype(jnp.bfloat16), w1_ref[...],
                preferred_element_type=jnp.float32) + b1_ref[...]
    t = t * jax.nn.sigmoid(t)
    s = jnp.dot(t.astype(jnp.bfloat16), w2_ref[...],
                preferred_element_type=jnp.float32) + b2_ref[...]
    o_ref[...] = jax.nn.sigmoid(s)


def se_block(pooled, w1, b1, w2, b2):
    n, c = pooled.shape
    c_se = w1.shape[1]
    csp = _round_up(c_se, 128)
    cp = _round_up(c, 128)
    pooled_p = jnp.pad(pooled.astype(jnp.float32), ((0, 0), (0, cp - c)))
    w1_p = jnp.pad(w1.astype(jnp.bfloat16), ((0, cp - c), (0, csp - c_se)))
    b1_p = jnp.pad(b1.reshape(1, c_se).astype(jnp.float32),
                   ((0, 0), (0, csp - c_se)))
    w2_p = jnp.pad(w2.astype(jnp.bfloat16), ((0, csp - c_se), (0, cp - c)))
    b2_p = jnp.pad(b2.reshape(1, c).astype(jnp.float32), ((0, 0), (0, cp - c)))
    out = pl.pallas_call(
        _se_kernel,
        out_shape=jax.ShapeDtypeStruct((n, cp), jnp.float32),
        in_specs=[_vmem_spec()] * 5,
        out_specs=_vmem_spec(),
        compiler_params=_cparams(),
    )(pooled_p, w1_p, b1_p, w2_p, b2_p)
    return out[:, :c]


# ----------------------------------------------------------------------------
# MBConv project conv: fused SE channel-scale (prologue) + BN + residual (epilogue)
# ----------------------------------------------------------------------------
def _project_kernel(a_ref, s_ref, b_ref, scale_ref, shift_ref, skip_ref,
                    o_ref, *scratch, n_k):
    a = (a_ref[0].astype(jnp.float32) * s_ref[0]).astype(jnp.bfloat16)
    part = jnp.dot(a, b_ref[...], preferred_element_type=jnp.float32)

    if n_k == 1:
        o_ref[0] = part * scale_ref[...] + shift_ref[...] + skip_ref[0]
    else:
        acc_ref = scratch[0]

        @pl.when(pl.program_id(3) == 0)
        def _init():
            acc_ref[...] = jnp.zeros_like(acc_ref)

        acc_ref[...] += part

        @pl.when(pl.program_id(3) == n_k - 1)
        def _store():
            o_ref[0] = acc_ref[...] * scale_ref[...] + shift_ref[...] + skip_ref[0]


def mbconv_project(h, s, w, scale, shift, skip):
    """Fused: ((h * s[:, None, None, :]) @ w) * bn_scale + bn_shift + skip."""
    n, hh, ww, cmid = h.shape
    cout = w.shape[1]
    hw = hh * ww
    hwp = _round_up(hw, 16)
    if hwp > 128:
        hwp = _round_up(hw, 128)
    tm = min(128, hwp)
    kp = _round_up(cmid, 128)
    tk = 128
    np_ = _round_up(cout, 128)
    tn = 128

    a = jnp.pad(h.reshape(n, hw, cmid).astype(jnp.bfloat16),
                ((0, 0), (0, hwp - hw), (0, kp - cmid)))
    s_p = jnp.pad(s.astype(jnp.float32),
                  ((0, 0), (0, kp - cmid))).reshape(n, 1, kp)
    w_p = jnp.pad(w.astype(jnp.bfloat16), ((0, kp - cmid), (0, np_ - cout)))
    scale_p = jnp.pad(scale.reshape(1, cout).astype(jnp.float32),
                      ((0, 0), (0, np_ - cout)))
    shift_p = jnp.pad(shift.reshape(1, cout).astype(jnp.float32),
                      ((0, 0), (0, np_ - cout)))
    skip_p = jnp.pad(skip.reshape(n, hw, cout).astype(jnp.float32),
                     ((0, 0), (0, hwp - hw), (0, np_ - cout)))

    n_k = kp // tk
    scratch = [pltpu.VMEM((tm, tn), jnp.float32)] if n_k > 1 else []
    out = pl.pallas_call(
        functools.partial(_project_kernel, n_k=n_k),
        grid=(n, hwp // tm, np_ // tn, n_k),
        out_shape=jax.ShapeDtypeStruct((n, hwp, np_), jnp.float32),
        in_specs=[
            pl.BlockSpec((1, tm, tk), lambda b, i, j, kk: (b, i, kk)),
            pl.BlockSpec((1, 1, tk), lambda b, i, j, kk: (b, 0, kk)),
            pl.BlockSpec((tk, tn), lambda b, i, j, kk: (kk, j)),
            pl.BlockSpec((1, tn), lambda b, i, j, kk: (0, j)),
            pl.BlockSpec((1, tn), lambda b, i, j, kk: (0, j)),
            pl.BlockSpec((1, tm, tn), lambda b, i, j, kk: (b, i, j)),
        ],
        out_specs=pl.BlockSpec((1, tm, tn), lambda b, i, j, kk: (b, i, j)),
        scratch_shapes=scratch,
        compiler_params=_cparams("parallel", "parallel", "parallel",
                                 "arbitrary"),
    )(a, s_p, w_p, scale_p, shift_p, skip_p)
    return out[:, :hw, :cout].reshape(n, hh, ww, cout)


# ----------------------------------------------------------------------------
# Head: 1x1 conv + BN + SiLU + global average pool + Linear, fused per batch
# ----------------------------------------------------------------------------
def _head_kernel(x_ref, w_ref, scale_ref, shift_ref, fcw_ref, fcb_ref, o_ref):
    y = jnp.dot(x_ref[0], w_ref[...], preferred_element_type=jnp.float32)
    y = y * scale_ref[...] + shift_ref[...]
    y = y * jax.nn.sigmoid(y)
    feats = jnp.mean(y, axis=0, keepdims=True)                 # (1, C_head)
    o_ref[0] = jnp.dot(feats.astype(jnp.bfloat16), fcw_ref[...],
                       preferred_element_type=jnp.float32) + fcb_ref[...]


def head_gap_fc(x, w, scale, shift, fc_w, fc_b):
    """classifier = Dropout(p=0.5) [identity in eval] + Linear(C_head, NUM_CLASSES)."""
    n, h, wd, cin = x.shape
    c_head = w.shape[-1]
    nc = fc_w.shape[1]
    hw = h * wd
    ncp = _round_up(nc, 128)
    xh = x.reshape(n, hw, cin).astype(jnp.bfloat16)
    w_p = w.reshape(cin, c_head).astype(jnp.bfloat16)
    fcw_p = jnp.pad(fc_w.astype(jnp.bfloat16), ((0, 0), (0, ncp - nc)))
    fcb_p = jnp.pad(fc_b.reshape(1, nc).astype(jnp.float32),
                    ((0, 0), (0, ncp - nc)))
    out = pl.pallas_call(
        _head_kernel,
        grid=(n,),
        out_shape=jax.ShapeDtypeStruct((n, 1, ncp), jnp.float32),
        in_specs=[pl.BlockSpec((1, hw, cin), lambda b: (b, 0, 0)),
                  pl.BlockSpec((cin, c_head), lambda b: (0, 0)),
                  pl.BlockSpec((1, c_head), lambda b: (0, 0)),
                  pl.BlockSpec((1, c_head), lambda b: (0, 0)),
                  pl.BlockSpec((c_head, ncp), lambda b: (0, 0)),
                  pl.BlockSpec((1, ncp), lambda b: (0, 0))],
        out_specs=pl.BlockSpec((1, 1, ncp), lambda b: (b, 0, 0)),
        compiler_params=_cparams("parallel"),
    )(xh, w_p, scale.astype(jnp.float32), shift.astype(jnp.float32),
      fcw_p, fcb_p)
    return out[:, 0, :nc]


# ----------------------------------------------------------------------------
# Plain-JAX glue (layout / im2col for the 3x3 stem / parameter folding)
# ----------------------------------------------------------------------------
def _im2col(x, k, stride, pad):
    if pad:
        x = jnp.pad(x, ((0, 0), (pad, pad), (pad, pad), (0, 0)))
    n, h, w, c = x.shape
    ho = (h - k) // stride + 1
    wo = (w - k) // stride + 1
    cols = []
    for i in range(k):
        for j in range(k):
            cols.append(x[:, i:i + stride * ho:stride, j:j + stride * wo:stride, :])
    return jnp.concatenate(cols, axis=-1), ho, wo


def conv_bn_act(x, w, scale, shift, stride=1, pad=0, act="silu"):
    """x: NHWC, w: [kh, kw, Cin, Cout]; BN folded into (scale, shift)."""
    kh, kw, cin, cout = w.shape
    n = x.shape[0]
    if kh == 1 and kw == 1 and stride == 1 and pad == 0:
        ho, wo = x.shape[1], x.shape[2]
        a = x.reshape(n * ho * wo, cin)
    else:
        # TODO(synk): fold the im2col into the matmul kernel via a halo BlockSpec to avoid
        #             materializing the 9x-expanded patch matrix in HBM at real B7 sizes.
        cols, ho, wo = _im2col(x, kh, stride, pad)
        a = cols.reshape(n * ho * wo, kh * kw * cin)
    y = matmul_bn_act(a, w.reshape(kh * kw * cin, cout), shift,
                      scale=scale, act=act)
    return y.reshape(n, ho, wo, cout)


def _fold_bn(gamma, beta, mean, var, eps=1e-3):
    scale = gamma / jnp.sqrt(var + eps)
    shift = beta - mean * scale
    return scale[None, :].astype(jnp.float32), shift[None, :].astype(jnp.float32)


def init_params(key):
    c_in, c_stem, c_mid, c_se, c_head = 3, 32, 128, 8, 64
    ks = jax.random.split(key, 16)

    def nrm(k, shape, s=0.1):
        return (jax.random.normal(k, shape) * s).astype(jnp.float32)

    def bn(k, c):
        k1, k2, k3, k4 = jax.random.split(k, 4)
        gamma = 1.0 + 0.1 * jax.random.normal(k1, (c,))
        beta = 0.1 * jax.random.normal(k2, (c,))
        mean = 0.1 * jax.random.normal(k3, (c,))
        var = 1.0 + 0.1 * jnp.abs(jax.random.normal(k4, (c,)))
        return _fold_bn(gamma, beta, mean, var)

    p = {}
    p["stem_w"] = nrm(ks[0], (3, 3, c_in, c_stem))
    p["stem_bn"] = bn(ks[1], c_stem)
    p["exp_w"] = nrm(ks[2], (1, 1, c_stem, c_mid))
    p["exp_bn"] = bn(ks[3], c_mid)
    p["dw_w"] = nrm(ks[4], (9, c_mid))            # depthwise 3x3 taps flattened
    p["dw_bn"] = bn(ks[5], c_mid)
    p["se1_w"] = nrm(ks[6], (c_mid, c_se))
    p["se1_b"] = nrm(ks[7], (c_se,))
    p["se2_w"] = nrm(ks[8], (c_se, c_mid))
    p["se2_b"] = nrm(ks[9], (c_mid,))
    p["proj_w"] = nrm(ks[10], (1, 1, c_mid, c_stem))
    p["proj_bn"] = bn(ks[11], c_stem)
    p["head_w"] = nrm(ks[12], (1, 1, c_stem, c_head))
    p["head_bn"] = bn(ks[13], c_head)
    p["fc_w"] = nrm(ks[14], (c_head, NUM_CLASSES))
    p["fc_b"] = nrm(ks[15], (NUM_CLASSES,))
    return p


# ----------------------------------------------------------------------------
# Forward pass (inference / eval mode)
# ----------------------------------------------------------------------------
def efficientnet_baseline_forward(rgb_nchw, p):
    # NCHW (PyTorch convention) -> NHWC for the TPU kernels.
    x = jnp.transpose(rgb_nchw, (0, 2, 3, 1)).astype(jnp.float32)

    # Stem: Conv 3x3 s2 p1 + BN + SiLU
    x = conv_bn_act(x, p["stem_w"], *p["stem_bn"], stride=2, pad=1, act="silu")

    # MBConv block: expand 1x1 -> depthwise 3x3 (+ fused SE squeeze) -> SE FCs ->
    # project 1x1 (+ fused SE scale and residual)
    h = conv_bn_act(x, p["exp_w"], *p["exp_bn"], act="silu")
    h, pooled = depthwise_bn_silu_gap(h, p["dw_w"], *p["dw_bn"])
    s = se_block(pooled, p["se1_w"], p["se1_b"], p["se2_w"], p["se2_b"])
    x = mbconv_project(h, s, p["proj_w"].reshape(h.shape[-1], -1),
                       *p["proj_bn"], skip=x)

    # Head: 1x1 conv + BN + SiLU + GAP + Linear fused into one kernel.
    logits = head_gap_fc(x, p["head_w"], *p["head_bn"], p["fc_w"], p["fc_b"])
    return logits


if __name__ == "__main__":
    key = jax.random.PRNGKey(0)
    k_params, k_input = jax.random.split(key)

    params = init_params(k_params)
    rgb = jax.random.normal(k_input, (2, 3, 16, 16), dtype=jnp.float32)  # NCHW like PyTorch

    fwd = jax.jit(efficientnet_baseline_forward)
    logits = fwd(rgb, params)
    jax.block_until_ready(logits)

    assert logits.shape == (2, NUM_CLASSES), logits.shape
    assert logits.dtype == jnp.float32
    assert bool(jnp.all(jnp.isfinite(logits)))
    print("KERNEL_OK")
</pallas_src>

<mosaic_0001>
module attributes {stable_mosaic.version = 11 : i64} {
  func.func @_mm_kernel(%arg0: i32, %arg1: i32, %arg2: i32, %arg3: memref<128x128xbf16, #tpu.memory_space<vmem>>, %arg4: memref<128x128xbf16, #tpu.memory_space<vmem>>, %arg5: memref<1x128xf32, #tpu.memory_space<vmem>>, %arg6: memref<1x128xf32, #tpu.memory_space<vmem>>, %arg7: memref<128x128xf32, #tpu.memory_space<vmem>>) attributes {dimension_semantics = [#tpu.dimension_semantics<parallel>, #tpu.dimension_semantics<parallel>, #tpu.dimension_semantics<arbitrary>], iteration_bounds = array<i64: 1, 1, 1>, scalar_prefetch = 0 : i64, scratch_operands = 0 : i64, tpu.core_type = #tpu.core_type<tc>, window_params = [{transform_indices = @transform_0, window_bounds = array<i64: 128, 128>}, {transform_indices = @transform_1, window_bounds = array<i64: 128, 128>}, {transform_indices = @transform_2, window_bounds = array<i64: 1, 128>}, {transform_indices = @transform_3, window_bounds = array<i64: 1, 128>}, {transform_indices = @transform_4, window_bounds = array<i64: 128, 128>}]} {
    %c0 = arith.constant 0 : index
    %c0_0 = arith.constant 0 : index
    %0 = vector.load %arg3[%c0, %c0_0] : memref<128x128xbf16, #tpu.memory_space<vmem>>, vector<128x128xbf16>
    %c0_1 = arith.constant 0 : index
    %c0_2 = arith.constant 0 : index
    %1 = vector.load %arg4[%c0_1, %c0_2] : memref<128x128xbf16, #tpu.memory_space<vmem>>, vector<128x128xbf16>
    %cst = arith.constant dense<0.000000e+00> : vector<128x128xf32>
    %2 = tpu.matmul %0, %1, %cst {dimension_numbers = #tpu.dot_dimension_numbers<[1], [0], [0], [1], [0, 0, 1, 1], [], []>} : vector<128x128xbf16>, vector<128x128xbf16>, vector<128x128xf32> -> vector<128x128xf32>
    %c0_3 = arith.constant 0 : index
    %c0_4 = arith.constant 0 : index
    %3 = vector.load %arg5[%c0_3, %c0_4] : memref<1x128xf32, #tpu.memory_space<vmem>>, vector<1x128xf32>
    %4 = vector.broadcast %3 : vector<1x128xf32> to vector<128x128xf32>
    %5 = arith.mulf %2, %4 : vector<128x128xf32>
    %c0_5 = arith.constant 0 : index
    %c0_6 = arith.constant 0 : index
    %6 = vector.load %arg6[%c0_5, %c0_6] : memref<1x128xf32, #tpu.memory_space<vmem>>, vector<1x128xf32>
    %7 = vector.broadcast %6 : vector<1x128xf32> to vector<128x128xf32>
    %8 = arith.addf %5, %7 : vector<128x128xf32>
    %9 = arith.negf %8 : vector<128x128xf32>
    %10 = math.exp %9 : vector<128x128xf32>
    %cst_7 = arith.constant 1.000000e+00 : f32
    %11 = vector.broadcast %cst_7 : f32 to vector<128x128xf32>
    %12 = arith.addf %11, %10 : vector<128x128xf32>
    %13 = arith.divf %11, %12 : vector<128x128xf32>
    %14 = arith.mulf %8, %13 : vector<128x128xf32>
    %c0_8 = arith.constant 0 : index
    %c0_9 = arith.constant 0 : index
    %15 = vector.load %arg7[%c0_8, %c0_9] : memref<128x128xf32, #tpu.memory_space<vmem>>, vector<128x128xf32>
    tpu.vector_store %arg7[%c0_8, %c0_9], %14 {strides = array<i32>} : memref<128x128xf32, #tpu.memory_space<vmem>>, vector<128x128xf32>,
    return
  }
  func.func @transform_0(%arg0: i32, %arg1: i32, %arg2: i32) -> (i32, i32) {
    %c0_i32 = arith.constant 0 : i32
    return %arg0, %arg2 : i32, i32
  }
  func.func @transform_1(%arg0: i32, %arg1: i32, %arg2: i32) -> (i32, i32) {
    %c0_i32 = arith.constant 0 : i32
    return %arg2, %arg1 : i32, i32
  }
  func.func @transform_2(%arg0: i32, %arg1: i32, %arg2: i32) -> (i32, i32) {
    %c0_i32 = arith.constant 0 : i32
    %c0_i32_0 = arith.constant 0 : i32
    return %c0_i32, %arg1 : i32, i32
  }
  func.func @transform_3(%arg0: i32, %arg1: i32, %arg2: i32) -> (i32, i32) {
    %c0_i32 = arith.constant 0 : i32
    %c0_i32_0 = arith.constant 0 : i32
    return %c0_i32, %arg1 : i32, i32
  }
  func.func @transform_4(%arg0: i32, %arg1: i32, %arg2: i32) -> (i32, i32) {
    %c0_i32 = arith.constant 0 : i32
    return %arg0, %arg1 : i32, i32
  }
}

module attributes {stable_mosaic.version = 11 : i64} {
  func.func @_dw_kernel(%arg0: i32, %arg1: memref<1x104x128xf32, #tpu.memory_space<vmem>>, %arg2: memref<9x128xf32, #tpu.memory_space<vmem>>, %arg3: memref<1x128xf32, #tpu.memory_space<vmem>>, %arg4: memref<1x128xf32, #tpu.memory_space<vmem>>, %arg5: memref<104x1xf32, #tpu.memory_space<vmem>>, %arg6: memref<1x104x128xf32, #tpu.memory_space<vmem>>, %arg7: memref<1x1x128xf32, #tpu.memory_space<vmem>>) attributes {dimension_semantics = [#tpu.dimension_semantics<parallel>], iteration_bounds = array<i64: 2>, scalar_prefetch = 0 : i64, scratch_operands = 0 : i64, tpu.core_type = #tpu.core_type<tc>, window_params = [{transform_indices = @transform_0, window_bounds = array<i64: 1, 104, 128>}, {pipeline_mode = #tpu.pipeline_mode<synchronous>, transform_indices = @transform_1, window_bounds = array<i64: 9, 128>}, {pipeline_mode = #tpu.pipeline_mode<synchronous>, transform_indices = @transform_2, window_bounds = array<i64: 1, 128>}, {pipeline_mode = #tpu.pipeline_mode<synchronous>, transform_indices = @transform_3, window_bounds = array<i64: 1, 128>}, {pipeline_mode = #tpu.pipeline_mode<synchronous>, transform_indices = @transform_4, window_bounds = array<i64: 104, 1>}, {transform_indices = @transform_5, window_bounds = array<i64: 1, 104, 128>}, {transform_indices = @transform_6, window_bounds = array<i64: 1, 1, 128>}]} {
    %c0 = arith.constant 0 : index
    %c0_0 = arith.constant 0 : index
    %c0_1 = arith.constant 0 : index
    %0 = vector.load %arg1[%c0, %c0_0, %c0_1] : memref<1x104x128xf32, #tpu.memory_space<vmem>>, vector<1x104x128xf32>
    %1 = vector.shape_cast %0 : vector<1x104x128xf32> to vector<104x128xf32>
    %c0_2 = arith.constant 0 : index
    %c0_3 = arith.constant 0 : index
    %2 = vector.load %arg2[%c0_2, %c0_3] : memref<9x128xf32, #tpu.memory_space<vmem>>, vector<9x128xf32>
    %cst = arith.constant 0.000000e+00 : f32
    %3 = vector.broadcast %cst : f32 to vector<104x128xf32>
    %4 = vector.extract_strided_slice %2 {offsets = [0, 0], sizes = [1, 128], strides = [1, 1]} : vector<9x128xf32> to vector<1x128xf32>
    %5 = vector.broadcast %4 : vector<1x128xf32> to vector<104x128xf32>
    %6 = arith.mulf %1, %5 : vector<104x128xf32>
    %7 = arith.addf %3, %6 : vector<104x128xf32>
    %c103_i32 = arith.constant 103 : i32
    %8 = tpu.dynamic_rotate %1 by %c103_i32 dim 0 : vector<104x128xf32>, i32 -> vector<104x128xf32>
    %9 = vector.extract_strided_slice %2 {offsets = [1, 0], sizes = [1, 128], strides = [1, 1]} : vector<9x128xf32> to vector<1x128xf32>
    %10 = vector.broadcast %9 : vector<1x128xf32> to vector<104x128xf32>
    %11 = arith.mulf %8, %10 : vector<104x128xf32>
    %12 = arith.addf %7, %11 : vector<104x128xf32>
    %c102_i32 = arith.constant 102 : i32
    %13 = tpu.dynamic_rotate %1 by %c102_i32 dim 0 : vector<104x128xf32>, i32 -> vector<104x128xf32>
    %14 = vector.extract_strided_slice %2 {offsets = [2, 0], sizes = [1, 128], strides = [1, 1]} : vector<9x128xf32> to vector<1x128xf32>
    %15 = vector.broadcast %14 : vector<1x128xf32> to vector<104x128xf32>
    %16 = arith.mulf %13, %15 : vector<104x128xf32>
    %17 = arith.addf %12, %16 : vector<104x128xf32>
    %c94_i32 = arith.constant 94 : i32
    %18 = tpu.dynamic_rotate %1 by %c94_i32 dim 0 : vector<104x128xf32>, i32 -> vector<104x128xf32>
    %19 = vector.extract_strided_slice %2 {offsets = [3, 0], sizes = [1, 128], strides = [1, 1]} : vector<9x128xf32> to vector<1x128xf32>
    %20 = vector.broadcast %19 : vector<1x128xf32> to vector<104x128xf32>
    %21 = arith.mulf %18, %20 : vector<104x128xf32>
    %22 = arith.addf %17, %21 : vector<104x128xf32>
    %c93_i32 = arith.constant 93 : i32
    %23 = tpu.dynamic_rotate %1 by %c93_i32 dim 0 : vector<104x128xf32>, i32 -> vector<104x128xf32>
    %24 = vector.extract_strided_slice %2 {offsets = [4, 0], sizes = [1, 128], strides = [1, 1]} : vector<9x128xf32> to vector<1x128xf32>
    %25 = vector.broadcast %24 : vector<1x128xf32> to vector<104x128xf32>
    %26 = arith.mulf %23, %25 : vector<104x128xf32>
    %27 = arith.addf %22, %26 : vector<104x128xf32>
    %c92_i32 = arith.constant 92 : i32
    %28 = tpu.dynamic_rotate %1 by %c92_i32 dim 0 : vector<104x128xf32>, i32 -> vector<104x128xf32>
    %29 = vector.extract_strided_slice %2 {offsets = [5, 0], sizes = [1, 128], strides = [1, 1]} : vector<9x128xf32> to vector<1x128xf32>
    %30 = vector.broadcast %29 : vector<1x128xf32> to vector<104x128xf32>
    %31 = arith.mulf %28, %30 : vector<104x128xf32>
    %32 = arith.addf %27, %31 : vector<104x128xf32>
    %c84_i32 = arith.constant 84 : i32
    %33 = tpu.dynamic_rotate %1 by %c84_i32 dim 0 : vector<104x128xf32>, i32 -> vector<104x128xf32>
    %34 = vector.extract_strided_slice %2 {offsets = [6, 0], sizes = [1, 128], strides = [1, 1]} : vector<9x128xf32> to vector<1x128xf32>
    %35 = vector.broadcast %34 : vector<1x128xf32> to vector<104x128xf32>
    %36 = arith.mulf %33, %35 : vector<104x128xf32>
    %37 = arith.addf %32, %36 : vector<104x128xf32>
    %c83_i32 = arith.constant 83 : i32
    %38 = tpu.dynamic_rotate %1 by %c83_i32 dim 0 : vector<104x128xf32>, i32 -> vector<104x128xf32>
    %39 = vector.extract_strided_slice %2 {offsets = [7, 0], sizes = [1, 128], strides = [1, 1]} : vector<9x128xf32> to vector<1x128xf32>
    %40 = vector.broadcast %39 : vector<1x128xf32> to vector<104x128xf32>
    %41 = arith.mulf %38, %40 : vector<104x128xf32>
    %42 = arith.addf %37, %41 : vector<104x128xf32>
    %c82_i32 = arith.constant 82 : i32
    %43 = tpu.dynamic_rotate %1 by %c82_i32 dim 0 : vector<104x128xf32>, i32 -> vector<104x128xf32>
    %44 = vector.extract_strided_slice %2 {offsets = [8, 0], sizes = [1, 128], strides = [1, 1]} : vector<9x128xf32> to vector<1x128xf32>
    %45 = vector.broadcast %44 : vector<1x128xf32> to vector<104x128xf32>
    %46 = arith.mulf %43, %45 : vector<104x128xf32>
    %47 = arith.addf %42, %46 : vector<104x128xf32>
    %c0_4 = arith.constant 0 : index
    %c0_5 = arith.constant 0 : index
    %48 = vector.load %arg3[%c0_4, %c0_5] : memref<1x128xf32, #tpu.memory_space<vmem>>, vector<1x128xf32>
    %49 = vector.broadcast %48 : vector<1x128xf32> to vector<104x128xf32>
    %50 = arith.mulf %47, %49 : vector<104x128xf32>
    %c0_6 = arith.constant 0 : index
    %c0_7 = arith.constant 0 : index
    %51 = vector.load %arg4[%c0_6, %c0_7] : memref<1x128xf32, #tpu.memory_space<vmem>>, vector<1x128xf32>
    %52 = vector.broadcast %51 : vector<1x128xf32> to vector<104x128xf32>
    %53 = arith.addf %50, %52 : vector<104x128xf32>
    %54 = arith.negf %53 : vector<104x128xf32>
    %55 = math.exp %54 : vector<104x128xf32>
    %cst_8 = arith.constant 1.000000e+00 : f32
    %56 = vector.broadcast %cst_8 : f32 to vector<104x128xf32>
    %57 = arith.addf %56, %55 : vector<104x128xf32>
    %58 = arith.divf %56, %57 : vector<104x128xf32>
    %59 = arith.mulf %53, %58 : vector<104x128xf32>
    %c0_9 = arith.constant 0 : index
    %c0_10 = arith.constant 0 : index
    %c0_11 = arith.constant 0 : index
    %60 = vector.load %arg6[%c0_9, %c0_10, %c0_11] : memref<1x104x128xf32, #tpu.memory_space<vmem>>, vector<1x104x128xf32>
    %61 = vector.shape_cast %60 : vector<1x104x128xf32> to vector<104x128xf32>
    %62 = vector.shape_cast %59 : vector<104x128xf32> to vector<1x104x128xf32>
    tpu.vector_store %arg6[%c0_9, %c0_10, %c0_11], %62 {strides = array<i32>} : memref<1x104x128xf32, #tpu.memory_space<vmem>>, vector<1x104x128xf32>,
    %c0_12 = arith.constant 0 : index
    %c0_13 = arith.constant 0 : index
    %63 = vector.load %arg5[%c0_12, %c0_13] : memref<104x1xf32, #tpu.memory_space<vmem>>, vector<104x1xf32>
    %64 = vector.broadcast %63 : vector<104x1xf32> to vector<104x128xf32>
    %65 = arith.mulf %59, %64 : vector<104x128xf32>
    %cst_14 = arith.constant dense<0.000000e+00> : vector<128xf32>
    %66 = vector.multi_reduction <add>, %65, %cst_14 [0] : vector<104x128xf32> to vector<128xf32>
    %67 = vector.shape_cast %66 : vector<128xf32> to vector<1x128xf32>
    %cst_15 = arith.constant 1.562500e-02 : f32
    %68 = vector.broadcast %cst_15 : f32 to vector<1x128xf32>
    %69 = arith.mulf %67, %68 : vector<1x128xf32>
    %c0_16 = arith.constant 0 : index
    %c0_17 = arith.constant 0 : index
    %c0_18 = arith.constant 0 : index
    %70 = vector.load %arg7[%c0_16, %c0_17, %c0_18] : memref<1x1x128xf32, #tpu.memory_space<vmem>>, vector<1x1x128xf32>
    %71 = vector.shape_cast %70 : vector<1x1x128xf32> to vector<1x128xf32>
    %72 = vector.shape_cast %69 : vector<1x128xf32> to vector<1x1x128xf32>
    tpu.vector_store %arg7[%c0_16, %c0_17, %c0_18], %72 {strides = array<i32>} : memref<1x1x128xf32, #tpu.memory_space<vmem>>, vector<1x1x128xf32>,
    return
  }
  func.func @transform_0(%arg0: i32) -> (i32, i32, i32) {
    %c0_i32 = arith.constant 0 : i32
    %c0_i32_0 = arith.constant 0 : i32
    %c0_i32_1 = arith.constant 0 : i32
    return %arg0, %c0_i32, %c0_i32_0 : i32, i32, i32
  }
  func.func @transform_1(%arg0: i32) -> (i32, i32) {
    %c0_i32 = arith.constant 0 : i32
    %c0_i32_0 = arith.constant 0 : i32
    %c0_i32_1 = arith.constant 0 : i32
    return %c0_i32, %c0_i32_0 : i32, i32
  }
  func.func @transform_2(%arg0: i32) -> (i32, i32) {
    %c0_i32 = arith.constant 0 : i32
    %c0_i32_0 = arith.constant 0 : i32
    %c0_i32_1 = arith.constant 0 : i32
    return %c0_i32, %c0_i32_0 : i32, i32
  }
  func.func @transform_3(%arg0: i32) -> (i32, i32) {
    %c0_i32 = arith.constant 0 : i32
    %c0_i32_0 = arith.constant 0 : i32
    %c0_i32_1 = arith.constant 0 : i32
    return %c0_i32, %c0_i32_0 : i32, i32
  }
  func.func @transform_4(%arg0: i32) -> (i32, i32) {
    %c0_i32 = arith.constant 0 : i32
    %c0_i32_0 = arith.constant 0 : i32
    %c0_i32_1 = arith.constant 0 : i32
    return %c0_i32, %c0_i32_0 : i32, i32
  }
  func.func @transform_5(%arg0: i32) -> (i32, i32, i32) {
    %c0_i32 = arith.constant 0 : i32
    %c0_i32_0 = arith.constant 0 : i32
    %c0_i32_1 = arith.constant 0 : i32
    return %arg0, %c0_i32, %c0_i32_0 : i32, i32, i32
  }
  func.func @transform_6(%arg0: i32) -> (i32, i32, i32) {
    %c0_i32 = arith.constant 0 : i32
    %c0_i32_0 = arith.constant 0 : i32
    %c0_i32_1 = arith.constant 0 : i32
    return %arg0, %c0_i32, %c0_i32_0 : i32, i32, i32
  }
}

module attributes {stable_mosaic.version = 11 : i64} {
  func.func @_se_kernel(%arg0: memref<2x128xf32, #tpu.memory_space<vmem>>, %arg1: memref<128x128xbf16, #tpu.memory_space<vmem>>, %arg2: memref<1x128xf32, #tpu.memory_space<vmem>>, %arg3: memref<128x128xbf16, #tpu.memory_space<vmem>>, %arg4: memref<1x128xf32, #tpu.memory_space<vmem>>, %arg5: memref<2x128xf32, #tpu.memory_space<vmem>>) attributes {dimension_semantics = [], scalar_prefetch = 0 : i64, scratch_operands = 0 : i64, tpu.core_type = #tpu.core_type<tc>} {
    %c0 = arith.constant 0 : index
    %c0_0 = arith.constant 0 : index
    %0 = vector.load %arg0[%c0, %c0_0] : memref<2x128xf32, #tpu.memory_space<vmem>>, vector<2x128xf32>
    %1 = arith.truncf %0 : vector<2x128xf32> to vector<2x128xbf16>
    %c0_1 = arith.constant 0 : index
    %c0_2 = arith.constant 0 : index
    %2 = vector.load %arg1[%c0_1, %c0_2] : memref<128x128xbf16, #tpu.memory_space<vmem>>, vector<128x128xbf16>
    %cst = arith.constant dense<0.000000e+00> : vector<2x128xf32>
    %3 = tpu.matmul %1, %2, %cst {dimension_numbers = #tpu.dot_dimension_numbers<[1], [0], [0], [1], [0, 0, 1, 1], [], []>} : vector<2x128xbf16>, vector<128x128xbf16>, vector<2x128xf32> -> vector<2x128xf32>
    %c0_3 = arith.constant 0 : index
    %c0_4 = arith.constant 0 : index
    %4 = vector.load %arg2[%c0_3, %c0_4] : memref<1x128xf32, #tpu.memory_space<vmem>>, vector<1x128xf32>
    %5 = vector.broadcast %4 : vector<1x128xf32> to vector<2x128xf32>
    %6 = arith.addf %3, %5 : vector<2x128xf32>
    %7 = arith.negf %6 : vector<2x128xf32>
    %8 = math.exp %7 : vector<2x128xf32>
    %cst_5 = arith.constant 1.000000e+00 : f32
    %9 = vector.broadcast %cst_5 : f32 to vector<2x128xf32>
    %10 = arith.addf %9, %8 : vector<2x128xf32>
    %11 = arith.divf %9, %10 : vector<2x128xf32>
    %12 = arith.mulf %6, %11 : vector<2x128xf32>
    %13 = arith.truncf %12 : vector<2x128xf32> to vector<2x128xbf16>
    %c0_6 = arith.constant 0 : index
    %c0_7 = arith.constant 0 : index
    %14 = vector.load %arg3[%c0_6, %c0_7] : memref<128x128xbf16, #tpu.memory_space<vmem>>, vector<128x128xbf16>
    %cst_8 = arith.constant dense<0.000000e+00> : vector<2x128xf32>
    %15 = tpu.matmul %13, %14, %cst_8 {dimension_numbers = #tpu.dot_dimension_numbers<[1], [0], [0], [1], [0, 0, 1, 1], [], []>} : vector<2x128xbf16>, vector<128x128xbf16>, vector<2x128xf32> -> vector<2x128xf32>
    %c0_9 = arith.constant 0 : index
    %c0_10 = arith.constant 0 : index
    %16 = vector.load %arg4[%c0_9, %c0_10] : memref<1x128xf32, #tpu.memory_space<vmem>>, vector<1x128xf32>
    %17 = vector.broadcast %16 : vector<1x128xf32> to vector<2x128xf32>
    %18 = arith.addf %15, %17 : vector<2x128xf32>
    %19 = arith.negf %18 : vector<2x128xf32>
    %20 = math.exp %19 : vector<2x128xf32>
    %cst_11 = arith.constant 1.000000e+00 : f32
    %21 = vector.broadcast %cst_11 : f32 to vector<2x128xf32>
    %22 = arith.addf %21, %20 : vector<2x128xf32>
    %23 = arith.divf %21, %22 : vector<2x128xf32>
    %c0_12 = arith.constant 0 : index
    %c0_13 = arith.constant 0 : index
    %24 = vector.load %arg5[%c0_12, %c0_13] : memref<2x128xf32, #tpu.memory_space<vmem>>, vector<2x128xf32>
    tpu.vector_store %arg5[%c0_12, %c0_13], %23 {strides = array<i32>} : memref<2x128xf32, #tpu.memory_space<vmem>>, vector<2x128xf32>,
    return
  }
}

module attributes {stable_mosaic.version = 11 : i64} {
  func.func @_project_kernel(%arg0: i32, %arg1: i32, %arg2: i32, %arg3: i32, %arg4: memref<1x64x128xbf16, #tpu.memory_space<vmem>>, %arg5: memref<1x1x128xf32, #tpu.memory_space<vmem>>, %arg6: memref<128x128xbf16, #tpu.memory_space<vmem>>, %arg7: memref<1x128xf32, #tpu.memory_space<vmem>>, %arg8: memref<1x128xf32, #tpu.memory_space<vmem>>, %arg9: memref<1x64x128xf32, #tpu.memory_space<vmem>>, %arg10: memref<1x64x128xf32, #tpu.memory_space<vmem>>) attributes {dimension_semantics = [#tpu.dimension_semantics<parallel>, #tpu.dimension_semantics<parallel>, #tpu.dimension_semantics<parallel>, #tpu.dimension_semantics<arbitrary>], iteration_bounds = array<i64: 2, 1, 1, 1>, scalar_prefetch = 0 : i64, scratch_operands = 0 : i64, tpu.core_type = #tpu.core_type<tc>, window_params = [{transform_indices = @transform_0, window_bounds = array<i64: 1, 64, 128>}, {transform_indices = @transform_1, window_bounds = array<i64: 1, 1, 128>}, {transform_indices = @transform_2, window_bounds = array<i64: 128, 128>}, {transform_indices = @transform_3, window_bounds = array<i64: 1, 128>}, {transform_indices = @transform_4, window_bounds = array<i64: 1, 128>}, {transform_indices = @transform_5, window_bounds = array<i64: 1, 64, 128>}, {transform_indices = @transform_6, window_bounds = array<i64: 1, 64, 128>}]} {
    %c0 = arith.constant 0 : index
    %c0_0 = arith.constant 0 : index
    %c0_1 = arith.constant 0 : index
    %0 = vector.load %arg4[%c0, %c0_0, %c0_1] : memref<1x64x128xbf16, #tpu.memory_space<vmem>>, vector<1x64x128xbf16>
    %1 = vector.shape_cast %0 : vector<1x64x128xbf16> to vector<64x128xbf16>
    %2 = arith.extf %1 : vector<64x128xbf16> to vector<64x128xf32>
    %c0_2 = arith.constant 0 : index
    %c0_3 = arith.constant 0 : index
    %c0_4 = arith.constant 0 : index
    %3 = vector.load %arg5[%c0_2, %c0_3, %c0_4] : memref<1x1x128xf32, #tpu.memory_space<vmem>>, vector<1x1x128xf32>
    %4 = vector.shape_cast %3 : vector<1x1x128xf32> to vector<1x128xf32>
    %5 = vector.broadcast %4 : vector<1x128xf32> to vector<64x128xf32>
    %6 = arith.mulf %2, %5 : vector<64x128xf32>
    %7 = arith.truncf %6 : vector<64x128xf32> to vector<64x128xbf16>
    %c0_5 = arith.constant 0 : index
    %c0_6 = arith.constant 0 : index
    %8 = vector.load %arg6[%c0_5, %c0_6] : memref<128x128xbf16, #tpu.memory_space<vmem>>, vector<128x128xbf16>
    %cst = arith.constant dense<0.000000e+00> : vector<64x128xf32>
    %9 = tpu.matmul %7, %8, %cst {dimension_numbers = #tpu.dot_dimension_numbers<[1], [0], [0], [1], [0, 0, 1, 1], [], []>} : vector<64x128xbf16>, vector<128x128xbf16>, vector<64x128xf32> -> vector<64x128xf32>
    %c0_7 = arith.constant 0 : index
    %c0_8 = arith.constant 0 : index
    %10 = vector.load %arg7[%c0_7, %c0_8] : memref<1x128xf32, #tpu.memory_space<vmem>>, vector<1x128xf32>
    %11 = vector.broadcast %10 : vector<1x128xf32> to vector<64x128xf32>
    %12 = arith.mulf %9, %11 : vector<64x128xf32>
    %c0_9 = arith.constant 0 : index
    %c0_10 = arith.constant 0 : index
    %13 = vector.load %arg8[%c0_9, %c0_10] : memref<1x128xf32, #tpu.memory_space<vmem>>, vector<1x128xf32>
    %14 = vector.broadcast %13 : vector<1x128xf32> to vector<64x128xf32>
    %15 = arith.addf %12, %14 : vector<64x128xf32>
    %c0_11 = arith.constant 0 : index
    %c0_12 = arith.constant 0 : index
    %c0_13 = arith.constant 0 : index
    %16 = vector.load %arg9[%c0_11, %c0_12, %c0_13] : memref<1x64x128xf32, #tpu.memory_space<vmem>>, vector<1x64x128xf32>
    %17 = vector.shape_cast %16 : vector<1x64x128xf32> to vector<64x128xf32>
    %18 = arith.addf %15, %17 : vector<64x128xf32>
    %c0_14 = arith.constant 0 : index
    %c0_15 = arith.constant 0 : index
    %c0_16 = arith.constant 0 : index
    %19 = vector.load %arg10[%c0_14, %c0_15, %c0_16] : memref<1x64x128xf32, #tpu.memory_space<vmem>>, vector<1x64x128xf32>
    %20 = vector.shape_cast %19 : vector<1x64x128xf32> to vector<64x128xf32>
    %21 = vector.shape_cast %18 : vector<64x128xf32> to vector<1x64x128xf32>
    tpu.vector_store %arg10[%c0_14, %c0_15, %c0_16], %21 {strides = array<i32>} : memref<1x64x128xf32, #tpu.memory_space<vmem>>, vector<1x64x128xf32>,
    return
  }
  func.func @transform_0(%arg0: i32, %arg1: i32, %arg2: i32, %arg3: i32) -> (i32, i32, i32) {
    %c0_i32 = arith.constant 0 : i32
    return %arg0, %arg1, %arg3 : i32, i32, i32
  }
  func.func @transform_1(%arg0: i32, %arg1: i32, %arg2: i32, %arg3: i32) -> (i32, i32, i32) {
    %c0_i32 = arith.constant 0 : i32
    %c0_i32_0 = arith.constant 0 : i32
    return %arg0, %c0_i32, %arg3 : i32, i32, i32
  }
  func.func @transform_2(%arg0: i32, %arg1: i32, %arg2: i32, %arg3: i32) -> (i32, i32) {
    %c0_i32 = arith.constant 0 : i32
    return %arg3, %arg2 : i32, i32
  }
  func.func @transform_3(%arg0: i32, %arg1: i32, %arg2: i32, %arg3: i32) -> (i32, i32) {
    %c0_i32 = arith.constant 0 : i32
    %c0_i32_0 = arith.constant 0 : i32
    return %c0_i32, %arg2 : i32, i32
  }
  func.func @transform_4(%arg0: i32, %arg1: i32, %arg2: i32, %arg3: i32) -> (i32, i32) {
    %c0_i32 = arith.constant 0 : i32
    %c0_i32_0 = arith.constant 0 : i32
    return %c0_i32, %arg2 : i32, i32
  }
  func.func @transform_5(%arg0: i32, %arg1: i32, %arg2: i32, %arg3: i32) -> (i32, i32, i32) {
    %c0_i32 = arith.constant 0 : i32
    return %arg0, %arg1, %arg2 : i32, i32, i32
  }
  func.func @transform_6(%arg0: i32, %arg1: i32, %arg2: i32, %arg3: i32) -> (i32, i32, i32) {
    %c0_i32 = arith.constant 0 : i32
    return %arg0, %arg1, %arg2 : i32, i32, i32
  }
}

module attributes {stable_mosaic.version = 11 : i64} {
  func.func @_head_kernel(%arg0: i32, %arg1: memref<1x64x32xbf16, #tpu.memory_space<vmem>>, %arg2: memref<32x64xbf16, #tpu.memory_space<vmem>>, %arg3: memref<1x64xf32, #tpu.memory_space<vmem>>, %arg4: memref<1x64xf32, #tpu.memory_space<vmem>>, %arg5: memref<64x128xbf16, #tpu.memory_space<vmem>>, %arg6: memref<1x128xf32, #tpu.memory_space<vmem>>, %arg7: memref<1x1x128xf32, #tpu.memory_space<vmem>>) attributes {dimension_semantics = [#tpu.dimension_semantics<parallel>], iteration_bounds = array<i64: 2>, scalar_prefetch = 0 : i64, scratch_operands = 0 : i64, tpu.core_type = #tpu.core_type<tc>, window_params = [{transform_indices = @transform_0, window_bounds = array<i64: 1, 64, 32>}, {pipeline_mode = #tpu.pipeline_mode<synchronous>, transform_indices = @transform_1, window_bounds = array<i64: 32, 64>}, {pipeline_mode = #tpu.pipeline_mode<synchronous>, transform_indices = @transform_2, window_bounds = array<i64: 1, 64>}, {pipeline_mode = #tpu.pipeline_mode<synchronous>, transform_indices = @transform_3, window_bounds = array<i64: 1, 64>}, {pipeline_mode = #tpu.pipeline_mode<synchronous>, transform_indices = @transform_4, window_bounds = array<i64: 64, 128>}, {pipeline_mode = #tpu.pipeline_mode<synchronous>, transform_indices = @transform_5, window_bounds = array<i64: 1, 128>}, {transform_indices = @transform_6, window_bounds = array<i64: 1, 1, 128>}]} {
    %c0 = arith.constant 0 : index
    %c0_0 = arith.constant 0 : index
    %c0_1 = arith.constant 0 : index
    %0 = vector.load %arg1[%c0, %c0_0, %c0_1] : memref<1x64x32xbf16, #tpu.memory_space<vmem>>, vector<1x64x32xbf16>
    %1 = vector.shape_cast %0 : vector<1x64x32xbf16> to vector<64x32xbf16>
    %c0_2 = arith.constant 0 : index
    %c0_3 = arith.constant 0 : index
    %2 = vector.load %arg2[%c0_2, %c0_3] : memref<32x64xbf16, #tpu.memory_space<vmem>>, vector<32x64xbf16>
    %cst = arith.constant dense<0.000000e+00> : vector<64x64xf32>
    %3 = tpu.matmul %1, %2, %cst {dimension_numbers = #tpu.dot_dimension_numbers<[1], [0], [0], [1], [0, 0, 1, 1], [], []>} : vector<64x32xbf16>, vector<32x64xbf16>, vector<64x64xf32> -> vector<64x64xf32>
    %c0_4 = arith.constant 0 : index
    %c0_5 = arith.constant 0 : index
    %4 = vector.load %arg3[%c0_4, %c0_5] : memref<1x64xf32, #tpu.memory_space<vmem>>, vector<1x64xf32>
    %5 = vector.broadcast %4 : vector<1x64xf32> to vector<64x64xf32>
    %6 = arith.mulf %3, %5 : vector<64x64xf32>
    %c0_6 = arith.constant 0 : index
    %c0_7 = arith.constant 0 : index
    %7 = vector.load %arg4[%c0_6, %c0_7] : memref<1x64xf32, #tpu.memory_space<vmem>>, vector<1x64xf32>
    %8 = vector.broadcast %7 : vector<1x64xf32> to vector<64x64xf32>
    %9 = arith.addf %6, %8 : vector<64x64xf32>
    %10 = arith.negf %9 : vector<64x64xf32>
    %11 = math.exp %10 : vector<64x64xf32>
    %cst_8 = arith.constant 1.000000e+00 : f32
    %12 = vector.broadcast %cst_8 : f32 to vector<64x64xf32>
    %13 = arith.addf %12, %11 : vector<64x64xf32>
    %14 = arith.divf %12, %13 : vector<64x64xf32>
    %15 = arith.mulf %9, %14 : vector<64x64xf32>
    %cst_9 = arith.constant dense<0.000000e+00> : vector<64xf32>
    %16 = vector.multi_reduction <add>, %15, %cst_9 [0] : vector<64x64xf32> to vector<64xf32>
    %17 = vector.shape_cast %16 : vector<64xf32> to vector<1x64xf32>
    %cst_10 = arith.constant 6.400000e+01 : f32
    %18 = vector.broadcast %cst_10 : f32 to vector<1x64xf32>
    %19 = arith.divf %17, %18 : vector<1x64xf32>
    %20 = arith.truncf %19 : vector<1x64xf32> to vector<1x64xbf16>
    %c0_11 = arith.constant 0 : index
    %c0_12 = arith.constant 0 : index
    %21 = vector.load %arg5[%c0_11, %c0_12] : memref<64x128xbf16, #tpu.memory_space<vmem>>, vector<64x128xbf16>
    %cst_13 = arith.constant dense<0.000000e+00> : vector<1x128xf32>
    %22 = tpu.matmul %20, %21, %cst_13 {dimension_numbers = #tpu.dot_dimension_numbers<[1], [0], [0], [1], [0, 0, 1, 1], [], []>} : vector<1x64xbf16>, vector<64x128xbf16>, vector<1x128xf32> -> vector<1x128xf32>
    %c0_14 = arith.constant 0 : index
    %c0_15 = arith.constant 0 : index
    %23 = vector.load %arg6[%c0_14, %c0_15] : memref<1x128xf32, #tpu.memory_space<vmem>>, vector<1x128xf32>
    %24 = arith.addf %22, %23 : vector<1x128xf32>
    %c0_16 = arith.constant 0 : index
    %c0_17 = arith.constant 0 : index
    %c0_18 = arith.constant 0 : index
    %25 = vector.load %arg7[%c0_16, %c0_17, %c0_18] : memref<1x1x128xf32, #tpu.memory_space<vmem>>, vector<1x1x128xf32>
    %26 = vector.shape_cast %25 : vector<1x1x128xf32> to vector<1x128xf32>
    %27 = vector.shape_cast %24 : vector<1x128xf32> to vector<1x1x128xf32>
    tpu.vector_store %arg7[%c0_16, %c0_17, %c0_18], %27 {strides = array<i32>} : memref<1x1x128xf32, #tpu.memory_space<vmem>>, vector<1x1x128xf32>,
    return
  }
  func.func @transform_0(%arg0: i32) -> (i32, i32, i32) {
    %c0_i32 = arith.constant 0 : i32
    %c0_i32_0 = arith.constant 0 : i32
    %c0_i32_1 = arith.constant 0 : i32
    return %arg0, %c0_i32, %c0_i32_0 : i32, i32, i32
  }
  func.func @transform_1(%arg0: i32) -> (i32, i32) {
    %c0_i32 = arith.constant 0 : i32
    %c0_i32_0 = arith.constant 0 : i32
    %c0_i32_1 = arith.constant 0 : i32
    return %c0_i32, %c0_i32_0 : i32, i32
  }
  func.func @transform_2(%arg0: i32) -> (i32, i32) {
    %c0_i32 = arith.constant 0 : i32
    %c0_i32_0 = arith.constant 0 : i32
    %c0_i32_1 = arith.constant 0 : i32
    return %c0_i32, %c0_i32_0 : i32, i32
  }
  func.func @transform_3(%arg0: i32) -> (i32, i32) {
    %c0_i32 = arith.constant 0 : i32
    %c0_i32_0 = arith.constant 0 : i32
    %c0_i32_1 = arith.constant 0 : i32
    return %c0_i32, %c0_i32_0 : i32, i32
  }
  func.func @transform_4(%arg0: i32) -> (i32, i32) {
    %c0_i32 = arith.constant 0 : i32
    %c0_i32_0 = arith.constant 0 : i32
    %c0_i32_1 = arith.constant 0 : i32
    return %c0_i32, %c0_i32_0 : i32, i32
  }
  func.func @transform_5(%arg0: i32) -> (i32, i32) {
    %c0_i32 = arith.constant 0 : i32
    %c0_i32_0 = arith.constant 0 : i32
    %c0_i32_1 = arith.constant 0 : i32
    return %c0_i32, %c0_i32_0 : i32, i32
  }
  func.func @transform_6(%arg0: i32) -> (i32, i32, i32) {
    %c0_i32 = arith.constant 0 : i32
    %c0_i32_0 = arith.constant 0 : i32
    %c0_i32_1 = arith.constant 0 : i32
    return %arg0, %c0_i32, %c0_i32_0 : i32, i32, i32
  }
}

</mosaic_0001>

<bundles_post_ra>
// kernel: efficientnet_baseline_forward.6
= control target key start
LH: loop header
LB: loop body
LE: loop exit
PB: predicated region body
PF: predicated region fallthrough
CT: control target
= control target key end

     0   :  { %9 = vsyncpa [#allocation3], 0  ;;  %s994_s0 = inlined_call_operand.hbm [shape: bf16[128,128], index: 0, kind: input, shape index: {}]   ;;  %s995_s1 = inlined_call_operand.hbm [shape: bf16[128,128], index: 1, kind: input, shape index: {}]   ;;  %s996_s2 = inlined_call_operand.hbm [shape: f32[1,128], index: 2, kind: input, shape index: {}]   ;;  %s997_s3 = inlined_call_operand.hbm [shape: f32[1,128], index: 3, kind: input, shape index: {}]   ;;  %s998_s4 = inlined_call_operand.hbm [shape: f32[128,128], index: 4, kind: output, shape index: {}]  }
   0x1   :  { %10 = vsyncpa [#allocation6], 0 }
   0x2   :  { %11 = vsyncpa [#allocation9], 0 }
   0x3   :  { %12 = vsyncpa [#allocation4], 0  ;;  %s793_s15 = smov [#allocation5]   ;;  %s794_s17 = smov [#allocation2]  }
   0x4   :  { %s30_s16 = sshll.u32 %s793_s15, 4  ;;  %s18_s18 = sshll.u32 %s794_s17, 4  ;;  %s31_s16 = int_to_ptr.vmem [resolvable:$true] %s30_s16  ;;  %s827_s18 = int_to_ptr.vmem [resolvable:$true] %s18_s18 }
   0x5   :  { %s675_s21 = scalar_lea.hbm %s995_s1, 1024 }
   0x6   :  { %p676_p0 = scmp.ne.s32.totalorder %s995_s1, %s675_s21  ;;  %p679_p1 = scmp.lt.u32.totalorder %s675_s21, %s995_s1 }
   0x8   :  { %p681_p2 = pnand %p679_p1, %p676_p0 }
   0xa   :  { %684 = shalt.err (!%p681_p2)
}
   0xb   :  { %s685_s26 = scalar_lea.vmem %s31_s16, 1024  ;;  %p690_p4 = scmp.lt.s32.totalorder %s31_s16, %s31_s16 }
   0xc   :  { %p686_p3 = scmp.ne.s32.totalorder %s31_s16, %s685_s26  ;;  %p691_p5 = scmp.lt.s32.totalorder %s685_s26, %s685_s26 }
   0xe   :  { %p692_p6 = por %p691_p5, %p690_p4 }
  0x10   :  { %p693_p7 = pnand %p692_p6, %p686_p3 }
  0x12   :  { %696 = shalt.err (!%p693_p7)
}
  0x13   :  { %s795_s27 = smov 64   ;;  %s796_s28 = smov 4  }
  0x14   :  { %36 = dma.hbm_to_vmem [thread:$0]  %s995_s1, 1024, %s31_s16, [#allocation6], %s795_s27, %s795_s27, %s796_s28  }
  0x15   :  { %s697_s7 = scalar_lea.hbm %s994_s0, 1024 }
  0x16   :  { %p698_p8 = scmp.ne.s32.totalorder %s994_s0, %s697_s7  ;;  %p701_p9 = scmp.lt.u32.totalorder %s697_s7, %s994_s0 }
  0x18   :  { %p703_p10 = pnand %p701_p9, %p698_p8 }
  0x1a   :  { %706 = shalt.err (!%p703_p10)
}
  0x1b   :  { %s707_s12 = scalar_lea.vmem %s827_s18, 1024  ;;  %p712_p12 = scmp.lt.s32.totalorder %s827_s18, %s827_s18 }
  0x1c   :  { %p708_p11 = scmp.ne.s32.totalorder %s827_s18, %s707_s12  ;;  %p713_p13 = scmp.lt.s32.totalorder %s707_s12, %s707_s12 }
  0x1e   :  { %p714_p0 = por %p713_p13, %p712_p12 }
  0x20   :  { %p715_p1 = pnand %p714_p0, %p708_p11 }
  0x22   :  { %718 = shalt.err (!%p715_p1)
}
  0x23   :  { %24 = dma.hbm_to_vmem [thread:$0]  %s994_s0, 1024, %s827_s18, [#allocation3], %s795_s27, %s795_s27, %s796_s28  }
  0x24   :  { %s797_s14 = smov [#allocation7]   ;;  %s798_s16 = smov [#allocation8]  }
  0x25   :  { %s43_s15 = sshll.u32 %s797_s14, 4  ;;  %s53_s17 = sshll.u32 %s798_s16, 4  ;;  %s44_s15 = int_to_ptr.vmem [resolvable:$true] %s43_s15  ;;  %s54_s17 = int_to_ptr.vmem [resolvable:$true] %s53_s17 }
  0x26   :  { %s719_s21 = scalar_lea.hbm %s996_s2, 16 }
  0x27   :  { %p720_p2 = scmp.ne.s32.totalorder %s996_s2, %s719_s21  ;;  %p723_p3 = scmp.lt.u32.totalorder %s719_s21, %s996_s2 }
  0x29   :  { %p725_p4 = pnand %p723_p3, %p720_p2 }
  0x2b   :  { %728 = shalt.err (!%p725_p4)
}
  0x2c   :  { %s729_s0 = scalar_lea.vmem %s44_s15, 16  ;;  %s733_s18 = scalar_lea.vmem %s44_s15, 32 }
  0x2d   :  { %p730_p5 = scmp.ne.s32.totalorder %s44_s15, %s729_s0  ;;  %p734_p6 = scmp.lt.s32.totalorder %s44_s15, %s44_s15 }
  0x2e   :  { %p735_p7 = scmp.lt.s32.totalorder %s733_s18, %s729_s0 }
  0x30   :  { %p736_p8 = por %p735_p7, %p734_p6 }
  0x32   :  { %p737_p9 = pnand %p736_p8, %p730_p5 }
  0x34   :  { %740 = shalt.err (!%p737_p9)
}
  0x35   :  { %46 = dma.hbm_to_vmem [thread:$0]  %s996_s2, 16, %s44_s15, [#allocation6]  }
  0x36   :  { %s741_s30 = scalar_lea.hbm %s997_s3, 16 }
  0x37   :  { %p742_p10 = scmp.ne.s32.totalorder %s997_s3, %s741_s30  ;;  %p745_p11 = scmp.lt.u32.totalorder %s741_s30, %s997_s3 }
  0x39   :  { %p747_p12 = pnand %p745_p11, %p742_p10 }
  0x3b   :  { %750 = shalt.err (!%p747_p12)
}
  0x3c   :  { %s751_s9 = scalar_lea.vmem %s54_s17, 16  ;;  %s755_s10 = scalar_lea.vmem %s54_s17, 32 }
  0x3d   :  { %p752_p13 = scmp.ne.s32.totalorder %s54_s17, %s751_s9  ;;  %p756_p0 = scmp.lt.s32.totalorder %s54_s17, %s54_s17 }
  0x3e   :  { %p757_p1 = scmp.lt.s32.totalorder %s755_s10, %s751_s9 }
  0x40   :  { %p758_p2 = por %p757_p1, %p756_p0 }
  0x42   :  { %p759_p3 = pnand %p758_p2, %p752_p13 }
  0x44   :  { %762 = shalt.err (!%p759_p3)
}
  0x45   :  { %56 = dma.hbm_to_vmem [thread:$0]  %s997_s3, 16, %s54_s17, [#allocation9]  }
  0x46   :  { %785 = dma.done.wait [#allocation3], 1024  }
  0x47   :  { %786 = vsyncadd [#allocation3], 4294966272 }
  0x48   :  { %787 = dma.done.wait [#allocation6], 1040  }
  0x49   :  { %788 = vsyncadd [#allocation6], 4294966256 }
  0x4a   :  { %789 = dma.done.wait [#allocation9], 16  }
  0x4b   :  { %790 = vsyncadd [#allocation9], 4294967280  ;;  %v595_v0 = vld [vmem:[#allocation5] sm:$0xff]   ;;  %v596_v1 = vld [vmem:[#allocation5 + $0x8] sm:$0xff]   ;;  %s799_s3 = smov [#allocation10]  }
  0x4c   :  { %538 = vmatprep.subr.bf16.mxu0 %v595_v0  ;;  %570 = vmatprep.subr.bf16.mxu1 %v595_v0  ;;  %v597_v2 = vld [vmem:[#allocation5 + $0x10] sm:$0xff]   ;;  %v598_v3 = vld [vmem:[#allocation5 + $0x18] sm:$0xff]   ;;  %v603_v4 = vld [vmem:[#allocation2] sm:$0xff]   ;;  %s474_s12 = sshll.u32 %s799_s3, 4  ;;  %s475_s12 = int_to_ptr.vmem [resolvable:$true] %s474_s12 }
  0x4d   :  { %539 = vmatpush3.bf16.msra.mxu0 %v595_v0  ;;  %578 = vmatpush3.bf16.msra.mxu1 %v595_v0  ;;  %v604_v5 = vld [vmem:[#allocation2 + $0x20] sm:$0xff]   ;;  %v600_v7 = vld [vmem:[#allocation5 + $0x28] sm:$0xff]   ;;  %v601_v8 = vld [vmem:[#allocation5 + $0x30] sm:$0xff]   ;;  %s763_s1 = scalar_lea.vmem %s475_s12, 2048  ;;  %p768_p5 = scmp.lt.s32.totalorder %s475_s12, %s475_s12 }
  0x4e   :  { %540 = vmatprep.subr.bf16.mxu0 %v596_v1  ;;  %571 = vmatprep.subr.bf16.mxu1 %v596_v1  ;;  %v599_v6 = vld [vmem:[#allocation5 + $0x20] sm:$0xff]   ;;  %v602_v9 = vld [vmem:[#allocation5 + $0x38] sm:$0xff]   ;;  %v605_v10 = vld [vmem:[#allocation2 + $0x8] sm:$0xff]   ;;  %p764_p4 = scmp.ne.s32.totalorder %s475_s12, %s763_s1  ;;  %p769_p6 = scmp.lt.s32.totalorder %s763_s1, %s763_s1 }
  0x4f   :  { %554 = vmatprep.mubr.bf16.mxu0 %v603_v4  ;;  %562 = vmatprep.mubr.bf16.mxu1 %v604_v5  ;;  %v606_v11 = vld [vmem:[#allocation2 + $0x28] sm:$0xff]   ;;  %v607_v12 = vld [vmem:[#allocation2 + $0x10] sm:$0xff]   ;;  %v609_v14 = vld [vmem:[#allocation2 + $0x18] sm:$0xff]  }
  0x50   :  { %v608_v13 = vld [vmem:[#allocation2 + $0x30] sm:$0xff]   ;;  %v610_v15 = vld [vmem:[#allocation2 + $0x38] sm:$0xff]   ;;  %v882_v16 = vld [vmem:[#allocation7] ss:$0 sm:$0xff]  ;;  %p770_p7 = por %p769_p6, %p768_p5 }
  0x51   :  { %541 = vmatpush3.bf16.msra.mxu0 %v596_v1  ;;  %579 = vmatpush3.bf16.msra.mxu1 %v596_v1  ;;  %v884_v18 = vld [vmem:[#allocation8] ss:$0 sm:$0xff] }
  0x52   :  { %542 = vmatprep.subr.bf16.mxu0 %v597_v2  ;;  %572 = vmatprep.subr.bf16.mxu1 %v597_v2  ;;  %p771_p8 = pnand %p770_p7, %p764_p4 }
  0x55   :  { %543 = vmatpush3.bf16.msra.mxu0 %v597_v2  ;;  %580 = vmatpush3.bf16.msra.mxu1 %v597_v2 }
  0x56   :  { %544 = vmatprep.subr.bf16.mxu0 %v598_v3  ;;  %573 = vmatprep.subr.bf16.mxu1 %v598_v3 }
  0x59   :  { %545 = vmatpush3.bf16.msra.mxu0 %v598_v3  ;;  %581 = vmatpush3.bf16.msra.mxu1 %v598_v3 }
  0x5a   :  { %546 = vmatprep.subr.bf16.mxu0 %v599_v6  ;;  %574 = vmatprep.subr.bf16.mxu1 %v599_v6 }
  0x5d   :  { %547 = vmatpush3.bf16.msra.mxu0 %v599_v6  ;;  %582 = vmatpush3.bf16.msra.mxu1 %v599_v6 }
  0x5e   :  { %548 = vmatprep.subr.bf16.mxu0 %v600_v7  ;;  %575 = vmatprep.subr.bf16.mxu1 %v600_v7 }
  0x61   :  { %549 = vmatpush3.bf16.msra.mxu0 %v600_v7  ;;  %583 = vmatpush3.bf16.msra.mxu1 %v600_v7 }
  0x62   :  { %550 = vmatprep.subr.bf16.mxu0 %v601_v8  ;;  %576 = vmatprep.subr.bf16.mxu1 %v601_v8 }
  0x65   :  { %551 = vmatpush3.bf16.msra.mxu0 %v601_v8  ;;  %584 = vmatpush3.bf16.msra.mxu1 %v601_v8 }
  0x66   :  { %552 = vmatprep.subr.bf16.mxu0 %v602_v9  ;;  %577 = vmatprep.subr.bf16.mxu1 %v602_v9 }
  0x69   :  { %553 = vmatpush3.bf16.msra.mxu0 %v602_v9  ;;  %585 = vmatpush3.bf16.msra.mxu1 %v602_v9 }
  0x6c   :  { %555 = vmatmul.mubr.bf16.vlgmr.msra.gmra.mrb[0].mxu0 %v605_v10  ;;  %563 = vmatmul.mubr.bf16.vlgmr.msra.gmra.mrb[0].mxu1 %v606_v11 }
  0x6d   :  { %558 = vmatprep.mubr.bf16.mxu0 %v607_v12  ;;  %566 = vmatprep.mubr.bf16.mxu1 %v608_v13 }
  0x74   :  { %559 = vmatmul.mubr.bf16.gmra.mrb[4].mxu0 %v609_v14  ;;  %567 = vmatmul.mubr.bf16.gmra.mrb[4].mxu1 %v610_v15 }
 0x13f   :  { %v556_v17 = vpop.f32.mrb[0].mxu0  ;;  %v564_v19 = vpop.f32.mrb[0].mxu1 }
 0x140   :  { %v304_v20 = vmul.f32 %v556_v17, %v882_v16  ;;  %v312_v21 = vmul.f32 %v564_v19, %v882_v16  ;;  %v232_v22 = vpop.f32.mrb[1].mxu0  ;;  %v264_v23 = vpop.f32.mrb[1].mxu1 }
 0x141   :  { %v302_v24 = vmul.f32 %v882_v16, %v232_v22  ;;  %v310_v25 = vmul.f32 %v882_v16, %v264_v23  ;;  %v557_v26 = vpop.f32.mrb[2].mxu0  ;;  %v565_v27 = vpop.f32.mrb[2].mxu1 }
 0x142   :  { %v891_v28 = vadd.f32 %v884_v18, %v304_v20  ;;  %v894_v29 = vadd.f32 %v884_v18, %v312_v21  ;;  %v305_v30 = vmul.f32 %v557_v26, %v882_v16  ;;  %v313_v31 = vmul.f32 %v565_v27, %v882_v16  ;;  %v235_v32 = vpop.f32.mrb[3].mxu0  ;;  %v267_v33 = vpop.f32.mrb[3].mxu1 }
 0x143   :  { %v899_v34 = vadd.f32 %v884_v18, %v302_v24  ;;  %v902_v35 = vadd.f32 %v884_v18, %v310_v25  ;;  %v303_v36 = vmul.f32 %v882_v16, %v235_v32  ;;  %v311_v37 = vmul.f32 %v882_v16, %v267_v33 }
 0x144   :  { %v508_v38 = vmul.f32 -1.442695, %v891_v28  ;;  %v516_v39 = vmul.f32 -1.442695, %v894_v29  ;;  %v909_v40 = vadd.f32 %v884_v18, %v305_v30  ;;  %v912_v41 = vadd.f32 %v884_v18, %v313_v31 }
 0x145   :  { %v506_v42 = vmul.f32 -1.442695, %v899_v34  ;;  %v514_v43 = vmul.f32 -1.442695, %v902_v35  ;;  %v917_v44 = vadd.f32 %v884_v18, %v303_v36  ;;  %v920_v45 = vadd.f32 %v884_v18, %v311_v37 }
 0x146   :  { %611 = vpow2.f32 %v508_v38  ;;  %v509_v46 = vmul.f32 -1.442695, %v909_v40  ;;  %v517_v47 = vmul.f32 -1.442695, %v912_v41 }
 0x147   :  { %613 = vpow2.f32 %v516_v39  ;;  %v560_v48 = vpop.f32.mrb[4].mxu0  ;;  %v568_v49 = vpop.f32.mrb[4].mxu1  ;;  %v507_v50 = vmul.f32 -1.442695, %v917_v44  ;;  %v515_v55 = vmul.f32 -1.442695, %v920_v45 }
 0x148   :  { %615 = vpow2.f32 %v506_v42  ;;  %v308_v51 = vmul.f32 %v560_v48, %v882_v16  ;;  %v316_v52 = vmul.f32 %v568_v49, %v882_v16  ;;  %v248_v53 = vpop.f32.mrb[5].mxu0  ;;  %v280_v54 = vpop.f32.mrb[5].mxu1 }
 0x149   :  { %617 = vpow2.f32 %v514_v43  ;;  %v306_v56 = vmul.f32 %v882_v16, %v248_v53  ;;  %v314_v57 = vmul.f32 %v882_v16, %v280_v54  ;;  %v561_v58 = vpop.f32.mrb[6].mxu0  ;;  %v569_v59 = vpop.f32.mrb[6].mxu1 }
 0x14a   :  { %619 = vpow2.f32 %v509_v46  ;;  %v931_v60 = vadd.f32 %v884_v18, %v308_v51  ;;  %v934_v61 = vadd.f32 %v884_v18, %v316_v52  ;;  %v309_v62 = vmul.f32 %v561_v58, %v882_v16  ;;  %v251_v63 = vpop.f32.mrb[7].mxu0  ;;  %v283_v0 = vpop.f32.mrb[7].mxu1 }
 0x14b   :  { %621 = vpow2.f32 %v517_v47  ;;  %v938_v1 = vadd.f32 %v884_v18, %v306_v56  ;;  %v941_v2 = vadd.f32 %v884_v18, %v314_v57  ;;  %v317_v20 = vmul.f32 %v569_v59, %v882_v16 }
 0x14c   :  { %623 = vpow2.f32 %v507_v50  ;;  %v512_v3 = vmul.f32 -1.442695, %v931_v60  ;;  %v520_v4 = vmul.f32 -1.442695, %v934_v61  ;;  %v946_v5 = vadd.f32 %v884_v18, %v309_v62 }
 0x14d   :  { %625 = vpow2.f32 %v515_v55  ;;  %v510_v6 = vmul.f32 -1.442695, %v938_v1  ;;  %v518_v7 = vmul.f32 -1.442695, %v941_v2  ;;  %v307_v23 = vmul.f32 %v882_v16, %v251_v63 }
 0x14e   :  { %627 = vpow2.f32 %v512_v3  ;;  %v513_v8 = vmul.f32 -1.442695, %v946_v5  ;;  %v315_v26 = vmul.f32 %v882_v16, %v283_v0  ;;  %v955_v33 = vadd.f32 %v884_v18, %v317_v20 }
 0x14f   :  { %629 = vpow2.f32 %v520_v4  ;;  %v958_v38 = vadd.f32 %v884_v18, %v307_v23 }
 0x150   :  { %v612_v9 = vpop.eup %611  ;;  %631 = vpow2.f32 %v510_v6  ;;  %v961_v16 = vadd.f32 %v884_v18, %v315_v26  ;;  %v521_v49 = vmul.f32 -1.442695, %v955_v33 }
 0x151   :  { %v614_v10 = vpop.eup %613  ;;  %v391_v11 = vadd.f32 1.0, %v612_v9  ;;  %633 = vpow2.f32 %v518_v7  ;;  %v511_v52 = vmul.f32 -1.442695, %v958_v38 }
 0x152   :  { %v616_v12 = vpop.eup %615  ;;  %v399_v13 = vadd.f32 1.0, %v614_v10  ;;  %635 = vpow2.f32 %v513_v8  ;;  %v519_v18 = vmul.f32 -1.442695, %v961_v16 }
 0x153   :  { %v618_v14 = vpop.eup %617  ;;  %637 = vrcp.f32 %v391_v11  ;;  %v389_v15 = vadd.f32 1.0, %v616_v12 }
 0x154   :  { %v620_v17 = vpop.eup %619  ;;  %639 = vrcp.f32 %v399_v13  ;;  %v397_v19 = vadd.f32 1.0, %v618_v14 }
 0x155   :  { %v622_v21 = vpop.eup %621  ;;  %641 = vrcp.f32 %v389_v15  ;;  %v392_v22 = vadd.f32 1.0, %v620_v17 }
 0x156   :  { %v624_v24 = vpop.eup %623  ;;  %643 = vrcp.f32 %v397_v19  ;;  %v400_v25 = vadd.f32 1.0, %v622_v21 }
 0x157   :  { %v626_v27 = vpop.eup %625  ;;  %645 = vrcp.f32 %v392_v22  ;;  %v390_v30 = vadd.f32 1.0, %v624_v24 }
 0x158   :  { %v628_v31 = vpop.eup %627  ;;  %647 = vrcp.f32 %v400_v25  ;;  %v398_v32 = vadd.f32 1.0, %v626_v27 }
 0x159   :  { %v630_v36 = vpop.eup %629  ;;  %649 = vrcp.f32 %v390_v30  ;;  %v395_v37 = vadd.f32 1.0, %v628_v31 }
 0x15a   :  { %v632_v39 = vpop.eup %631  ;;  %651 = vrcp.f32 %v398_v32  ;;  %v403_v42 = vadd.f32 1.0, %v630_v36 }
 0x15b   :  { %v634_v43 = vpop.eup %633  ;;  %653 = vrcp.f32 %v395_v37  ;;  %v393_v46 = vadd.f32 1.0, %v632_v39 }
 0x15c   :  { %v636_v47 = vpop.eup %635  ;;  %655 = vrcp.f32 %v403_v42  ;;  %v401_v48 = vadd.f32 1.0, %v634_v43 }
 0x15d   :  { %v638_v50 = vpop.eup %637  ;;  %657 = vrcp.f32 %v393_v46  ;;  %v396_v51 = vadd.f32 1.0, %v636_v47 }
 0x15e   :  { %v640_v53 = vpop.eup %639  ;;  %v439_v54 = vmul.f32 %v638_v50, %v891_v28  ;;  %659 = vrcp.f32 %v401_v48 }
 0x15f   :  { %v642_v55 = vpop.eup %641  ;;  %v447_v56 = vmul.f32 %v640_v53, %v894_v29  ;;  %661 = vrcp.f32 %v396_v51 }
 0x160   :  { %v644_v57 = vpop.eup %643  ;;  %455 = vst [vmem:[#allocation10 + $0x10] sm:$0xff] %v439_v54  ;;  %v437_v58 = vmul.f32 %v642_v55, %v899_v34  ;;  %663 = vpow2.f32 %v521_v49 }
 0x161   :  { %v646_v59 = vpop.eup %645  ;;  %463 = vst [vmem:[#allocation10 + $0x50] sm:$0xff] %v447_v56  ;;  %v445_v62 = vmul.f32 %v644_v57, %v902_v35  ;;  %665 = vpow2.f32 %v511_v52 }
 0x162   :  { %v648_v63 = vpop.eup %647  ;;  %453 = vst [vmem:[#allocation10] sm:$0xff] %v437_v58  ;;  %v440_v28 = vmul.f32 %v646_v59, %v909_v40  ;;  %667 = vpow2.f32 %v519_v18 }
 0x163   :  { %v650_v0 = vpop.eup %649  ;;  %461 = vst [vmem:[#allocation10 + $0x40] sm:$0xff] %v445_v62  ;;  %v448_v29 = vmul.f32 %v648_v63, %v912_v41 }
 0x164   :  { %v652_v3 = vpop.eup %651  ;;  %456 = vst [vmem:[#allocation10 + $0x18] sm:$0xff] %v440_v28  ;;  %v438_v4 = vmul.f32 %v650_v0, %v917_v44 }
 0x165   :  { %v654_v34 = vpop.eup %653  ;;  %464 = vst [vmem:[#allocation10 + $0x58] sm:$0xff] %v448_v29  ;;  %v446_v6 = vmul.f32 %v652_v3, %v920_v45 }
 0x166   :  { %v656_v7 = vpop.eup %655  ;;  %454 = vst [vmem:[#allocation10 + $0x8] sm:$0xff] %v438_v4  ;;  %v443_v35 = vmul.f32 %v654_v34, %v931_v60 }
 0x167   :  { %v658_v8 = vpop.eup %657  ;;  %462 = vst [vmem:[#allocation10 + $0x48] sm:$0xff] %v446_v6  ;;  %v451_v40 = vmul.f32 %v656_v7, %v934_v61 }
 0x168   :  { %v660_v9 = vpop.eup %659  ;;  %459 = vst [vmem:[#allocation10 + $0x30] sm:$0xff] %v443_v35  ;;  %v441_v41 = vmul.f32 %v658_v8, %v938_v1 }
 0x169   :  { %v662_v10 = vpop.eup %661  ;;  %467 = vst [vmem:[#allocation10 + $0x70] sm:$0xff] %v451_v40  ;;  %v449_v44 = vmul.f32 %v660_v9, %v941_v2 }
 0x16a   :  { %v664_v11 = vpop.eup %663  ;;  %457 = vst [vmem:[#allocation10 + $0x20] sm:$0xff] %v441_v41  ;;  %v444_v45 = vmul.f32 %v662_v10, %v946_v5 }
 0x16b   :  { %v666_v12 = vpop.eup %665  ;;  %465 = vst [vmem:[#allocation10 + $0x60] sm:$0xff] %v449_v44  ;;  %v404_v13 = vadd.f32 1.0, %v664_v11 }
 0x16c   :  { %v668_v60 = vpop.eup %667  ;;  %460 = vst [vmem:[#allocation10 + $0x38] sm:$0xff] %v444_v45  ;;  %v394_v14 = vadd.f32 1.0, %v666_v12 }
 0x16d   :  { %669 = vrcp.f32 %v404_v13  ;;  %v402_v61 = vadd.f32 1.0, %v668_v60 }
 0x16e   :  { %671 = vrcp.f32 %v394_v14 }
 0x16f   :  { %673 = vrcp.f32 %v402_v61 }
 0x177   :  { %v670_v1 = vpop.eup %669 }
 0x178   :  { %v672_v15 = vpop.eup %671  ;;  %v452_v2 = vmul.f32 %v670_v1, %v955_v33 }
 0x179   :  { %v674_v17 = vpop.eup %673  ;;  %v442_v19 = vmul.f32 %v672_v15, %v958_v38 }
 0x17a   :  { %468 = vst [vmem:[#allocation10 + $0x78] sm:$0xff] %v452_v2  ;;  %v450_v5 = vmul.f32 %v674_v17, %v961_v16 }
 0x17b   :  { %458 = vst [vmem:[#allocation10 + $0x28] sm:$0xff] %v442_v19 }
 0x17c   :  { %466 = vst [vmem:[#allocation10 + $0x68] sm:$0xff] %v450_v5 }
 0x17d   :  { %774 = shalt.err (!%p771_p8)
}
 0x17e   :  { %s775_s15 = scalar_lea.hbm %s998_s4, 2048 }
 0x17f   :  { %p776_p9 = scmp.ne.s32.totalorder %s998_s4, %s775_s15  ;;  %p779_p10 = scmp.lt.u32.totalorder %s775_s15, %s998_s4 }
 0x181   :  { %p781_p11 = pnand %p779_p10, %p776_p9 }
 0x183   :  { %784 = shalt.err (!%p781_p11)
}
 0x184   :  { %s800_s21 = smov 128   ;;  %s801_s22 = smov 8  }
 0x185   :  { %480 = dma.vmem_to_hbm [thread:$0]  %s475_s12, 2048, %s998_s4, [#allocation4], %s800_s21, %s800_s21, %s801_s22  }
 0x186   :  { %791 = dma.done.wait [#allocation4], 2048  }
 0x187   :  { %792 = vsyncadd [#allocation4], 4294965248 }
 0x188   :  { %484 = vsyncpa [#allocation3], 1 }
 0x189   :  { %485 = vsyncpa [#allocation6], 1 }
 0x18a   :  { %486 = vsyncpa [#allocation9], 1 }
 0x18b   :  { %487 = vsyncpa [#allocation4], 1 }

// kernel: efficientnet_baseline_forward.8
= control target key start
LH: loop header
LB: loop body
LE: loop exit
PB: predicated region body
PF: predicated region fallthrough
CT: control target
= control target key end

     0   :  { %12 = vsyncpa [#allocation3], 0  ;;  %s2832_s0 = inlined_call_operand.hbm [shape: f32[2,104,128], index: 0, kind: input, shape index: {}]   ;;  %s2833_s1 = inlined_call_operand.hbm [shape: f32[9,128], index: 1, kind: input, shape index: {}]   ;;  %s2834_s2 = inlined_call_operand.hbm [shape: f32[1,128], index: 2, kind: input, shape index: {}]   ;;  %s2835_s3 = inlined_call_operand.hbm [shape: f32[1,128], index: 3, kind: input, shape index: {}]   ;;  %s2836_s4 = inlined_call_operand.hbm [shape: f32[104,1], index: 4, kind: input, shape index: {}]   ;;  %s2837_s5 = inlined_call_operand.hbm [shape: f32[2,104,128], index: 5, kind: output, shape index: {0}]   ;;  %s2838_s6 = inlined_call_operand.hbm [shape: f32[2,1,128], index: 6, kind: output, shape index: {1}]  }
   0x1   :  { %14 = vsyncpa [#allocation3 + $0x1], 0 }
   0x2   :  { %15 = vsyncpa [#allocation6], 0 }
   0x3   :  { %16 = vsyncpa [#allocation9], 0 }
   0x4   :  { %17 = vsyncpa [#allocation4], 0 }
   0x5   :  { %19 = vsyncpa [#allocation4 + $0x1], 0 }
   0x6   :  { %20 = vsyncpa [#allocation13], 0 }
   0x7   :  { %22 = vsyncpa [#allocation13 + $0x1], 0  ;;  %s1693_s21 = smov 0   ;;  %s1695_s22 = smov 0  }
   0x8   :  { %s1697_s23 = smov 0   ;;  %s1699_s24 = smov 0  }
   0x9 LB: > { %s1714_s25 = sadd.s32 4294967295, %s1644_s24   ;;  %s1208_s26 = sadd.s32 4294967294, %s1644_s24   ;;  %s1644_s24 = sphi %s1699_s24, %s2877_s24   ;;  %s1640_s23 = sphi %s1697_s23, %s2876_s23   ;;  %s1636_s22 = sphi %s1695_s22, %s2875_s22   ;;  %s1632_s21 = sphi %s1693_s21, %s2874_s21  }
   0xa   : > { %p48_p0 = scmp.ne.s32.totalorder %s1636_s22, %s1632_s21  ;;  %p2839_p1 = scmp.eq.s32.totalorder %s1714_s25, 0 }
   0xb   : > { %p162_p3 = scmp.eq.s32.totalorder %s1208_s26, 1  ;;  %p1209_p5 = scmp.ge.s32.totalorder %s1644_s24, 1 }
   0xc   : > { %p1723_p4 = por %p2839_p1, %p48_p0  ;;  %p195_p7 = scmp.lt.s32.totalorder %s1644_s24, 3 }
   0xd   : > { %p1728_p6 = por %p162_p3, %p48_p0  ;;  %s1646_s30 = smov [#allocation5]  }
   0xe   : > { %s2850_s27 = scalar_select %p1723_p4, 1, 0 }
   0xf   : > { %s2851_s28 = scalar_select %p1728_p6, 1, 0 }
  0x10   : > { %p1733_p8 = pnand %p1209_p5, %p195_p7  ;;  %s207_s7 = sshll.u32 %s1646_s30, 4  ;;  %s1737_s7 = int_to_ptr.vmem [resolvable:$true] %s207_s7 }
  0x11   : > { %s1647_s9 = smov [#allocation8]   ;;  %s1648_s11 = smov [#allocation7]  }
  0x12   : > { %s2852_s29 = scalar_select %p1733_p8, 1, 0 }
  0x13   : > { %p1267_p9 = pneg %p1733_p8  ;;  %s232_s10 = sshll.u32 %s1647_s9, 4  ;;  %s1748_s10 = int_to_ptr.vmem [resolvable:$true] %s232_s10 }
  0x14   : > { %s1750_s12 = sshll.u32 %s1648_s11, 4  ;;  %s1396_s15 = scalar_lea.hbm %s2833_s1, 256  ;;  %s222_s12 = int_to_ptr.vmem [resolvable:$true] %s1750_s12 }
  0x15   : > { %p1744_p11 = pnand %p1267_p9, %p2839_p1  ;;  %p1397_p12 = scmp.ne.s32.totalorder %s2833_s1, %s1396_s15 }
  0x16   : > { %p1403_p5 = scmp.lt.u32.totalorder %s1396_s15, %s2833_s1 }
  0x17   : > { %p1760_p13 = pneg %p1744_p11 }
  0x19   : > { %p1399_p0 = pnand %p1760_p13, %p1397_p12 }
  0x1b   : > { %p1400_p3 = pneg %p1399_p0 }
  0x1d   : > { %p1405_p7 = pnand %p1403_p5, %p1400_p3 }
  0x1f   : > { %1408 = shalt.err (!%p1405_p7)
}
  0x20   : > { %s1409_s26 = scalar_lea.vmem %s1737_s7, 256  ;;  %p1417_p2 = scmp.lt.s32.totalorder %s1737_s7, %s1737_s7 }
  0x21   : > { %p1410_p9 = scmp.ne.s32.totalorder %s1737_s7, %s1409_s26  ;;  %p1418_p6 = scmp.lt.s32.totalorder %s1409_s26, %s1409_s26 }
  0x23   : > { %p1412_p10 = pnand %p1410_p9, %p1760_p13  ;;  %p1419_p12 = por %p1418_p6, %p1417_p2 }
  0x25   : > { %p1413_p1 = pneg %p1412_p10 }
  0x27   : > { %p1420_p0 = pnand %p1419_p12, %p1413_p1 }
  0x29   : > { %1423 = shalt.err (!%p1420_p0)
}
  0x2a   : > { %s2842_s30 = smov 128   ;;  %s2843_s9 = smov 8  }
  0x2b   : > { %1270 = dma.hbm_to_vmem [thread:$0]  (!%p1744_p11), %s2833_s1, 256, %s1737_s7, [#allocation6], %s2842_s30, %s2842_s30, %s2843_s9  }
  0x2c   : > { %s1424_s16 = scalar_lea.hbm %s2835_s3, 16 }
  0x2d   : > { %p1425_p1 = scmp.ne.s32.totalorder %s2835_s3, %s1424_s16  ;;  %p1431_p10 = scmp.lt.u32.totalorder %s1424_s16, %s2835_s3 }
  0x2f   : > { %p1427_p2 = pnand %p1425_p1, %p1760_p13 }
  0x31   : > { %p1428_p6 = pneg %p1427_p2 }
  0x33   : > { %p1433_p3 = pnand %p1431_p10, %p1428_p6 }
  0x35   : > { %1436 = shalt.err (!%p1433_p3)
}
  0x36   : > { %s1437_s7 = scalar_lea.vmem %s1748_s10, 16  ;;  %s1444_s11 = scalar_lea.vmem %s1748_s10, 32 }
  0x37   : > { %p1438_p5 = scmp.ne.s32.totalorder %s1748_s10, %s1437_s7  ;;  %p1445_p12 = scmp.lt.s32.totalorder %s1748_s10, %s1748_s10 }
  0x38   : > { %p1446_p0 = scmp.lt.s32.totalorder %s1444_s11, %s1437_s7 }
  0x39   : > { %p1440_p7 = pnand %p1438_p5, %p1760_p13 }
  0x3a   : > { %p1447_p1 = por %p1446_p0, %p1445_p12 }
  0x3b   : > { %p1441_p9 = pneg %p1440_p7 }
  0x3d   : > { %p1448_p2 = pnand %p1447_p1, %p1441_p9 }
  0x3f   : > { %1451 = shalt.err (!%p1448_p2)
}
  0x40   : > { %1276 = dma.hbm_to_vmem [thread:$0]  (!%p1744_p11), %s2835_s3, 16, %s1748_s10, [#allocation9]  }
  0x41   : > { %s1452_s17 = scalar_lea.hbm %s2834_s2, 16 }
  0x42   : > { %p1453_p6 = scmp.ne.s32.totalorder %s2834_s2, %s1452_s17  ;;  %p1459_p5 = scmp.lt.u32.totalorder %s1452_s17, %s2834_s2 }
  0x44   : > { %p1455_p10 = pnand %p1453_p6, %p1760_p13 }
  0x46   : > { %p1456_p3 = pneg %p1455_p10 }
  0x48   : > { %p1461_p7 = pnand %p1459_p5, %p1456_p3 }
  0x4a   : > { %1464 = shalt.err (!%p1461_p7)
}
  0x4b   : > { %s1465_s11 = scalar_lea.vmem %s222_s12, 16  ;;  %s1472_s10 = scalar_lea.vmem %s222_s12, 32 }
  0x4c   : > { %p1466_p9 = scmp.ne.s32.totalorder %s222_s12, %s1465_s11  ;;  %p1473_p1 = scmp.lt.s32.totalorder %s222_s12, %s222_s12 }
  0x4d   : > { %p1474_p2 = scmp.lt.s32.totalorder %s1472_s10, %s1465_s11 }
  0x4e   : > { %p1468_p12 = pnand %p1466_p9, %p1760_p13 }
  0x4f   : > { %p1475_p4 = por %p1474_p2, %p1473_p1 }
  0x50   : > { %p1469_p0 = pneg %p1468_p12 }
  0x52   : > { %p1476_p8 = pnand %p1475_p4, %p1469_p0 }
  0x54   : > { %1479 = shalt.err (!%p1476_p8)
}
  0x55   : > { %1273 = dma.hbm_to_vmem [thread:$0]  (!%p1744_p11), %s2834_s2, 16, %s222_s12, [#allocation6]  }
  0x56   : > { %s1651_s15 = smov [#allocation10]   ;;  %s1480_s20 = scalar_lea.hbm %s2836_s4, 1664 }
  0x57   : > { %s242_s16 = sshll.u32 %s1651_s15, 4  ;;  %p1481_p6 = scmp.ne.s32.totalorder %s2836_s4, %s1480_s20  ;;  %s243_s16 = int_to_ptr.vmem [resolvable:$true] %s242_s16 }
  0x58   : > { %p1487_p10 = scmp.lt.u32.totalorder %s1480_s20, %s2836_s4 }
  0x59   : > { %p1483_p4 = pnand %p1481_p6, %p1760_p13 }
  0x5b   : > { %p1484_p8 = pneg %p1483_p4 }
  0x5d   : > { %p1489_p3 = pnand %p1487_p10, %p1484_p8 }
  0x5f   : > { %1492 = shalt.err (!%p1489_p3)
}
  0x60   : > { %s1493_s12 = scalar_lea.vmem %s243_s16, 1664  ;;  %p1501_p12 = scmp.lt.s32.totalorder %s243_s16, %s243_s16 }
  0x61   : > { %p1494_p5 = scmp.ne.s32.totalorder %s243_s16, %s1493_s12  ;;  %p1502_p0 = scmp.lt.s32.totalorder %s1493_s12, %s1493_s12 }
  0x63   : > { %p1496_p7 = pnand %p1494_p5, %p1760_p13  ;;  %p1503_p1 = por %p1502_p0, %p1501_p12 }
  0x65   : > { %p1497_p9 = pneg %p1496_p7 }
  0x67   : > { %p1504_p2 = pnand %p1503_p1, %p1497_p9 }
  0x69   : > { %1507 = shalt.err (!%p1504_p2)
}
  0x6a   : > { %1279 = dma.hbm_to_vmem [thread:$0]  (!%p1744_p11), %s2836_s4, 1664, %s243_s16, [#allocation9], %s2842_s30, %s2842_s30, %s2843_s9  }
  0x6b   : > { %s1849_s18 = sadd.s32 1, %s1644_s24   ;;  %s35_s8 = sadd.s32 1, %s1640_s23 }
  0x6c   : > { %s32_s15 = ssub.s32 %s1644_s24, %s1849_s18  ;;  %p42_p13 = scmp.ne.s32.totalorder %s1640_s23, %s1636_s22 }
  0x6d   : > { %p33_p6 = scmp.eq.s32.totalorder %s32_s15, 0  ;;  %p43_p4 = scmp.eq.s32.totalorder %s1644_s24, 0 }
  0x6e   : > { %p2855_p8 = scmp.eq.s32.totalorder %s1714_s25, 1  ;;  %p1295_p3 = scmp.lt.s32.totalorder %s1644_s24, 2 }
  0x6f   : > { %s1865_s19 = scalar_select %p33_p6, %s1640_s23, %s35_s8  }
  0x70   : > { %p1859_p10 = por %p2855_p8, %p42_p13  ;;  %p44_p5 = por %p43_p4, %p42_p13 }
  0x71   : > { %s256_s20 = sand.u32 1, %s1640_s23   ;;  %s1242_s16 = smul.u32 1664, %s1644_s24 }
  0x72   : > { %s1241_s26 = smul.u32 104, %s256_s20  ;;  %p1869_p11 = pnand %p1295_p3, %p44_p5 }
  0x73   : > { %s1876_s12 = scalar_lea.hbm %s2832_s0, %s1242_s16  ;;  %s1880_s8 = scalar_lea.sflag [#allocation3], %s256_s20 }
  0x74   : > { %s260_s13 = scalar_lea.vmem [#allocation2], %s1241_s26  ;;  %s1508_s15 = scalar_lea.hbm %s1876_s12, 1664 }
  0x75   : > { %s267_s14 = sshll.u32 %s260_s13, 4  ;;  %p1509_p7 = scmp.ne.s32.totalorder %s1876_s12, %s1508_s15  ;;  %s1878_s14 = int_to_ptr.vmem [resolvable:$true] %s267_s14 }
  0x76   : > { %p1510_p9 = pneg %p1869_p11  ;;  %s1513_s10 = scalar_lea.hbm %s2832_s0, 3328 }
  0x77   : > { %p1514_p1 = scmp.lt.u32.totalorder %s1876_s12, %s2832_s0  ;;  %p1515_p2 = scmp.lt.u32.totalorder %s1513_s10, %s1508_s15 }
  0x78   : > { %p1511_p12 = pnand %p1510_p9, %p1509_p7  ;;  %p1517_p6 = scmp.lt.u32.totalorder %s1508_s15, %s1876_s12 }
  0x79   : > { %p1516_p13 = por %p1515_p2, %p1514_p1 }
  0x7a   : > { %p1512_p0 = pneg %p1511_p12 }
  0x7b   : > { %p1518_p4 = por %p1517_p6, %p1516_p13 }
  0x7d   : > { %p1519_p8 = pnand %p1518_p4, %p1512_p0 }
  0x7f   : > { %1522 = shalt.err (!%p1519_p8)
}
  0x80   : > { %s1523_s20 = scalar_lea.vmem %s1878_s14, 1664  ;;  %s1652_s26 = smov [#allocation2]  }
  0x81   : > { %p1524_p3 = scmp.ne.s32.totalorder %s1878_s14, %s1523_s20  ;;  %s1528_s13 = sshll.u32 %s1652_s26, 4  ;;  %s1529_s13 = int_to_ptr.vmem [resolvable:$false] %s1528_s13 }
  0x82   : > { %s1530_s30 = scalar_lea.vmem %s1529_s13, 3328  ;;  %p1531_p12 = scmp.lt.s32.totalorder %s1878_s14, %s1529_s13 }
  0x83   : > { %p1526_p5 = pnand %p1524_p3, %p1510_p9  ;;  %p1532_p1 = scmp.lt.s32.totalorder %s1530_s30, %s1523_s20 }
  0x85   : > { %p1527_p7 = pneg %p1526_p5  ;;  %p1533_p2 = por %p1532_p1, %p1531_p12 }
  0x87   : > { %p1534_p13 = pnand %p1533_p2, %p1527_p7 }
  0x89   : > { %1537 = shalt.err (!%p1534_p13)
}
  0x8a   : > { %s2858_s9 = smov 8   ;;  %s2859_s15 = smov 128  }
  0x8b   : > { %1283 = dma.hbm_to_vmem [thread:$0]  (!%p1869_p11), %s1876_s12, 1664, %s1878_s14, %s1880_s8, %s2859_s15, %s2859_s15, %s2858_s9  }
  0x8c   : > { %p2860_p9 = scmp.ne.s32.totalorder %s2852_s29, 0 }
  0x8d   : > { %s1914_s16 = sand.u32 (!%p2860_p9), 1, %s1636_s22   ;;  %p2861_p0 = scmp.ne.s32.totalorder (!%p2860_p9), %s2850_s27, 0 }
  0x8e   : > { %279 = sbr.rel (%p2860_p9) target bundleno = 363 (0x16b), region = 40  ;;  %s282_s10 = scalar_lea.sflag (!%p2860_p9), [#allocation3], %s1914_s16 }
  0x8f   : > { %s1243_s11 = smul.u32 (!%p2860_p9), 104, %s1914_s16 }
  0x91   : > { %s1920_s7 = scalar_lea.vmem (!%p2860_p9), [#allocation2], %s1243_s11 }
  0x95   : > { %1611 = dma.done.wait (%p2861_p0), %s282_s10, 1664  }
  0x96   : > { %1613 = vsyncadd (%p2861_p0), %s282_s10, 4294965632  ;;  %p2862_p11 = scmp.eq.s32.totalorder %s1714_s25, 0 }
  0x98   : > { %1615 = dma.done.wait (%p2862_p11), [#allocation6], 272   ;;  %p2863_p6 = pmov %p2862_p11 }
  0x9a   : > { %1617 = vsyncadd (%p2863_p6), [#allocation6], 4294967024  ;;  %p2864_p4 = pmov %p2863_p6 }
  0x9c   : > { %1619 = dma.done.wait (%p2864_p4), [#allocation9], 1680   ;;  %p2865_p8 = pmov %p2864_p4 }
  0x9d   : > { %v1653_v0 = vmov 0   ;;  %v349_v1 = vlaneseq  ;;  %v929_v3 = vld [vmem:[#allocation10 + $0x10] sm:$0xff]  ;;  %v927_v4 = vld [vmem:[#allocation10] sm:$0xff]  ;;  %v930_v5 = vld [vmem:[#allocation10 + $0x18] sm:$0xff]  ;;  %s2360_s27 = scalar_lea.vmem [#allocation11], %s1243_s11  ;;  %s1244_s29 = smul.u32 1664, %s1714_s25 }
  0x9e   : > { %1621 = vsyncadd (%p2865_p8), [#allocation9], 4294965616  ;;  %1343 = vset.pattern.permute.xlu1 %v1653_v0  ;;  %1342 = vset.pattern.permute.xlu0 %v1653_v0  ;;  %v928_v6 = vld [vmem:[#allocation10 + $0x8] sm:$0xff]  ;;  %v1951_v15 = vld [vmem:[%s1920_s7 + $0x18] sm:$0xff]  ;;  %s1056_s12 = sshll.u32 %s2360_s27, 4  ;;  %s1039_s26 = scalar_lea.sflag [#allocation4], %s1914_s16  ;;  %s2756_s12 = int_to_ptr.vmem [resolvable:$true] %s1056_s12 }
  0x9f   : > { %v1934_v2 = vshrl.u32 %v349_v1, 7  ;;  %952 = vperm.xlu1 %1343, %v929_v3   ;;  %942 = vperm.xlu0 %1342, %v927_v4   ;;  %v1948_v14 = vld [vmem:[%s1920_s7 + $0x10] sm:$0xff]  ;;  %v1955_v17 = vld [vmem:[%s1920_s7 + $0x20] sm:$0xff]  ;;  %v382_v20 = vrot.slane %v1951_v15, 1  ;;  %v441_v26 = vrot.slane %v1951_v15, 2  ;;  %v528_v31 = vrot.slane %v1951_v15, 3  ;;  %s2754_s20 = scalar_lea.hbm %s2837_s5, %s1244_s29 }
  0xa0   : > { %v347_v18 = vld [vmem:[#allocation5] sm:$0xff]  ;;  %v381_v19 = vrot.slane %v1948_v14, 1  ;;  %v440_v21 = vrot.slane %v1948_v14, 2  ;;  %v931_v23 = vld [vmem:[#allocation10 + $0x20] sm:$0xff]  ;;  %v442_v27 = vrot.slane %v1955_v17, 2  ;;  %v529_v39 = vrot.slane %v1955_v17, 3 }
  0xa1   : > { %v351_v7 = vsub.s32 0, %v1934_v2  ;;  %vm394_vm0 = vcmp.lt.s32.totalorder %v1934_v2, 7  ;;  %v410_v8 = vsub.s32 1, %v1934_v2  ;;  %vm451_vm1 = vcmp.lt.s32.totalorder %v1934_v2, 6  ;;  %v932_v22 = vld [vmem:[#allocation10 + $0x28] sm:$0xff]  ;;  %v934_v41 = vld [vmem:[#allocation10 + $0x38] sm:$0xff] }
  0xa2   : > { %v467_v9 = vsub.s32 2, %v1934_v2  ;;  %v497_v10 = vsub.s32 3, %v1934_v2  ;;  %vm538_vm2 = vcmp.lt.s32.totalorder %v1934_v2, 5  ;;  %v554_v11 = vsub.s32 4, %v1934_v2  ;;  %v1995_v36 = vld [vmem:[%s1920_s7 + $0x28] sm:$0xff]  ;;  %v2032_v55 = vld [vmem:[%s1920_s7] sm:$0xff] }
  0xa3   : > { %vm595_vm3 = vcmp.lt.s32.totalorder %v1934_v2, 4  ;;  %v611_v12 = vsub.s32 5, %v1934_v2  ;;  %v641_v13 = vsub.s32 6, %v1934_v2  ;;  %957 = vperm.xlu1 %1343, %v930_v5   ;;  %947 = vperm.xlu0 %1342, %v928_v6   ;;  %v698_v16 = vsub.s32 7, %v1934_v2  ;;  %v933_v42 = vld [vmem:[#allocation10 + $0x30] sm:$0xff]  ;;  %v936_v61 = vld [vmem:[#allocation10 + $0x48] sm:$0xff] }
  0xa4   : > { %vm682_vm4 = vcmp.lt.s32.totalorder %v1934_v2, 3  ;;  %v1961_v24 = vrot.slane %v347_v18, %v351_v7  ;;  %v1963_v25 = vrot.slane %v347_v18, %v410_v8  ;;  %vm739_vm5 = vcmp.lt.s32.totalorder %v1934_v2, 2  ;;  %v2035_v56 = vld [vmem:[%s1920_s7 + $0x8] sm:$0xff]  ;;  %v2057_v8 = vld [vmem:[#allocation5 + $0x8] ss:$0 sm:$0xff]  ;;  %s1538_s13 = scalar_lea.vmem %s2756_s12, 1664 }
  0xa5   : > { %v404_v28 = vsel %vm394_vm0, %v381_v19, %v382_v20  ;;  %v1974_v29 = vrot.slane %v347_v18, %v467_v9  ;;  %v1976_v30 = vrot.slane %v347_v18, %v497_v10  ;;  %v1986_v34 = vsel %vm451_vm1, %v441_v26, %v442_v27  ;;  %v935_v62 = vld [vmem:[#allocation10 + $0x40] sm:$0xff]  ;;  %p1539_p3 = scmp.ne.s32.totalorder %s2756_s12, %s1538_s13  ;;  %s1654_s30 = smov [#allocation11]  }
  0xa6   : > { %v355_v32 = vmul.f32 %v1961_v24, %v1948_v14  ;;  %v414_v33 = vmul.f32 %v1963_v25, %v404_v28  ;;  %v1992_v35 = vsel %vm451_vm1, %v440_v21, %v441_v26  ;;  %v2002_v40 = vrot.slane %v347_v18, %v554_v11  ;;  %v937_v26 = vld [vmem:[#allocation10 + $0x50] sm:$0xff]  ;;  %s1542_s9 = sshll.u32 %s1654_s30, 4  ;;  %s1543_s9 = int_to_ptr.vmem [resolvable:$false] %s1542_s9 }
  0xa7   : > { %967 = vperm.xlu1 %1343, %v932_v22   ;;  %962 = vperm.xlu0 %1342, %v931_v23   ;;  %v471_v37 = vmul.f32 %v1974_v29, %v1992_v35  ;;  %v501_v38 = vmul.f32 %v1976_v30, %v1986_v34  ;;  %v585_v44 = vrot.slane %v1951_v15, 4  ;;  %v586_v45 = vrot.slane %v1955_v17, 4  ;;  %v938_v23 = vld [vmem:[#allocation10 + $0x58] sm:$0xff]  ;;  %p1540_p5 = pnand %p1539_p3, %p1859_p10  ;;  %s1544_s15 = scalar_lea.vmem %s1543_s9, 3328 }
  0xa8   : > { %v427_v43 = vadd.f32 %v414_v33, %v355_v32  ;;  %v587_v46 = vrot.slane %v1995_v36, 4  ;;  %v547_v47 = vsel %vm538_vm2, %v528_v31, %v529_v39  ;;  %v2013_v48 = vrot.slane %v347_v18, %v611_v12  ;;  %p1545_p12 = scmp.lt.s32.totalorder %s2756_s12, %s1543_s9  ;;  %p1546_p1 = scmp.lt.s32.totalorder %s1544_s15, %s1538_s13 }
  0xa9   : > { %v2015_v49 = vrot.slane %v347_v18, %v641_v13  ;;  %v673_v50 = vrot.slane %v1955_v17, 5  ;;  %v558_v52 = vmul.f32 %v2002_v40, %v547_v47  ;;  %v2029_v54 = vsel %vm595_vm3, %v585_v44, %v586_v45  ;;  %p1541_p7 = pneg %p1540_p5 }
  0xaa   : > { %v484_v51 = vadd.f32 %v471_v37, %v427_v43  ;;  %v2023_v53 = vsel %vm595_vm3, %v586_v45, %v587_v46  ;;  %v615_v57 = vmul.f32 %v2013_v48, %v2029_v54  ;;  %v674_v59 = vrot.slane %v1995_v36, 5  ;;  %p1547_p2 = por %p1546_p1, %p1545_p12 }
  0xab   : > { %977 = vperm.xlu1 %1343, %v934_v41   ;;  %972 = vperm.xlu0 %1342, %v933_v42   ;;  %v645_v58 = vmul.f32 %v2015_v49, %v2023_v53  ;;  %v2042_v60 = vrot.slane %v347_v18, %v698_v16  ;;  %v730_v0 = vrot.slane %v1955_v17, 6  ;;  %v731_v1 = vrot.slane %v1995_v36, 6 }
  0xac   : > { %v514_v63 = vadd.f32 %v501_v38, %v484_v51  ;;  %v353_v3 = vmul.f32 %v1961_v24, %v2032_v55  ;;  %v690_v4 = vsel %vm682_vm4, %v673_v50, %v674_v59  ;;  %v2847_v5 = vrot.slane %v2032_v55, 1  ;;  %p1548_p13 = pnand %p1547_p2, %p1541_p7 }
  0xad   : > { %v380_v6 = vrot.slane %v2035_v56, 1  ;;  %v438_v7 = vrot.slane %v2032_v55, 2  ;;  %v702_v10 = vmul.f32 %v2042_v60, %v690_v4  ;;  %v747_v11 = vsel %vm739_vm5, %v730_v0, %v731_v1 }
  0xae   : > { %v571_v9 = vadd.f32 %v558_v52, %v514_v63  ;;  %v439_v12 = vrot.slane %v2035_v56, 2  ;;  %v759_v13 = vmul.f32 %v2057_v8, %v747_v11  ;;  %v2846_v18 = vrot.slane %v2035_v56, 3  ;;  %v939_v63 = vld [vmem:[#allocation10 + $0x60] sm:$0xff] }
  0xaf   : > { %987 = vperm.xlu1 %1343, %v936_v61   ;;  %982 = vperm.xlu0 %1342, %v935_v62   ;;  %v406_v16 = vsel %vm394_vm0, %v2847_v5, %v380_v6  ;;  %v527_v22 = vrot.slane %v1948_v14, 3  ;;  %v2848_v42 = vrot.slane %v2035_v56, 4  ;;  %v584_v51 = vrot.slane %v1948_v14, 4 }
  0xb0   : > { %v628_v28 = vadd.f32 %v615_v57, %v571_v9  ;;  %v412_v32 = vmul.f32 %v1963_v25, %v406_v16  ;;  %v2081_v33 = vsel %vm451_vm1, %v439_v12, %v440_v21  ;;  %v2087_v37 = vsel %vm451_vm1, %v438_v7, %v439_v12 }
  0xb1   : > { %v469_v38 = vmul.f32 %v1974_v29, %v2087_v37  ;;  %v499_v41 = vmul.f32 %v1976_v30, %v2081_v33  ;;  %v549_v21 = vsel %vm538_vm2, %v2846_v18, %v527_v22  ;;  %v2845_v52 = vrot.slane %v1948_v14, 5 }
  0xb2   : > { %v658_v43 = vadd.f32 %v645_v58, %v628_v28  ;;  %v425_v45 = vadd.f32 %v412_v32, %v353_v3  ;;  %v556_v47 = vmul.f32 %v2002_v40, %v549_v21  ;;  %v672_v57 = vrot.slane %v1951_v15, 5  ;;  %v2131_v32 = vld [vmem:[#allocation7] ss:$0 sm:$0xff] }
  0xb3   : > { %997 = vperm.xlu1 %1343, %v938_v23   ;;  %992 = vperm.xlu0 %1342, %v937_v26   ;;  %v2844_v61 = vrot.slane %v1948_v14, 6  ;;  %v729_v62 = vrot.slane %v1951_v15, 6  ;;  %v605_v58 = vsel %vm595_vm3, %v584_v51, %v585_v44  ;;  %v2114_v3 = vsel %vm595_vm3, %v2848_v42, %v584_v51 }
  0xb4   : > { %v715_v4 = vadd.f32 %v702_v10, %v658_v43  ;;  %v482_v9 = vadd.f32 %v469_v38, %v425_v45  ;;  %v613_v11 = vmul.f32 %v2013_v48, %v2114_v3  ;;  %v643_v12 = vmul.f32 %v2015_v49, %v605_v58  ;;  %v2134_v38 = vld [vmem:[%s1920_s7 + $0x30] sm:$0xff] }
  0xb5   : > { %v692_v10 = vsel %vm682_vm4, %v2845_v52, %v672_v57  ;;  %v749_v44 = vsel %vm739_vm5, %v2844_v61, %v729_v62  ;;  %v356_v21 = vmul.f32 %v1961_v24, %v1951_v15  ;;  %v383_v43 = vrot.slane %v1955_v17, 1 }
  0xb6   : > { %v772_v16 = vadd.f32 %v759_v13, %v715_v4  ;;  %v512_v23 = vadd.f32 %v499_v41, %v482_v9  ;;  %v700_v26 = vmul.f32 %v2042_v60, %v692_v10  ;;  %v757_v28 = vmul.f32 %v2057_v8, %v749_v44  ;;  %v2145_v9 = vld [vmem:[#allocation8] ss:$0 sm:$0xff] }
  0xb7   : > { %1002 = vperm.xlu0 %1342, %v939_v63   ;;  %v443_v45 = vrot.slane %v1995_v36, 2  ;;  %v472_v13 = vmul.f32 %v1974_v29, %v1986_v34  ;;  %v530_v4 = vrot.slane %v1995_v36, 3  ;;  %v588_v63 = vrot.slane %v2134_v38, 4 }
  0xb8   : > { %v792_v41 = vmul.f32 %v2131_v32, %v772_v16  ;;  %v569_v51 = vadd.f32 %v556_v47, %v512_v23  ;;  %v403_v10 = vsel %vm394_vm0, %v382_v20, %v383_v43  ;;  %v616_v47 = vmul.f32 %v2013_v48, %v2023_v53 }
  0xb9   : > { %v2159_v34 = vsel %vm451_vm1, %v442_v27, %v443_v45  ;;  %v675_v44 = vrot.slane %v2134_v38, 5  ;;  %v415_v61 = vmul.f32 %v1963_v25, %v403_v10  ;;  %v546_v27 = vsel %vm538_vm2, %v529_v39, %v530_v4 }
  0xba   : > { %v2165_v16 = vadd.f32 %v2145_v9, %v792_v41  ;;  %v626_v23 = vadd.f32 %v613_v11, %v569_v51  ;;  %v502_v20 = vmul.f32 %v1976_v30, %v2159_v34  ;;  %v2182_v53 = vsel %vm595_vm3, %v587_v46, %v588_v63 }
  0xbb   : > { %v689_v11 = vsel %vm682_vm4, %v674_v59, %v675_v44  ;;  %v732_v41 = vrot.slane %v2134_v38, 6  ;;  %v428_v10 = vadd.f32 %v415_v61, %v356_v21  ;;  %v559_v52 = vmul.f32 %v2002_v40, %v546_v27 }
  0xbc   : > { %v1226_v51 = vmul.f32 -1.442695, %v2165_v16  ;;  %v656_v39 = vadd.f32 %v643_v12, %v626_v23  ;;  %v646_v18 = vmul.f32 %v2015_v49, %v2182_v53  ;;  %v703_v46 = vmul.f32 %v2042_v60, %v689_v11 }
  0xbd   : > { %v746_v59 = vsel %vm739_vm5, %v731_v1, %v732_v41  ;;  %v354_v5 = vmul.f32 %v1961_v24, %v2035_v56  ;;  %v485_v61 = vadd.f32 %v472_v13, %v428_v10  ;;  %v405_v23 = vsel %vm394_vm0, %v380_v6, %v381_v19 }
  0xbe   : > { %1344 = vpow2.f32 %v1226_v51  ;;  %v713_v12 = vadd.f32 %v700_v26, %v656_v39  ;;  %v760_v21 = vmul.f32 %v2057_v8, %v746_v59  ;;  %v470_v27 = vmul.f32 %v1974_v29, %v2081_v33  ;;  %v2239_v39 = vld [vmem:[%s1920_s7 + $0x38] sm:$0xff] }
  0xbf   : > { %v500_v1 = vmul.f32 %v1976_v30, %v1992_v35  ;;  %v548_v26 = vsel %vm538_vm2, %v527_v22, %v528_v31  ;;  %v515_v11 = vadd.f32 %v502_v20, %v485_v61  ;;  %v413_v51 = vmul.f32 %v1963_v25, %v405_v23 }
  0xc0   : > { %v770_v13 = vadd.f32 %v757_v28, %v713_v12  ;;  %v557_v19 = vmul.f32 %v2002_v40, %v548_v26  ;;  %v614_v6 = vmul.f32 %v2013_v48, %v605_v58  ;;  %v644_v33 = vmul.f32 %v2015_v49, %v2029_v54 }
  0xc1   : > { %v691_v35 = vsel %vm682_vm4, %v672_v57, %v673_v50  ;;  %v748_v31 = vsel %vm739_vm5, %v729_v62, %v730_v0  ;;  %v572_v28 = vadd.f32 %v559_v52, %v515_v11  ;;  %v426_v20 = vadd.f32 %v413_v51, %v354_v5 }
  0xc2   : > { %v790_v22 = vmul.f32 %v2131_v32, %v770_v13  ;;  %v701_v58 = vmul.f32 %v2042_v60, %v691_v35  ;;  %v758_v54 = vmul.f32 %v2057_v8, %v748_v31  ;;  %v358_v15 = vmul.f32 %v1961_v24, %v1995_v36 }
  0xc3   : > { %v384_v50 = vrot.slane %v1995_v36, 1  ;;  %v385_v57 = vrot.slane %v2134_v38, 1  ;;  %v629_v0 = vadd.f32 %v616_v47, %v572_v28  ;;  %v483_v62 = vadd.f32 %v470_v27, %v426_v20  ;;  %v2275_v20 = vld [vmem:[%s1920_s7 + $0x40] sm:$0xff] }
  0xc4   : > { %v2247_v10 = vadd.f32 %v2145_v9, %v790_v22  ;;  %v444_v5 = vrot.slane %v2134_v38, 2  ;;  %v445_v59 = vrot.slane %v2239_v39, 2  ;;  %v531_v12 = vrot.slane %v2134_v38, 3 }
  0xc5   : > { %v401_v52 = vsel %vm394_vm0, %v384_v50, %v385_v57  ;;  %v532_v61 = vrot.slane %v2239_v39, 3  ;;  %v659_v26 = vadd.f32 %v646_v18, %v629_v0  ;;  %v513_v13 = vadd.f32 %v500_v1, %v483_v62 }
  0xc6   : > { %v1224_v23 = vmul.f32 -1.442695, %v2247_v10  ;;  %v417_v47 = vmul.f32 %v1963_v25, %v401_v52  ;;  %v2263_v27 = vsel %vm451_vm1, %v444_v5, %v445_v59  ;;  %v458_v11 = vsel %vm451_vm1, %v443_v45, %v444_v5 }
  0xc7   : > { %v544_v51 = vsel %vm538_vm2, %v531_v12, %v532_v61  ;;  %v589_v18 = vrot.slane %v2239_v39, 4  ;;  %v716_v35 = vadd.f32 %v703_v46, %v659_v26  ;;  %v570_v31 = vadd.f32 %v557_v19, %v513_v13 }
  0xc8   : > { %v1345_v1 = vpop.eup %1344  ;;  %1346 = vpow2.f32 %v1224_v23  ;;  %v430_v22 = vadd.f32 %v417_v47, %v358_v15  ;;  %v474_v0 = vmul.f32 %v1974_v29, %v458_v11  ;;  %v504_v45 = vmul.f32 %v1976_v30, %v2263_v27 }
  0xc9   : > { %v864_v28 = vadd.f32 1.0, %v1345_v1  ;;  %v561_v62 = vmul.f32 %v2002_v40, %v544_v51  ;;  %v773_v5 = vadd.f32 %v760_v21, %v716_v35  ;;  %v627_v52 = vadd.f32 %v614_v6, %v570_v31 }
  0xca   : > { %v590_v42 = vrot.slane %v2275_v20, 4  ;;  %v601_v46 = vsel %vm595_vm3, %v588_v63, %v589_v18  ;;  %v487_v19 = vadd.f32 %v474_v0, %v430_v22  ;;  %v676_v23 = vrot.slane %v2239_v39, 5 }
  0xcb   : > { %1348 = vrcp.f32 %v864_v28  ;;  %v618_v15 = vmul.f32 %v2013_v48, %v601_v46  ;;  %v793_v26 = vmul.f32 %v2131_v32, %v773_v5  ;;  %v657_v13 = vadd.f32 %v644_v33, %v627_v52 }
  0xcc   : > { %v2293_v21 = vsel %vm595_vm3, %v589_v18, %v590_v42  ;;  %v677_v6 = vrot.slane %v2275_v20, 5  ;;  %v517_v47 = vadd.f32 %v504_v45, %v487_v19  ;;  %v733_v51 = vrot.slane %v2239_v39, 6 }
  0xcd   : > { %v648_v63 = vmul.f32 %v2015_v49, %v2293_v21  ;;  %v734_v1 = vrot.slane %v2275_v20, 6  ;;  %v2301_v35 = vadd.f32 %v2145_v9, %v793_v26  ;;  %v714_v33 = vadd.f32 %v701_v58, %v657_v13 }
  0xce   : > { %v687_v18 = vsel %vm682_vm4, %v676_v23, %v677_v6  ;;  %v357_v31 = vmul.f32 %v1961_v24, %v1955_v17  ;;  %v574_v22 = vadd.f32 %v561_v62, %v517_v47  ;;  %v402_v58 = vsel %vm394_vm0, %v383_v43, %v384_v50 }
  0xcf   : > { %v705_v28 = vmul.f32 %v2042_v60, %v687_v18  ;;  %v744_v0 = vsel %vm739_vm5, %v733_v51, %v734_v1  ;;  %v1227_v45 = vmul.f32 -1.442695, %v2301_v35  ;;  %v771_v5 = vadd.f32 %v758_v54, %v714_v33 }
  0xd0   : > { %v762_v52 = vmul.f32 %v2057_v8, %v744_v0  ;;  %v416_v19 = vmul.f32 %v1963_v25, %v402_v58  ;;  %v631_v62 = vadd.f32 %v618_v15, %v574_v22  ;;  %v473_v26 = vmul.f32 %v1974_v29, %v2159_v34  ;;  %v2347_v22 = vld [vmem:[%s1920_s7 + $0x48] sm:$0xff] }
  0xd1   : > { %v503_v13 = vmul.f32 %v1976_v30, %v458_v11  ;;  %v545_v17 = vsel %vm538_vm2, %v530_v4, %v531_v12  ;;  %1350 = vpow2.f32 %v1227_v45  ;;  %v791_v43 = vmul.f32 %v2131_v32, %v771_v5 }
  0xd2   : > { %v1347_v47 = vpop.eup %1346  ;;  %v429_v54 = vadd.f32 %v416_v19, %v357_v31  ;;  %v560_v50 = vmul.f32 %v2002_v40, %v545_v17  ;;  %v661_v15 = vadd.f32 %v648_v63, %v631_v62  ;;  %v617_v34 = vmul.f32 %v2013_v48, %v2182_v53 }
  0xd3   : > { %v862_v33 = vadd.f32 1.0, %v1347_v47  ;;  %v647_v11 = vmul.f32 %v2015_v49, %v601_v46  ;;  %v2334_v36 = vadd.f32 %v2145_v9, %v791_v43  ;;  %v688_v4 = vsel %vm682_vm4, %v675_v44, %v676_v23 }
  0xd4   : > { %v486_v18 = vadd.f32 %v473_v26, %v429_v54  ;;  %v745_v12 = vsel %vm739_vm5, %v732_v41, %v733_v51  ;;  %v718_v53 = vadd.f32 %v705_v28, %v661_v15  ;;  %v704_v46 = vmul.f32 %v2042_v60, %v688_v4 }
  0xd5   : > { %v1349_v63 = vpop.eup %1348  ;;  %1352 = vrcp.f32 %v862_v33  ;;  %v761_v31 = vmul.f32 %v2057_v8, %v745_v12  ;;  %v1225_v44 = vmul.f32 -1.442695, %v2334_v36  ;;  %v360_v58 = vmul.f32 %v1961_v24, %v2239_v39  ;;  %v2388_v33 = vld [vmem:[%s1920_s7 + $0x50] sm:$0xff] }
  0xd6   : > { %v2350_v0 = vmul.f32 %v1349_v63, %v2165_v16  ;;  %v516_v23 = vadd.f32 %v503_v13, %v486_v18  ;;  %v775_v45 = vadd.f32 %v762_v52, %v718_v53  ;;  %v386_v41 = vrot.slane %v2239_v39, 1 }
  0xd7   : > { %v387_v51 = vrot.slane %v2275_v20, 1  ;;  %v446_v28 = vrot.slane %v2275_v20, 2  ;;  %1354 = vpow2.f32 %v1225_v44  ;;  %v447_v5 = vrot.slane %v2347_v22, 2 }
  0xd8   : > { %916 = vst [vmem:[%s2360_s27 + $0x10] sm:$0xff] %v2350_v0  ;;  %v573_v16 = vadd.f32 %v560_v50, %v516_v23  ;;  %v533_v19 = vrot.slane %v2275_v20, 3  ;;  %v795_v52 = vmul.f32 %v2131_v32, %v775_v45  ;;  %v534_v13 = vrot.slane %v2347_v22, 3 }
  0xd9   : > { %v399_v62 = vsel %vm394_vm0, %v386_v41, %v387_v51  ;;  %v456_v26 = vsel %vm451_vm1, %v445_v59, %v446_v28  ;;  %v2381_v43 = vsel %vm451_vm1, %v446_v28, %v447_v5  ;;  %v592_v53 = vrot.slane %v2388_v33, 4 }
  0xda   : > { %v630_v17 = vadd.f32 %v617_v34, %v573_v16  ;;  %v419_v47 = vmul.f32 %v1963_v25, %v399_v62  ;;  %v476_v54 = vmul.f32 %v1974_v29, %v456_v26  ;;  %v2385_v50 = vadd.f32 %v2145_v9, %v795_v52 }
  0xdb   : > { %v506_v59 = vmul.f32 %v1976_v30, %v2381_v43  ;;  %v542_v15 = vsel %vm538_vm2, %v533_v19, %v534_v13  ;;  %v591_v34 = vrot.slane %v2347_v22, 4  ;;  %v1351_v18 = vpop.eup %1350  ;;  %v678_v28 = vrot.slane %v2347_v22, 5 }
  0xdc   : > { %v660_v4 = vadd.f32 %v647_v11, %v630_v17  ;;  %v432_v12 = vadd.f32 %v419_v47, %v360_v58  ;;  %v563_v63 = vmul.f32 %v2002_v40, %v542_v15  ;;  %v865_v44 = vadd.f32 1.0, %v1351_v18 }
  0xdd   : > { %v1229_v23 = vmul.f32 -1.442695, %v2385_v50  ;;  %v599_v45 = vsel %vm595_vm3, %v590_v42, %v591_v34  ;;  %v2409_v11 = vsel %vm595_vm3, %v591_v34, %v592_v53  ;;  %v679_v42 = vrot.slane %v2388_v33, 5 }
  0xde   : > { %v717_v16 = vadd.f32 %v704_v46, %v660_v4  ;;  %v489_v52 = vadd.f32 %v476_v54, %v432_v12  ;;  %v620_v58 = vmul.f32 %v2013_v48, %v599_v45  ;;  %1356 = vrcp.f32 %v865_v44 }
  0xdf   : > { %v1353_v62 = vpop.eup %1352  ;;  %v650_v17 = vmul.f32 %v2015_v49, %v2409_v11  ;;  %v735_v47 = vrot.slane %v2347_v22, 6  ;;  %1358 = vpow2.f32 %v1229_v23  ;;  %v685_v34 = vsel %vm682_vm4, %v678_v28, %v679_v42 }
  0xe0   : > { %v2417_v46 = vmul.f32 %v1353_v62, %v2247_v10  ;;  %v774_v54 = vadd.f32 %v761_v31, %v717_v16  ;;  %v519_v15 = vadd.f32 %v506_v59, %v489_v52  ;;  %v736_v18 = vrot.slane %v2388_v33, 6 }
  0xe1   : > { %v359_v4 = vmul.f32 %v1961_v24, %v2134_v38  ;;  %v400_v12 = vsel %vm394_vm0, %v385_v57, %v386_v41  ;;  %v1355_v10 = vpop.eup %1354  ;;  %v707_v44 = vmul.f32 %v2042_v60, %v685_v34  ;;  %v475_v57 = vmul.f32 %v1974_v29, %v2263_v27 }
  0xe2   : > { %914 = vst [vmem:[%s2360_s27] sm:$0xff] %v2417_v46  ;;  %v794_v31 = vmul.f32 %v2131_v32, %v774_v54  ;;  %v576_v59 = vadd.f32 %v563_v63, %v519_v15  ;;  %v418_v23 = vmul.f32 %v1963_v25, %v400_v12  ;;  %v863_v16 = vadd.f32 1.0, %v1355_v10 }
  0xe3   : > { %v742_v38 = vsel %vm739_vm5, %v735_v47, %v736_v18  ;;  %v505_v41 = vmul.f32 %v1976_v30, %v456_v26  ;;  %v543_v15 = vsel %vm538_vm2, %v532_v61, %v533_v19  ;;  %v619_v34 = vmul.f32 %v2013_v48, %v2293_v21 }
  0xe4   : > { %v2443_v52 = vadd.f32 %v2145_v9, %v794_v31  ;;  %v633_v63 = vadd.f32 %v620_v58, %v576_v59  ;;  %v764_v62 = vmul.f32 %v2057_v8, %v742_v38  ;;  %v431_v54 = vadd.f32 %v418_v23, %v359_v4  ;;  %v2456_v31 = vld [vmem:[%s1920_s7 + $0x58] sm:$0xff] }
  0xe5   : > { %1360 = vrcp.f32 %v863_v16  ;;  %v649_v27 = vmul.f32 %v2015_v49, %v599_v45  ;;  %v562_v58 = vmul.f32 %v2002_v40, %v543_v15  ;;  %v686_v39 = vsel %vm682_vm4, %v677_v6, %v678_v28 }
  0xe6   : > { %v1228_v26 = vmul.f32 -1.442695, %v2443_v52  ;;  %v663_v12 = vadd.f32 %v650_v17, %v633_v63  ;;  %v488_v10 = vadd.f32 %v475_v57, %v431_v54  ;;  %v743_v61 = vsel %vm739_vm5, %v734_v1, %v735_v47 }
  0xe7   : > { %v362_v21 = vmul.f32 %v1961_v24, %v2347_v22  ;;  %v388_v19 = vrot.slane %v2347_v22, 1  ;;  %v706_v4 = vmul.f32 %v2042_v60, %v686_v39  ;;  %v763_v23 = vmul.f32 %v2057_v8, %v743_v61 }
  0xe8   : > { %1362 = vpow2.f32 %v1228_v26  ;;  %v720_v45 = vadd.f32 %v707_v44, %v663_v12  ;;  %v518_v17 = vadd.f32 %v505_v41, %v488_v10  ;;  %v1357_v59 = vpop.eup %1356  ;;  %v389_v6 = vrot.slane %v2388_v33, 1  ;;  %v2498_v10 = vld [vmem:[%s1920_s7 + $0x60] sm:$0xff] }
  0xe9   : > { %v448_v28 = vrot.slane %v2388_v33, 2  ;;  %v449_v1 = vrot.slane %v2456_v31, 2  ;;  %v1359_v47 = vpop.eup %1358  ;;  %v2475_v16 = vmul.f32 %v1357_v59, %v2301_v35  ;;  %v535_v57 = vrot.slane %v2388_v33, 3 }
  0xea   : > { %v777_v38 = vadd.f32 %v764_v62, %v720_v45  ;;  %v575_v44 = vadd.f32 %v562_v58, %v518_v17  ;;  %v867_v41 = vadd.f32 1.0, %v1359_v47  ;;  %v397_v63 = vsel %vm394_vm0, %v388_v19, %v389_v6 }
  0xeb   : > { %v2486_v54 = vsel %vm451_vm1, %v448_v28, %v449_v1  ;;  %v454_v35 = vsel %vm451_vm1, %v447_v5, %v448_v28  ;;  %917 = vst [vmem:[%s2360_s27 + $0x18] sm:$0xff] %v2475_v16  ;;  %v421_v26 = vmul.f32 %v1963_v25, %v397_v63  ;;  %v2849_v39 = vrot.slane %v2456_v31, 3 }
  0xec   : > { %v797_v62 = vmul.f32 %v2131_v32, %v777_v38  ;;  %v632_v15 = vadd.f32 %v619_v34, %v575_v44  ;;  %v478_v12 = vmul.f32 %v1974_v29, %v454_v35  ;;  %1364 = vrcp.f32 %v867_v41 }
  0xed   : > { %v508_v58 = vmul.f32 %v1976_v30, %v2486_v54  ;;  %v593_v61 = vrot.slane %v2456_v31, 4  ;;  %v434_v34 = vadd.f32 %v421_v26, %v362_v21  ;;  %v594_v17 = vrot.slane %v2498_v10, 4 }
  0xee   : > { %v2505_v5 = vadd.f32 %v2145_v9, %v797_v62  ;;  %v662_v45 = vadd.f32 %v649_v27, %v632_v15  ;;  %v540_v28 = vsel %vm538_vm2, %v535_v57, %v2849_v39  ;;  %v680_v38 = vrot.slane %v2456_v31, 5 }
  0xef   : > { %v1361_v59 = vpop.eup %1360  ;;  %v597_v47 = vsel %vm595_vm3, %v592_v53, %v593_v61  ;;  %v681_v44 = vrot.slane %v2498_v10, 5  ;;  %v491_v63 = vadd.f32 %v478_v12, %v434_v34  ;;  %v565_v62 = vmul.f32 %v2002_v40, %v540_v28 }
  0xf0   : > { %v2519_v27 = vmul.f32 %v1361_v59, %v2334_v36  ;;  %v1231_v21 = vmul.f32 -1.442695, %v2505_v5  ;;  %v719_v41 = vadd.f32 %v706_v4, %v662_v45  ;;  %v2527_v15 = vsel %vm595_vm3, %v593_v61, %v594_v17 }
  0xf1   : > { %v622_v53 = vmul.f32 %v2013_v48, %v597_v47  ;;  %v521_v59 = vadd.f32 %v508_v58, %v491_v63  ;;  %v683_v4 = vsel %vm682_vm4, %v680_v38, %v681_v44  ;;  %v652_v45 = vmul.f32 %v2015_v49, %v2527_v15 }
  0xf2   : > { %v1363_v26 = vpop.eup %1362  ;;  %915 = vst [vmem:[%s2360_s27 + $0x8] sm:$0xff] %v2519_v27  ;;  %1366 = vpow2.f32 %v1231_v21  ;;  %v776_v36 = vadd.f32 %v763_v23, %v719_v41  ;;  %v737_v61 = vrot.slane %v2456_v31, 6  ;;  %v738_v34 = vrot.slane %v2498_v10, 6 }
  0xf3   : > { %v866_v12 = vadd.f32 1.0, %v1363_v26  ;;  %v578_v39 = vadd.f32 %v565_v62, %v521_v59  ;;  %v361_v23 = vmul.f32 %v1961_v24, %v2275_v20  ;;  %v398_v58 = vsel %vm394_vm0, %v387_v51, %v388_v19 }
  0xf4   : > { %v796_v28 = vmul.f32 %v2131_v32, %v776_v36  ;;  %v740_v21 = vsel %vm739_vm5, %v737_v61, %v738_v34  ;;  %v420_v41 = vmul.f32 %v1963_v25, %v398_v58  ;;  %v477_v63 = vmul.f32 %v1974_v29, %v2381_v43 }
  0xf5   : > { %1368 = vrcp.f32 %v866_v12  ;;  %v635_v26 = vadd.f32 %v622_v53, %v578_v39  ;;  %v709_v20 = vmul.f32 %v2042_v60, %v683_v4  ;;  %v766_v51 = vmul.f32 %v2057_v8, %v740_v21 }
  0xf6   : > { %v2555_v62 = vadd.f32 %v2145_v9, %v796_v28  ;;  %v1365_v19 = vpop.eup %1364  ;;  %v433_v36 = vadd.f32 %v420_v41, %v361_v23  ;;  %v507_v59 = vmul.f32 %v1976_v30, %v454_v35  ;;  %v541_v12 = vsel %vm538_vm2, %v534_v13, %v535_v57 }
  0xf7   : > { %v621_v43 = vmul.f32 %v2013_v48, %v2409_v11  ;;  %v2567_v28 = vmul.f32 %v1365_v19, %v2385_v50  ;;  %v665_v53 = vadd.f32 %v652_v45, %v635_v26  ;;  %v651_v4 = vmul.f32 %v2015_v49, %v597_v47 }
  0xf8   : > { %v1230_v39 = vmul.f32 -1.442695, %v2555_v62  ;;  %v490_v58 = vadd.f32 %v477_v63, %v433_v36  ;;  %v564_v23 = vmul.f32 %v2002_v40, %v541_v12  ;;  %v684_v22 = vsel %vm682_vm4, %v679_v42, %v680_v38 }
  0xf9   : > { %v741_v13 = vsel %vm739_vm5, %v736_v18, %v737_v61  ;;  %919 = vst [vmem:[%s2360_s27 + $0x28] sm:$0xff] %v2567_v28  ;;  %v722_v50 = vadd.f32 %v709_v20, %v665_v53  ;;  %v708_v11 = vmul.f32 %v2042_v60, %v684_v22  ;;  %v364_v57 = vmul.f32 %v1961_v24, %v2456_v31 }
  0xfa   : > { %1370 = vpow2.f32 %v1230_v39  ;;  %v520_v35 = vadd.f32 %v507_v59, %v490_v58  ;;  %v390_v47 = vrot.slane %v2456_v31, 1  ;;  %v391_v45 = vrot.slane %v2498_v10, 1 }
  0xfb   : > { %v450_v42 = vrot.slane %v2498_v10, 2  ;;  %v779_v21 = vadd.f32 %v766_v51, %v722_v50  ;;  %v525_v18 = vrot.slane %v2032_v55, 3  ;;  %v537_v61 = vrot.slane %v2498_v10, 3 }
  0xfc   : > { %v1367_v38 = vpop.eup %1366  ;;  %v582_v41 = vrot.slane %v2032_v55, 4  ;;  %v577_v26 = vadd.f32 %v564_v23, %v520_v35  ;;  %v395_v20 = vsel %vm394_vm0, %v390_v47, %v391_v45  ;;  %v765_v58 = vmul.f32 %v2057_v8, %v741_v13 }
  0xfd   : > { %v869_v63 = vadd.f32 1.0, %v1367_v38  ;;  %v452_v19 = vsel %vm451_vm1, %v449_v1, %v450_v42  ;;  %v799_v51 = vmul.f32 %v2131_v32, %v779_v21  ;;  %v423_v36 = vmul.f32 %v1963_v25, %v395_v20 }
  0xfe   : > { %v2605_v59 = vsel %vm451_vm1, %v450_v42, %v438_v7  ;;  %v480_v12 = vmul.f32 %v1974_v29, %v452_v19  ;;  %v634_v53 = vadd.f32 %v621_v43, %v577_v26  ;;  %v551_v1 = vsel %vm538_vm2, %v537_v61, %v525_v18 }
  0xff   : > { %v1369_v39 = vpop.eup %1368  ;;  %1372 = vrcp.f32 %v869_v63  ;;  %v2617_v22 = vadd.f32 %v2145_v9, %v799_v51  ;;  %v436_v7 = vadd.f32 %v423_v36, %v364_v57  ;;  %v510_v50 = vmul.f32 %v1976_v30, %v2605_v59 }
 0x100   : > { %v2614_v23 = vmul.f32 %v1369_v39, %v2443_v52  ;;  %v664_v35 = vadd.f32 %v651_v4, %v634_v53  ;;  %v567_v43 = vmul.f32 %v2002_v40, %v551_v1  ;;  %v608_v13 = vsel %vm595_vm3, %v594_v17, %v582_v41 }
 0x101   : > { %v669_v42 = vrot.slane %v2032_v55, 5  ;;  %v1233_v52 = vmul.f32 -1.442695, %v2617_v22  ;;  %v493_v38 = vadd.f32 %v480_v12, %v436_v7  ;;  %v2866_v57 = vrot.slane %v2035_v56, 4 }
 0x102   : > { %918 = vst [vmem:[%s2360_s27 + $0x20] sm:$0xff] %v2614_v23  ;;  %v624_v4 = vmul.f32 %v2013_v48, %v608_v13  ;;  %v721_v63 = vadd.f32 %v708_v11, %v664_v35  ;;  %v670_v26 = vrot.slane %v2035_v56, 5  ;;  %v726_v20 = vrot.slane %v2032_v55, 6 }
 0x103   : > { %v607_v21 = vsel %vm595_vm3, %v582_v41, %v2866_v57  ;;  %v727_v17 = vrot.slane %v2035_v56, 6  ;;  %1374 = vpow2.f32 %v1233_v52  ;;  %v523_v36 = vadd.f32 %v510_v50, %v493_v38 }
 0x104   : > { %v1371_v51 = vpop.eup %1370  ;;  %v363_v12 = vmul.f32 %v1961_v24, %v2388_v33  ;;  %v396_v41 = vsel %vm394_vm0, %v389_v6, %v390_v47  ;;  %v778_v53 = vadd.f32 %v765_v58, %v721_v63  ;;  %v694_v11 = vsel %vm682_vm4, %v669_v42, %v670_v26 }
 0x105   : > { %v868_v39 = vadd.f32 1.0, %v1371_v51  ;;  %v580_v1 = vadd.f32 %v567_v43, %v523_v36  ;;  %v654_v7 = vmul.f32 %v2015_v49, %v607_v21  ;;  %v751_v50 = vsel %vm739_vm5, %v726_v20, %v727_v17 }
 0x106   : > { %v422_v33 = vmul.f32 %v1963_v25, %v396_v41  ;;  %v798_v6 = vmul.f32 %v2131_v32, %v778_v53  ;;  %v711_v47 = vmul.f32 %v2042_v60, %v694_v11  ;;  %v479_v58 = vmul.f32 %v1974_v29, %v2486_v54 }
 0x107   : > { %1376 = vrcp.f32 %v868_v39  ;;  %v637_v35 = vadd.f32 %v624_v4, %v580_v1  ;;  %v509_v52 = vmul.f32 %v1976_v30, %v452_v19  ;;  %v2867_v38 = vrot.slane %v2456_v31, 3 }
 0x108   : > { %v435_v43 = vadd.f32 %v422_v33, %v363_v12  ;;  %v2664_v51 = vadd.f32 %v2145_v9, %v798_v6  ;;  %v768_v36 = vmul.f32 %v2057_v8, %v751_v50  ;;  %v623_v41 = vmul.f32 %v2013_v48, %v2527_v15 }
 0x109   : > { %v539_v57 = vsel %vm538_vm2, %v2867_v38, %v537_v61  ;;  %v1373_v63 = vpop.eup %1372  ;;  %v667_v4 = vadd.f32 %v654_v7, %v637_v35  ;;  %v653_v61 = vmul.f32 %v2015_v49, %v608_v13  ;;  %v365_v39 = vmul.f32 %v1961_v24, %v2498_v10 }
 0x10a   : > { %v2670_v54 = vmul.f32 %v1373_v63, %v2505_v5  ;;  %v492_v12 = vadd.f32 %v479_v58, %v435_v43  ;;  %v566_v19 = vmul.f32 %v2002_v40, %v539_v57  ;;  %v1232_v31 = vmul.f32 -1.442695, %v2664_v51 }
 0x10b   : > { %v2868_v53 = vrot.slane %v2032_v55, 1  ;;  %v724_v5 = vadd.f32 %v711_v47, %v667_v4  ;;  %v695_v1 = vsel %vm682_vm4, %v681_v44, %v669_v42  ;;  %v752_v24 = vsel %vm739_vm5, %v738_v34, %v726_v20 }
 0x10c   : > { %921 = vst [vmem:[%s2360_s27 + $0x38] sm:$0xff] %v2670_v54  ;;  %v522_v11 = vadd.f32 %v509_v52, %v492_v12  ;;  %1378 = vpow2.f32 %v1232_v31  ;;  %v2869_v7 = vrot.slane %v2035_v56, 3  ;;  %v511_v10 = vmul.f32 %v1976_v30, %v2087_v37 }
 0x10d   : > { %v407_v15 = vsel %vm394_vm0, %v391_v45, %v2868_v53  ;;  %v481_v45 = vmul.f32 %v1974_v29, %v2605_v59  ;;  %v1375_v33 = vpop.eup %1374  ;;  %v781_v44 = vadd.f32 %v768_v36, %v724_v5  ;;  %v710_v34 = vmul.f32 %v2042_v60, %v695_v1 }
 0x10e   : > { %v424_v13 = vmul.f32 %v1963_v25, %v407_v15  ;;  %v550_v50 = vsel %vm538_vm2, %v525_v18, %v2869_v7  ;;  %v579_v42 = vadd.f32 %v566_v19, %v522_v11  ;;  %v871_v6 = vadd.f32 1.0, %v1375_v33 }
 0x10f   : > { %v801_v29 = vmul.f32 %v2131_v32, %v781_v44  ;;  %v568_v55 = vmul.f32 %v2002_v40, %v550_v50  ;;  %v767_v18 = vmul.f32 %v2057_v8, %v752_v24  ;;  %v625_v58 = vmul.f32 %v2013_v48, %v607_v21 }
 0x110   : > { %v437_v25 = vadd.f32 %v424_v13, %v365_v39  ;;  %v636_v59 = vadd.f32 %v623_v41, %v579_v42  ;;  %1380 = vrcp.f32 %v871_v6  ;;  %v2870_v52 = vrot.slane %v1948_v14, 5 }
 0x111   : > { %v1377_v47 = vpop.eup %1376  ;;  %v2711_v30 = vadd.f32 %v2145_v9, %v801_v29  ;;  %v655_v48 = vmul.f32 %v2015_v49, %v2114_v3 }
 0x112   : > { %v494_v20 = vadd.f32 %v481_v45, %v437_v25  ;;  %v907_v35 = vmul.f32 %v1377_v47, %v2555_v62  ;;  %v666_v37 = vadd.f32 %v653_v61, %v636_v59  ;;  %v693_v40 = vsel %vm682_vm4, %v670_v26, %v2870_v52 }
 0x113   : > { %v1235_v38 = vmul.f32 -1.442695, %v2711_v30  ;;  %v2871_v62 = vrot.slane %v1948_v14, 6  ;;  %v712_v26 = vmul.f32 %v2042_v60, %v693_v40 }
 0x114   : > { %v524_v43 = vadd.f32 %v511_v10, %v494_v20  ;;  %920 = vst [vmem:[%s2360_s27 + $0x30] sm:$0xff] %v907_v35  ;;  %v723_v57 = vadd.f32 %v710_v34, %v666_v37 }
 0x115   : > { %v750_v21 = vsel %vm739_vm5, %v727_v17, %v2871_v62  ;;  %1382 = vpow2.f32 %v1235_v38 }
 0x116   : > { %v581_v63 = vadd.f32 %v568_v55, %v524_v43  ;;  %v780_v36 = vadd.f32 %v767_v18, %v723_v57  ;;  %v1379_v4 = vpop.eup %1378  ;;  %v769_v49 = vmul.f32 %v2057_v8, %v750_v21 }
 0x117   : > { %v870_v12 = vadd.f32 1.0, %v1379_v4 }
 0x118   : > { %v638_v41 = vadd.f32 %v625_v58, %v581_v63  ;;  %v800_v19 = vmul.f32 %v2131_v32, %v780_v36 }
 0x119   : > { %1384 = vrcp.f32 %v870_v12 }
 0x11a   : > { %v668_v31 = vadd.f32 %v655_v48, %v638_v41  ;;  %v820_v14 = vadd.f32 %v2145_v9, %v800_v19  ;;  %v1381_v3 = vpop.eup %1380 }
 0x11b   : > { %v910_v2 = vmul.f32 %v1381_v3, %v2617_v22 }
 0x11c   : > { %v725_v56 = vadd.f32 %v712_v26, %v668_v31  ;;  %v1234_v17 = vmul.f32 -1.442695, %v820_v14 }
 0x11d   : > { %923 = vst [vmem:[%s2360_s27 + $0x48] sm:$0xff] %v910_v2 }
 0x11e   : > { %v782_v61 = vadd.f32 %v769_v49, %v725_v56  ;;  %v953_v39 = vpop.permute.xlu1 %952  ;;  %v943_v53 = vpop.permute.xlu0 %942  ;;  %1386 = vpow2.f32 %v1234_v17 }
 0x11f   : > { %v1383_v15 = vpop.eup %1382  ;;  %v1005_v24 = vmul.f32 %v943_v53, %v2417_v46  ;;  %v1007_v7 = vmul.f32 %v953_v39, %v2350_v0 }
 0x120   : > { %v802_v60 = vmul.f32 %v2131_v32, %v782_v61  ;;  %v873_v11 = vadd.f32 1.0, %v1383_v15 }
 0x122   : > { %v822_v5 = vadd.f32 %v2145_v9, %v802_v60  ;;  %v958_v8 = vpop.permute.xlu1 %957  ;;  %v948_v1 = vpop.permute.xlu0 %947  ;;  %1388 = vrcp.f32 %v873_v11 }
 0x123   : > { %v1006_v22 = vmul.f32 %v948_v1, %v2519_v27  ;;  %v1385_v45 = vpop.eup %1384  ;;  %v1008_v9 = vmul.f32 %v958_v8, %v2475_v16 }
 0x124   : > { %v1236_v13 = vmul.f32 -1.442695, %v822_v5  ;;  %v909_v32 = vmul.f32 %v1385_v45, %v2664_v51 }
 0x125   : > { %v1018_v50 = vadd.f32 %v1006_v22, %v1005_v24 }
 0x126   : > { %1390 = vpow2.f32 %v1236_v13  ;;  %v968_v33 = vpop.permute.xlu1 %967  ;;  %v963_v44 = vpop.permute.xlu0 %962  ;;  %922 = vst [vmem:[%s2360_s27 + $0x40] sm:$0xff] %v909_v32 }
 0x127   : > { %v1019_v42 = vadd.f32 %v1018_v50, %v1007_v7  ;;  %v1009_v10 = vmul.f32 %v963_v44, %v2614_v23  ;;  %v1010_v34 = vmul.f32 %v968_v33, %v2567_v28 }
 0x128   : > { %v1387_v25 = vpop.eup %1386 }
 0x129   : > { %v1020_v46 = vadd.f32 %v1019_v42, %v1008_v9  ;;  %v872_v27 = vadd.f32 1.0, %v1387_v25 }
 0x12a   : > { %v973_v6 = vpop.permute.xlu0 %972  ;;  %v978_v0 = vpop.permute.xlu1 %977 }
 0x12b   : > { %v1021_v29 = vadd.f32 %v1020_v46, %v1009_v10  ;;  %1392 = vrcp.f32 %v872_v27  ;;  %v1011_v51 = vmul.f32 %v973_v6, %v907_v35  ;;  %v1012_v18 = vmul.f32 %v978_v0, %v2670_v54 }
 0x12c   : > { %v1389_v59 = vpop.eup %1388 }
 0x12d   : > { %v1022_v20 = vadd.f32 %v1021_v29, %v1010_v34  ;;  %v912_v16 = vmul.f32 %v1389_v59, %v2711_v30 }
 0x12e   : > { %v983_v47 = vpop.permute.xlu0 %982  ;;  %v988_v37 = vpop.permute.xlu1 %987 }
 0x12f   : > { %v1023_v23 = vadd.f32 %v1022_v20, %v1011_v51  ;;  %925 = vst [vmem:[%s2360_s27 + $0x58] sm:$0xff] %v912_v16  ;;  %v1013_v28 = vmul.f32 %v983_v47, %v909_v32  ;;  %v1014_v40 = vmul.f32 %v988_v37, %v910_v2 }
 0x130   : > { %v1391_v55 = vpop.eup %1390 }
 0x131   : > { %v874_v58 = vadd.f32 1.0, %v1391_v55  ;;  %v1024_v43 = vadd.f32 %v1023_v23, %v1012_v18 }
 0x132   : > { %v993_v38 = vpop.permute.xlu0 %992  ;;  %v998_v30 = vpop.permute.xlu1 %997 }
 0x133   : > { %1394 = vrcp.f32 %v874_v58  ;;  %v1025_v52 = vadd.f32 %v1024_v43, %v1013_v28  ;;  %v1016_v48 = vmul.f32 %v998_v30, %v912_v16 }
 0x135   : > { %v1393_v35 = vpop.eup %1392  ;;  %v1026_v63 = vadd.f32 %v1025_v52, %v1014_v40 }
 0x136   : > { %v911_v57 = vmul.f32 %v1393_v35, %v820_v14  ;;  %v1003_v36 = vpop.permute.xlu0 %1002 }
 0x138   : > { %924 = vst [vmem:[%s2360_s27 + $0x50] sm:$0xff] %v911_v57  ;;  %v1015_v54 = vmul.f32 %v993_v38, %v911_v57 }
 0x13a   : > { %v1027_v62 = vadd.f32 %v1026_v63, %v1015_v54 }
 0x13c   : > { %v1028_v26 = vadd.f32 %v1027_v62, %v1016_v48 }
 0x13d   : > { %v1395_v21 = vpop.eup %1394 }
 0x13e   : > { %v913_v41 = vmul.f32 %v1395_v21, %v822_v5 }
 0x140   : > { %926 = vst [vmem:[%s2360_s27 + $0x60] sm:$0xff] %v913_v41  ;;  %v1017_v4 = vmul.f32 %v1003_v36, %v913_v41 }
 0x141   : > { %1551 = shalt.err (!%p1548_p13)
}
 0x142   : > { %s1552_s11 = scalar_lea.hbm %s2754_s20, 1664  ;;  %s1556_s27 = scalar_lea.hbm %s2837_s5, 3328 }
 0x143   : > { %p1553_p9 = scmp.ne.s32.totalorder %s2754_s20, %s1552_s11  ;;  %p1557_p6 = scmp.lt.u32.totalorder %s2754_s20, %s2837_s5 }
 0x144   : > { %p1558_p4 = scmp.lt.u32.totalorder %s1556_s27, %s1552_s11  ;;  %p1560_p3 = scmp.lt.u32.totalorder %s1552_s11, %s2754_s20 }
 0x145   : > { %p1554_p0 = pnand %p1553_p9, %p1859_p10 }
 0x146   : > { %p1559_p8 = por %p1558_p4, %p1557_p6 }
 0x147   : > { %p1555_p11 = pneg %p1554_p0 }
 0x148   : > { %p1561_p5 = por %p1560_p3, %p1559_p8 }
 0x14a   : > { %p1562_p7 = pnand %p1561_p5, %p1555_p11 }
 0x14c   : > { %1565 = shalt.err (!%p1562_p7)
}
 0x14d   : > { %s1655_s8 = smov 128   ;;  %s1656_s13 = smov 8   ;;  %v1029_v12 = vadd.f32 %v1028_v26, %v1017_v4 }
 0x14e   : > { %1263 = dma.vmem_to_hbm [thread:$0]  (%p1859_p10), %s2756_s12, 1664, %s2754_s20, %s1039_s26, %s1655_s8, %s1655_s8, %s1656_s13  }
 0x14f   : > { %v1030_v19 = vrot.slane %v1029_v12, 4  ;;  %s1238_s30 = sshll.u32 %s1714_s25, 4  ;;  %s333_s9 = scalar_lea.vmem [#allocation12], %s1914_s16 }
 0x150   : > { %s1072_s15 = sshll.u32 %s333_s9, 4  ;;  %s2788_s7 = scalar_lea.hbm %s2838_s6, %s1238_s30  ;;  %s2790_s15 = int_to_ptr.vmem [resolvable:$true] %s1072_s15 }
 0x151   : > { %v1031_v31 = vadd.f32 %v1030_v19, %v1029_v12  ;;  %s1044_s12 = scalar_lea.sflag [#allocation13], %s1914_s16  ;;  %s1566_s20 = scalar_lea.vmem %s2790_s15, 16 }
 0x152   : > { %p1567_p12 = scmp.ne.s32.totalorder %s2790_s15, %s1566_s20  ;;  %s1657_s25 = smov [#allocation12]  }
 0x153   : > { %v1032_v49 = vrot.slane %v1031_v31, 2  ;;  %s1570_s26 = sshll.u32 %s1657_s25, 4  ;;  %s1571_s26 = int_to_ptr.vmem [resolvable:$false] %s1570_s26 }
 0x154   : > { %p1568_p1 = pnand %p1567_p12, %p1859_p10  ;;  %s1572_s27 = scalar_lea.vmem %s1571_s26, 32 }
 0x155   : > { %v1033_v14 = vadd.f32 %v1032_v49, %v1031_v31  ;;  %p1573_p13 = scmp.lt.s32.totalorder %s2790_s15, %s1571_s26  ;;  %p1574_p9 = scmp.lt.s32.totalorder %s1572_s27, %s1566_s20 }
 0x156   : > { %p1569_p2 = pneg %p1568_p1 }
 0x157   : > { %v1034_v56 = vrot.slane %v1033_v14, 1  ;;  %p1575_p0 = por %p1574_p9, %p1573_p13 }
 0x159   : > { %v1035_v3 = vadd.f32 %v1034_v56, %v1033_v14  ;;  %p1576_p11 = pnand %p1575_p0, %p1569_p2 }
 0x15b   : > { %v1036_v2 = vmul.f32 0.015625, %v1035_v3 }
 0x15d   : > { %1037 = vst [vmem:[%s333_s9] sm:$0x1] %v1036_v2 }
 0x15e   : > { %1579 = shalt.err (!%p1576_p11)
}
 0x15f   : > { %s1580_s16 = scalar_lea.hbm %s2788_s7, 16  ;;  %s1584_s8 = scalar_lea.hbm %s2838_s6, 32 }
 0x160   : > { %p1581_p6 = scmp.ne.s32.totalorder %s2788_s7, %s1580_s16  ;;  %p1585_p3 = scmp.lt.u32.totalorder %s2788_s7, %s2838_s6 }
 0x161   : > { %p1586_p5 = scmp.lt.u32.totalorder %s1584_s8, %s1580_s16  ;;  %p1588_p12 = scmp.lt.u32.totalorder %s1580_s16, %s2788_s7 }
 0x162   : > { %p1582_p4 = pnand %p1581_p6, %p1859_p10 }
 0x163   : > { %p1587_p7 = por %p1586_p5, %p1585_p3 }
 0x164   : > { %p1583_p8 = pneg %p1582_p4 }
 0x165   : > { %p1589_p1 = por %p1588_p12, %p1587_p7 }
 0x167   : > { %p1590_p2 = pnand %p1589_p1, %p1583_p8 }
 0x169   : > { %1593 = shalt.err (!%p1590_p2)
}
 0x16a   : > { %1264 = dma.vmem_to_hbm [thread:$0]  (%p1859_p10), %s2790_s15, 16, %s2788_s7, %s1044_s12  }
 0x16b PF: > { %s1084_s9 = sand.u32 1, %s1632_s21   ;;  %p2872_p13 = scmp.ne.s32.totalorder %s2851_s28, 0 }
 0x16c   : > { %p2873_p9 = scmp.ge.s32.totalorder %s1644_s24, 2  ;;  %s1085_s11 = scalar_lea.sflag [#allocation4], %s1084_s9 }
 0x16e   : > { %p1285_p0 = pnand %p2873_p9, %p2872_p13 }
 0x170   : > { %1623 = dma.done.wait (!%p1285_p0), %s1085_s11, 1664  }
 0x171   : > { %1625 = vsyncadd (!%p1285_p0), %s1085_s11, 4294965632  ;;  %s1094_s10 = scalar_lea.sflag [#allocation13], %s1084_s9 }
 0x172   : > { %1627 = dma.done.wait (!%p1285_p0), %s1094_s10, 16  }
 0x173   : > { %1629 = vsyncadd (!%p1285_p0), %s1094_s10, 4294967280  ;;  %p25_p10 = scmp.ge.s32.totalorder %s1849_s18, 4   ;;  %s2874_s21 = smov %s1636_s22 }
 0x174   : > { %s2875_s22 = smov %s1640_s23  ;;  %s2876_s23 = smov %s1865_s19 }
 0x175   : > { %s2877_s24 = smov %s1849_s18  ;;  %27 = sbr.rel (!%p25_p10) target bundleno = 9 (0x9), region = 118 }
 0x17c   :  { %1098 = vsyncpa [#allocation3], 1 }
 0x17d   :  { %1100 = vsyncpa [#allocation3 + $0x1], 1 }
 0x17e   :  { %1101 = vsyncpa [#allocation6], 1 }
 0x17f   :  { %1102 = vsyncpa [#allocation9], 1 }
 0x180   :  { %1103 = vsyncpa [#allocation4], 1 }
 0x181   :  { %1105 = vsyncpa [#allocation4 + $0x1], 1 }
 0x182   :  { %1106 = vsyncpa [#allocation13], 1 }
 0x183   :  { %1108 = vsyncpa [#allocation13 + $0x1], 1 }

// kernel: efficientnet_baseline_forward.9
= control target key start
LH: loop header
LB: loop body
LE: loop exit
PB: predicated region body
PF: predicated region fallthrough
CT: control target
= control target key end

     0   :  { %10 = vsyncpa [#allocation3], 0  ;;  %s704_s0 = inlined_call_operand.hbm [shape: f32[2,128], index: 0, kind: input, shape index: {}]   ;;  %s705_s1 = inlined_call_operand.hbm [shape: bf16[128,128], index: 1, kind: input, shape index: {}]   ;;  %s706_s2 = inlined_call_operand.hbm [shape: f32[1,128], index: 2, kind: input, shape index: {}]   ;;  %s707_s3 = inlined_call_operand.hbm [shape: bf16[128,128], index: 3, kind: input, shape index: {}]   ;;  %s708_s4 = inlined_call_operand.hbm [shape: f32[1,128], index: 4, kind: input, shape index: {}]   ;;  %s709_s5 = inlined_call_operand.hbm [shape: f32[2,128], index: 5, kind: output, shape index: {}]  }
   0x1   :  { %11 = vsyncpa [#allocation6], 0 }
   0x2   :  { %12 = vsyncpa [#allocation9], 0 }
   0x3   :  { %13 = vsyncpa [#allocation4], 0  ;;  %s592_s18 = smov [#allocation5]   ;;  %s452_s22 = scalar_lea.hbm %s705_s1, 1024 }
   0x4   :  { %s29_s19 = sshll.u32 %s592_s18, 4  ;;  %p453_p0 = scmp.ne.s32.totalorder %s705_s1, %s452_s22  ;;  %s30_s19 = int_to_ptr.vmem [resolvable:$true] %s29_s19 }
   0x5   :  { %p456_p1 = scmp.lt.u32.totalorder %s452_s22, %s705_s1 }
   0x7   :  { %p458_p2 = pnand %p456_p1, %p453_p0 }
   0x9   :  { %461 = shalt.err (!%p458_p2)
}
   0xa   :  { %s462_s27 = scalar_lea.vmem %s30_s19, 1024  ;;  %p467_p4 = scmp.lt.s32.totalorder %s30_s19, %s30_s19 }
   0xb   :  { %p463_p3 = scmp.ne.s32.totalorder %s30_s19, %s462_s27  ;;  %p468_p5 = scmp.lt.s32.totalorder %s462_s27, %s462_s27 }
   0xd   :  { %p469_p6 = por %p468_p5, %p467_p4 }
   0xf   :  { %p470_p7 = pnand %p469_p6, %p463_p3 }
  0x11   :  { %473 = shalt.err (!%p470_p7)
}
  0x12   :  { %s593_s28 = smov 64   ;;  %s594_s29 = smov 4  }
  0x13   :  { %35 = dma.hbm_to_vmem [thread:$0]  %s705_s1, 1024, %s30_s19, [#allocation6], %s593_s28, %s593_s28, %s594_s29  }
  0x14   :  { %s595_s7 = smov [#allocation8]   ;;  %s596_s9 = smov [#allocation2]  }
  0x15   :  { %s51_s8 = sshll.u32 %s595_s7, 4  ;;  %s20_s10 = sshll.u32 %s596_s9, 4  ;;  %s52_s8 = int_to_ptr.vmem [resolvable:$true] %s51_s8  ;;  %s21_s10 = int_to_ptr.vmem [resolvable:$true] %s20_s10 }
  0x16   :  { %s474_s13 = scalar_lea.hbm %s707_s3, 1024 }
  0x17   :  { %p475_p8 = scmp.ne.s32.totalorder %s707_s3, %s474_s13  ;;  %p478_p9 = scmp.lt.u32.totalorder %s474_s13, %s707_s3 }
  0x19   :  { %p480_p10 = pnand %p478_p9, %p475_p8 }
  0x1b   :  { %483 = shalt.err (!%p480_p10)
}
  0x1c   :  { %s484_s1 = scalar_lea.vmem %s52_s8, 1024  ;;  %p489_p12 = scmp.lt.s32.totalorder %s52_s8, %s52_s8 }
  0x1d   :  { %p485_p11 = scmp.ne.s32.totalorder %s52_s8, %s484_s1  ;;  %p490_p13 = scmp.lt.s32.totalorder %s484_s1, %s484_s1 }
  0x1f   :  { %p491_p0 = por %p490_p13, %p489_p12 }
  0x21   :  { %p492_p1 = pnand %p491_p0, %p485_p11 }
  0x23   :  { %495 = shalt.err (!%p492_p1)
}
  0x24   :  { %57 = dma.hbm_to_vmem [thread:$0]  %s707_s3, 1024, %s52_s8, [#allocation9], %s593_s28, %s593_s28, %s594_s29  }
  0x25   :  { %s496_s22 = scalar_lea.hbm %s704_s0, 32 }
  0x26   :  { %p497_p2 = scmp.ne.s32.totalorder %s704_s0, %s496_s22  ;;  %p500_p3 = scmp.lt.u32.totalorder %s496_s22, %s704_s0 }
  0x28   :  { %p502_p4 = pnand %p500_p3, %p497_p2 }
  0x2a   :  { %505 = shalt.err (!%p502_p4)
}
  0x2b   :  { %s506_s27 = scalar_lea.vmem %s21_s10, 32  ;;  %p511_p6 = scmp.lt.s32.totalorder %s21_s10, %s21_s10 }
  0x2c   :  { %p507_p5 = scmp.ne.s32.totalorder %s21_s10, %s506_s27  ;;  %p512_p7 = scmp.lt.s32.totalorder %s506_s27, %s506_s27 }
  0x2e   :  { %p513_p8 = por %p512_p7, %p511_p6 }
  0x30   :  { %p514_p9 = pnand %p513_p8, %p507_p5 }
  0x32   :  { %517 = shalt.err (!%p514_p9)
}
  0x33   :  { %23 = dma.hbm_to_vmem [thread:$0]  %s704_s0, 32, %s21_s10, [#allocation3]  }
  0x34   :  { %s597_s29 = smov [#allocation7]   ;;  %s598_s6 = smov [#allocation10]  }
  0x35   :  { %s42_s30 = sshll.u32 %s597_s29, 4  ;;  %s64_s7 = sshll.u32 %s598_s6, 4  ;;  %s43_s30 = int_to_ptr.vmem [resolvable:$true] %s42_s30  ;;  %s65_s7 = int_to_ptr.vmem [resolvable:$true] %s64_s7 }
  0x36   :  { %s518_s11 = scalar_lea.hbm %s706_s2, 16 }
  0x37   :  { %p519_p10 = scmp.ne.s32.totalorder %s706_s2, %s518_s11  ;;  %p522_p11 = scmp.lt.u32.totalorder %s518_s11, %s706_s2 }
  0x39   :  { %p524_p12 = pnand %p522_p11, %p519_p10 }
  0x3b   :  { %527 = shalt.err (!%p524_p12)
}
  0x3c   :  { %s528_s0 = scalar_lea.vmem %s43_s30, 16  ;;  %s532_s10 = scalar_lea.vmem %s43_s30, 32 }
  0x3d   :  { %p529_p13 = scmp.ne.s32.totalorder %s43_s30, %s528_s0  ;;  %p533_p0 = scmp.lt.s32.totalorder %s43_s30, %s43_s30 }
  0x3e   :  { %p534_p1 = scmp.lt.s32.totalorder %s532_s10, %s528_s0 }
  0x40   :  { %p535_p2 = por %p534_p1, %p533_p0 }
  0x42   :  { %p536_p3 = pnand %p535_p2, %p529_p13 }
  0x44   :  { %539 = shalt.err (!%p536_p3)
}
  0x45   :  { %45 = dma.hbm_to_vmem [thread:$0]  %s706_s2, 16, %s43_s30, [#allocation6]  }
  0x46   :  { %s540_s19 = scalar_lea.hbm %s708_s4, 16 }
  0x47   :  { %p541_p4 = scmp.ne.s32.totalorder %s708_s4, %s540_s19  ;;  %p544_p5 = scmp.lt.u32.totalorder %s540_s19, %s708_s4 }
  0x49   :  { %p546_p6 = pnand %p544_p5, %p541_p4 }
  0x4b   :  { %549 = shalt.err (!%p546_p6)
}
  0x4c   :  { %s550_s24 = scalar_lea.vmem %s65_s7, 16  ;;  %s554_s25 = scalar_lea.vmem %s65_s7, 32 }
  0x4d   :  { %p551_p7 = scmp.ne.s32.totalorder %s65_s7, %s550_s24  ;;  %p555_p8 = scmp.lt.s32.totalorder %s65_s7, %s65_s7 }
  0x4e   :  { %p556_p9 = scmp.lt.s32.totalorder %s554_s25, %s550_s24 }
  0x50   :  { %p557_p10 = por %p556_p9, %p555_p8 }
  0x52   :  { %p558_p11 = pnand %p557_p10, %p551_p7 }
  0x54   :  { %561 = shalt.err (!%p558_p11)
}
  0x55   :  { %67 = dma.hbm_to_vmem [thread:$0]  %s708_s4, 16, %s65_s7, [#allocation9]  }
  0x56   :  { %584 = dma.done.wait [#allocation3], 32  }
  0x57   :  { %585 = vsyncadd [#allocation3], 4294967264 }
  0x58   :  { %586 = dma.done.wait [#allocation6], 1040  }
  0x59   :  { %587 = vsyncadd [#allocation6], 4294966256 }
  0x5a   :  { %588 = dma.done.wait [#allocation9], 1040  }
  0x5b   :  { %589 = vsyncadd [#allocation9], 4294966256  ;;  %v599_v0 = vmov 0.0   ;;  %vm600_vm0 = vmmov 0   ;;  %v428_v1 = vld [vmem:[#allocation5] sm:$0xff]   ;;  %v429_v2 = vld [vmem:[#allocation5 + $0x8] sm:$0xff]  }
  0x5c   :  { %378 = vmatprep.subr.bf16.mxu0 %v599_v0  ;;  %394 = vmatprep.mubr.msk.bf16.mxu0 %vm600_vm0, %v599_v0  ;;  %v430_v3 = vld [vmem:[#allocation5 + $0x10] sm:$0xff]   ;;  %v431_v4 = vld [vmem:[#allocation5 + $0x18] sm:$0xff]   ;;  %v432_v5 = vld [vmem:[#allocation5 + $0x20] sm:$0xff]   ;;  %s601_s4 = smov [#allocation11]  }
  0x5d   :  { %398 = vmatprep.subr.bf16.mxu1 %v599_v0  ;;  %414 = vmatprep.mubr.msk.bf16.mxu1 %vm600_vm0, %v599_v0  ;;  %v433_v6 = vld [vmem:[#allocation5 + $0x28] sm:$0xff]   ;;  %v434_v7 = vld [vmem:[#allocation5 + $0x30] sm:$0xff]   ;;  %v435_v8 = vld [vmem:[#allocation5 + $0x38] sm:$0xff]   ;;  %s329_s27 = sshll.u32 %s601_s4, 4  ;;  %s330_s27 = int_to_ptr.vmem [resolvable:$true] %s329_s27 }
  0x5e   :  { %379 = vmatpush3.bf16.msra.mxu0 %v428_v1  ;;  %v84_v9 = vld [vmem:[#allocation2] sm:$0x3]  ;;  %v436_v11 = vld [vmem:[#allocation8] sm:$0xff]   ;;  %v437_v12 = vld [vmem:[#allocation8 + $0x8] sm:$0xff]   ;;  %s562_s3 = scalar_lea.vmem %s330_s27, 32  ;;  %p567_p13 = scmp.lt.s32.totalorder %s330_s27, %s330_s27 }
  0x5f   :  { %380 = vmatprep.subr.bf16.mxu0 %v599_v0  ;;  %v85_v10 = vpack.c.bf16 %v84_v9, %v84_v9  ;;  %399 = vmatpush3.bf16.msra.mxu1 %v436_v11  ;;  %v438_v13 = vld [vmem:[#allocation8 + $0x10] sm:$0xff]   ;;  %v439_v14 = vld [vmem:[#allocation8 + $0x18] sm:$0xff]   ;;  %v440_v15 = vld [vmem:[#allocation8 + $0x20] sm:$0xff]   ;;  %p563_p12 = scmp.ne.s32.totalorder %s330_s27, %s562_s3  ;;  %p568_p0 = scmp.lt.s32.totalorder %s562_s3, %s562_s3 }
  0x60   :  { %400 = vmatprep.subr.bf16.mxu1 %v599_v0  ;;  %v441_v16 = vld [vmem:[#allocation8 + $0x28] sm:$0xff]   ;;  %v442_v17 = vld [vmem:[#allocation8 + $0x30] sm:$0xff]   ;;  %v443_v18 = vld [vmem:[#allocation8 + $0x38] sm:$0xff]  }
  0x61   :  { %v340_v19 = vld [vmem:[#allocation7] ss:$0 sm:$0xff]  ;;  %v350_v31 = vld [vmem:[#allocation10] ss:$0 sm:$0xff]  ;;  %p569_p1 = por %p568_p0, %p567_p13 }
  0x62   :  { %381 = vmatpush3.bf16.msra.mxu0 %v429_v2 }
  0x63   :  { %382 = vmatprep.subr.bf16.mxu0 %v599_v0  ;;  %401 = vmatpush3.bf16.msra.mxu1 %v437_v12  ;;  %p570_p2 = pnand %p569_p1, %p563_p12 }
  0x64   :  { %402 = vmatprep.subr.bf16.mxu1 %v599_v0 }
  0x66   :  { %383 = vmatpush3.bf16.msra.mxu0 %v430_v3 }
  0x67   :  { %384 = vmatprep.subr.bf16.mxu0 %v599_v0  ;;  %403 = vmatpush3.bf16.msra.mxu1 %v438_v13 }
  0x68   :  { %404 = vmatprep.subr.bf16.mxu1 %v599_v0 }
  0x6a   :  { %385 = vmatpush3.bf16.msra.mxu0 %v431_v4 }
  0x6b   :  { %386 = vmatprep.subr.bf16.mxu0 %v599_v0  ;;  %405 = vmatpush3.bf16.msra.mxu1 %v439_v14 }
  0x6c   :  { %406 = vmatprep.subr.bf16.mxu1 %v599_v0 }
  0x6e   :  { %387 = vmatpush3.bf16.msra.mxu0 %v432_v5 }
  0x6f   :  { %388 = vmatprep.subr.bf16.mxu0 %v599_v0  ;;  %407 = vmatpush3.bf16.msra.mxu1 %v440_v15 }
  0x70   :  { %408 = vmatprep.subr.bf16.mxu1 %v599_v0 }
  0x72   :  { %389 = vmatpush3.bf16.msra.mxu0 %v433_v6 }
  0x73   :  { %390 = vmatprep.subr.bf16.mxu0 %v599_v0  ;;  %409 = vmatpush3.bf16.msra.mxu1 %v441_v16 }
  0x74   :  { %410 = vmatprep.subr.bf16.mxu1 %v599_v0 }
  0x76   :  { %391 = vmatpush3.bf16.msra.mxu0 %v434_v7 }
  0x77   :  { %392 = vmatprep.subr.bf16.mxu0 %v599_v0  ;;  %411 = vmatpush3.bf16.msra.mxu1 %v442_v17 }
  0x78   :  { %412 = vmatprep.subr.bf16.mxu1 %v599_v0 }
  0x7a   :  { %393 = vmatpush3.bf16.msra.mxu0 %v435_v8 }
  0x7b   :  { %413 = vmatpush3.bf16.msra.mxu1 %v443_v18 }
  0x7d   :  { %395 = vmatmul.mubr.bf16.vlgmr.msra.gmra.mrb[0].mxu0 %v85_v10 }
 0x150   :  { %v191_v20 = vpop.f32.mrb[0].mxu0 }
 0x151   :  { %v192_v21 = vadd.f32 %v340_v19, %v191_v20  ;;  %v396_v22 = vpop.f32.mrb[1].mxu0 }
 0x152   :  { %v194_v23 = vpop.f32.mrb[2].mxu0 }
 0x153   :  { %v349_v24 = vmul.f32 -1.442695, %v192_v21  ;;  %v397_v25 = vpop.f32.mrb[3].mxu0 }
 0x155   :  { %444 = vpow2.f32 %v349_v24 }
 0x15f   :  { %v445_v26 = vpop.eup %444 }
 0x160   :  { %v200_v27 = vadd.f32 1.0, %v445_v26 }
 0x162   :  { %446 = vrcp.f32 %v200_v27 }
 0x16c   :  { %v447_v28 = vpop.eup %446 }
 0x16d   :  { %v203_v29 = vmul.f32 %v447_v28, %v192_v21 }
 0x16f   :  { %v204_v30 = vpack.c.bf16 %v203_v29, %v203_v29 }
 0x171   :  { %415 = vmatmul.mubr.bf16.vlgmr.msra.gmra.mrb[0].mxu1 %v204_v30 }
 0x244   :  { %v310_v32 = vpop.f32.mrb[0].mxu1 }
 0x245   :  { %v311_v33 = vadd.f32 %v350_v31, %v310_v32  ;;  %v416_v34 = vpop.f32.mrb[1].mxu1 }
 0x246   :  { %v313_v35 = vpop.f32.mrb[2].mxu1 }
 0x247   :  { %v359_v36 = vmul.f32 -1.442695, %v311_v33  ;;  %v417_v37 = vpop.f32.mrb[3].mxu1 }
 0x249   :  { %448 = vpow2.f32 %v359_v36 }
 0x253   :  { %v449_v38 = vpop.eup %448 }
 0x254   :  { %v319_v39 = vadd.f32 1.0, %v449_v38 }
 0x256   :  { %450 = vrcp.f32 %v319_v39 }
 0x260   :  { %v451_v40 = vpop.eup %450 }
 0x261   :  { %322 = vst [vmem:[#allocation11] sm:$0x3] %v451_v40 }
 0x262   :  { %573 = shalt.err (!%p570_p2)
}
 0x263   :  { %s574_s30 = scalar_lea.hbm %s709_s5, 32 }
 0x264   :  { %p575_p3 = scmp.ne.s32.totalorder %s709_s5, %s574_s30  ;;  %p578_p4 = scmp.lt.u32.totalorder %s574_s30, %s709_s5 }
 0x266   :  { %p580_p5 = pnand %p578_p4, %p575_p3 }
 0x268   :  { %583 = shalt.err (!%p580_p5)
}
 0x269   :  { %332 = dma.vmem_to_hbm [thread:$0]  %s330_s27, 32, %s709_s5, [#allocation4]  }
 0x26a   :  { %590 = dma.done.wait [#allocation4], 32  }
 0x26b   :  { %591 = vsyncadd [#allocation4], 4294967264 }
 0x26c   :  { %336 = vsyncpa [#allocation3], 1 }
 0x26d   :  { %337 = vsyncpa [#allocation6], 1 }
 0x26e   :  { %338 = vsyncpa [#allocation9], 1 }
 0x26f   :  { %339 = vsyncpa [#allocation4], 1 }

// kernel: efficientnet_baseline_forward.10
= control target key start
LH: loop header
LB: loop body
LE: loop exit
PB: predicated region body
PF: predicated region fallthrough
CT: control target
= control target key end

     0   :  { %s1815_s0 = inlined_call_operand.hbm [shape: bf16[2,64,128], index: 0, kind: input, shape index: {}]   ;;  %s1816_s1 = inlined_call_operand.hbm [shape: f32[2,1,128], index: 1, kind: input, shape index: {}]   ;;  %s1817_s2 = inlined_call_operand.hbm [shape: bf16[128,128], index: 2, kind: input, shape index: {}]   ;;  %s1818_s3 = inlined_call_operand.hbm [shape: f32[1,128], index: 3, kind: input, shape index: {}]   ;;  %s1819_s4 = inlined_call_operand.hbm [shape: f32[1,128], index: 4, kind: input, shape index: {}]   ;;  %s1820_s5 = inlined_call_operand.hbm [shape: f32[2,64,128], index: 5, kind: input, shape index: {}]   ;;  %s1821_s6 = inlined_call_operand.hbm [shape: f32[2,64,128], index: 6, kind: output, shape index: {}]  }
   0x1   :  { %1833 = sst [smem:[#allocation23_spill]] %s1815_s0 }
   0x2   :  { %1834 = sst [smem:[#allocation24_spill]] %s1817_s2 }
   0x3   :  { %1835 = sst [smem:[#allocation25_spill]] %s1821_s6 }
   0x4   :  { %11 = vsyncpa [#allocation3], 0 }
   0x5   :  { %13 = vsyncpa [#allocation3 + $0x1], 0 }
   0x6   :  { %14 = vsyncpa [#allocation6], 0 }
   0x7   :  { %16 = vsyncpa [#allocation6 + $0x1], 0 }
   0x8   :  { %17 = vsyncpa [#allocation9], 0 }
   0x9   :  { %18 = vsyncpa [#allocation12], 0 }
   0xa   :  { %20 = vsyncpa [#allocation12 + $0x1], 0 }
   0xb   :  { %21 = vsyncpa [#allocation4], 0 }
   0xc   :  { %23 = vsyncpa [#allocation4 + $0x1], 0  ;;  %s1424_s21 = smov 0   ;;  %s1426_s22 = smov 0  }
   0xd   :  { %s1428_s23 = smov 0   ;;  %s1430_s24 = smov 0  }
   0xe   :  { %s1432_s25 = smov 0   ;;  %s1434_s26 = smov 0  }
   0xf LB: > { %1836 = sst [smem:[#allocation20_spill]] %s1354_s21  ;;  %s1455_s27 = sadd.s32 4294967295, %s1374_s26   ;;  %s1374_s26 = sphi %s1434_s26, %s29_s26   ;;  %s1370_s25 = sphi %s1432_s25, %s1871_s25   ;;  %s1366_s24 = sphi %s1430_s24, %s1870_s24   ;;  %s1362_s23 = sphi %s1428_s23, %s1869_s23   ;;  %s1358_s22 = sphi %s1426_s22, %s1868_s22   ;;  %s1354_s21 = sphi %s1424_s21, %s1867_s21  }
  0x10   : > { %s875_s28 = sadd.s32 4294967294, %s1374_s26   ;;  %p73_p0 = scmp.ne.s32.totalorder %s1362_s23, %s1358_s22 }
  0x11   : > { %p74_p1 = scmp.eq.s32.totalorder %s1374_s26, 0  ;;  %p79_p2 = scmp.ne.s32.totalorder %s1358_s22, %s1354_s21 }
  0x12   : > { %p1822_p3 = scmp.eq.s32.totalorder %s1455_s27, 0  ;;  %p245_p4 = scmp.eq.s32.totalorder %s1455_s27, 1 }
  0x13   : > { %p1466_p5 = por %p74_p1, %p73_p0  ;;  %p251_p6 = scmp.eq.s32.totalorder %s875_s28, 1 }
  0x14   : > { %p1472_p7 = por %p1822_p3, %p79_p2  ;;  %p1476_p8 = por %p245_p4, %p73_p0 }
  0x15   : > { %p1480_p9 = por %p251_p6, %p79_p2  ;;  %p876_p10 = scmp.ge.s32.totalorder %s1374_s26, 1 }
  0x16   : > { %s1838_s7 = scalar_select %p1472_p7, 1, 0 }
  0x17   : > { %s1839_s8 = scalar_select %p1476_p8, 1, 0 }
  0x18   : > { %s1841_s9 = scalar_select %p1480_p9, 1, 0 }
  0x19   : > { %1840 = sst [smem:[#allocation21_spill]] %s1839_s8  ;;  %p258_p11 = scmp.lt.s32.totalorder %s1374_s26, 3 }
  0x1a   : > { %1842 = sst [smem:[#allocation22_spill]] %s1841_s9  ;;  %s1376_s11 = smov [#allocation7]  }
  0x1b   : > { %p1486_p12 = pnand %p876_p10, %p258_p11  ;;  %s274_s12 = sshll.u32 %s1376_s11, 4  ;;  %s1490_s12 = int_to_ptr.vmem [resolvable:$true] %s274_s12 }
  0x1c   : > { %s1377_s14 = smov [#allocation8]   ;;  %s1378_s16 = smov [#allocation10]  }
  0x1d   : > { %s1843_s10 = scalar_select %p1486_p12, 1, 0 }
  0x1e   : > { %p1005_p13 = pneg %p1486_p12  ;;  %s290_s15 = sshll.u32 %s1377_s14, 4  ;;  %s1501_s15 = int_to_ptr.vmem [resolvable:$true] %s290_s15 }
  0x1f   : > { %s303_s17 = sshll.u32 %s1378_s16, 4  ;;  %s1845_s2 = sld [smem:[#allocation24_spill]]  ;;  %s1503_s17 = int_to_ptr.vmem [resolvable:$true] %s303_s17 }
  0x20   : > { %p1497_p1 = pnand %p1005_p13, %p1822_p3 }
  0x22   : > { %p1513_p4 = pneg %p1497_p1 }
  0x25   : > { %s1102_s20 = scalar_lea.hbm %s1845_s2, 1024 }
  0x26   : > { %p1103_p2 = scmp.ne.s32.totalorder %s1845_s2, %s1102_s20  ;;  %p1109_p11 = scmp.lt.u32.totalorder %s1102_s20, %s1845_s2 }
  0x28   : > { %p1105_p6 = pnand %p1513_p4, %p1103_p2 }
  0x2a   : > { %p1106_p10 = pneg %p1105_p6 }
  0x2c   : > { %p1111_p13 = pnand %p1109_p11, %p1106_p10 }
  0x2e   : > { %1114 = shalt.err (!%p1111_p13)
}
  0x2f   : > { %s1115_s18 = scalar_lea.vmem %s1490_s12, 1024  ;;  %p1123_p8 = scmp.lt.s32.totalorder %s1490_s12, %s1490_s12 }
  0x30   : > { %p1116_p0 = scmp.ne.s32.totalorder %s1490_s12, %s1115_s18  ;;  %p1124_p7 = scmp.lt.s32.totalorder %s1115_s18, %s1115_s18 }
  0x32   : > { %p1118_p3 = pnand %p1116_p0, %p1513_p4  ;;  %p1125_p2 = por %p1124_p7, %p1123_p8 }
  0x34   : > { %p1119_p9 = pneg %p1118_p3 }
  0x36   : > { %p1126_p6 = pnand %p1125_p2, %p1119_p9 }
  0x38   : > { %1129 = shalt.err (!%p1126_p6)
}
  0x39   : > { %s1379_s19 = smov 64   ;;  %s1380_s20 = smov 4  }
  0x3a   : > { %1008 = dma.hbm_to_vmem [thread:$0]  (!%p1497_p1), %s1845_s2, 1024, %s1490_s12, [#allocation6], %s1379_s19, %s1379_s19, %s1380_s20  }
  0x3b   : > { %s1130_s18 = scalar_lea.hbm %s1818_s3, 16 }
  0x3c   : > { %p1131_p3 = scmp.ne.s32.totalorder %s1818_s3, %s1130_s18  ;;  %p1137_p9 = scmp.lt.u32.totalorder %s1130_s18, %s1818_s3 }
  0x3e   : > { %p1133_p7 = pnand %p1131_p3, %p1513_p4 }
  0x40   : > { %p1134_p8 = pneg %p1133_p7 }
  0x42   : > { %p1139_p0 = pnand %p1137_p9, %p1134_p8 }
  0x44   : > { %1142 = shalt.err (!%p1139_p0)
}
  0x45   : > { %s1143_s12 = scalar_lea.vmem %s1501_s15, 16  ;;  %s1150_s21 = scalar_lea.vmem %s1501_s15, 32 }
  0x46   : > { %p1144_p10 = scmp.ne.s32.totalorder %s1501_s15, %s1143_s12  ;;  %p1151_p2 = scmp.lt.s32.totalorder %s1501_s15, %s1501_s15 }
  0x47   : > { %p1152_p6 = scmp.lt.s32.totalorder %s1150_s21, %s1143_s12 }
  0x48   : > { %p1146_p11 = pnand %p1144_p10, %p1513_p4 }
  0x49   : > { %p1153_p3 = por %p1152_p6, %p1151_p2 }
  0x4a   : > { %p1147_p13 = pneg %p1146_p11 }
  0x4c   : > { %p1154_p7 = pnand %p1153_p3, %p1147_p13 }
  0x4e   : > { %1157 = shalt.err (!%p1154_p7)
}
  0x4f   : > { %1011 = dma.hbm_to_vmem [thread:$0]  (!%p1497_p1), %s1818_s3, 16, %s1501_s15, [#allocation9]  }
  0x50   : > { %s1158_s11 = scalar_lea.hbm %s1819_s4, 16 }
  0x51   : > { %p1159_p8 = scmp.ne.s32.totalorder %s1819_s4, %s1158_s11  ;;  %p1165_p10 = scmp.lt.u32.totalorder %s1158_s11, %s1819_s4 }
  0x53   : > { %p1161_p9 = pnand %p1159_p8, %p1513_p4 }
  0x55   : > { %p1162_p0 = pneg %p1161_p9 }
  0x57   : > { %p1167_p11 = pnand %p1165_p10, %p1162_p0 }
  0x59   : > { %1170 = shalt.err (!%p1167_p11)
}
  0x5a   : > { %s1171_s15 = scalar_lea.vmem %s1503_s17, 16  ;;  %s1178_s21 = scalar_lea.vmem %s1503_s17, 32 }
  0x5b   : > { %p1172_p13 = scmp.ne.s32.totalorder %s1503_s17, %s1171_s15  ;;  %p1179_p3 = scmp.lt.s32.totalorder %s1503_s17, %s1503_s17 }
  0x5c   : > { %p1180_p7 = scmp.lt.s32.totalorder %s1178_s21, %s1171_s15 }
  0x5d   : > { %p1174_p2 = pnand %p1172_p13, %p1513_p4 }
  0x5e   : > { %p1181_p8 = por %p1180_p7, %p1179_p3 }
  0x5f   : > { %p1175_p6 = pneg %p1174_p2 }
  0x61   : > { %p1182_p9 = pnand %p1181_p8, %p1175_p6 }
  0x63   : > { %1185 = shalt.err (!%p1182_p9)
}
  0x64   : > { %1014 = dma.hbm_to_vmem [thread:$0]  (!%p1497_p1), %s1819_s4, 16, %s1503_s17, [#allocation9]  }
  0x65   : > { %p1032_p4 = scmp.lt.s32.totalorder %s1374_s26, 2  ;;  %s1587_s29 = sand.u32 1, %s1362_s23  }
  0x66   : > { %s55_s13 = sadd.s32 1, %s1370_s25  ;;  %s881_s9 = sshll.u32 %s1587_s29, 5 }
  0x67   : > { %p57_p0 = scmp.ge.s32.totalorder %s55_s13, 2  ;;  %s911_s28 = sshll.u32 %s1370_s25, 9 }
  0x68   : > { %s1847_s0 = sld [smem:[#allocation23_spill]]  ;;  %s318_s17 = scalar_lea.vmem [#allocation2], %s881_s9 }
  0x69   : > { %s1873_s13 = smov (%p57_p0, %s55_s13), 0  ;;  %s328_s18 = sshll.u32 %s318_s17, 4  ;;  %s1601_s18 = int_to_ptr.vmem [resolvable:$true] %s328_s18 }
  0x6a   : > { %s59_s12 = ssub.s32 %s1370_s25, %s1873_s13  ;;  %p1607_p10 = pnand %p1032_p4, %p1466_p5 }
  0x6b   : > { %p64_p1 = scmp.eq.s32.totalorder %s59_s12, 0  ;;  %s1849_s6 = sadd.s32 1, %s1362_s23 }
  0x6c   : > { %s1848_s15 = scalar_select %p1607_p10, 1, 0 }
  0x6d   : > { %s1615_s8 = scalar_select %p64_p1, %s1362_s23, %s1849_s6  }
  0x6e   : > { %s1597_s16 = scalar_lea.hbm %s1847_s0, %s911_s28  ;;  %s315_s28 = scalar_lea.sflag [#allocation3], %s1587_s29 }
  0x6f   : > { %s1186_s11 = scalar_lea.hbm %s1597_s16, 512  ;;  %p1622_p13 = pneg %p1607_p10 }
  0x70   : > { %p1187_p11 = scmp.ne.s32.totalorder %s1597_s16, %s1186_s11  ;;  %s1191_s17 = scalar_lea.hbm %s1847_s0, 1024 }
  0x71   : > { %p1192_p6 = scmp.lt.u32.totalorder %s1597_s16, %s1847_s0  ;;  %p1193_p3 = scmp.lt.u32.totalorder %s1191_s17, %s1186_s11 }
  0x72   : > { %p1189_p2 = pnand %p1622_p13, %p1187_p11  ;;  %p1195_p8 = scmp.lt.u32.totalorder %s1186_s11, %s1597_s16 }
  0x73   : > { %p1194_p7 = por %p1193_p3, %p1192_p6 }
  0x74   : > { %p1190_p5 = pneg %p1189_p2 }
  0x75   : > { %p1196_p9 = por %p1195_p8, %p1194_p7 }
  0x77   : > { %p1197_p4 = pnand %p1196_p9, %p1190_p5 }
  0x79   : > { %1200 = shalt.err (!%p1197_p4)
}
  0x7a   : > { %s1201_s6 = scalar_lea.vmem %s1601_s18, 512  ;;  %s1381_s30 = smov [#allocation2]  }
  0x7b   : > { %p1202_p0 = scmp.ne.s32.totalorder %s1601_s18, %s1201_s6  ;;  %s1206_s14 = sshll.u32 %s1381_s30, 4  ;;  %s1207_s14 = int_to_ptr.vmem [resolvable:$false] %s1206_s14 }
  0x7c   : > { %s1208_s21 = scalar_lea.vmem %s1207_s14, 1024  ;;  %p1209_p2 = scmp.lt.s32.totalorder %s1601_s18, %s1207_s14 }
  0x7d   : > { %p1204_p1 = pnand %p1202_p0, %p1622_p13  ;;  %p1210_p12 = scmp.lt.s32.totalorder %s1208_s21, %s1201_s6 }
  0x7f   : > { %p1205_p11 = pneg %p1204_p1  ;;  %p1211_p6 = por %p1210_p12, %p1209_p2 }
  0x81   : > { %p1212_p3 = pnand %p1211_p6, %p1205_p11 }
  0x83   : > { %1215 = shalt.err (!%p1212_p3)
}
  0x84   : > { %1018 = dma.hbm_to_vmem [thread:$0]  (!%p1607_p10), %s1597_s16, 512, %s1601_s18, %s315_s28, %s1379_s19, %s1379_s19, %s1380_s20  }
  0x85   : > { %s884_s11 = sshll.u32 %s1370_s25, 4  ;;  %s341_s17 = scalar_lea.vmem [#allocation5], %s1587_s29 }
  0x86   : > { %s349_s12 = sshll.u32 %s341_s17, 4  ;;  %s1655_s14 = scalar_lea.hbm %s1816_s1, %s884_s11  ;;  %s350_s12 = int_to_ptr.vmem [resolvable:$true] %s349_s12 }
  0x87   : > { %s1851_s21 = sand.u32 1, %s1374_s26   ;;  %s1216_s2 = scalar_lea.hbm %s1655_s14, 16 }
  0x88   : > { %s339_s0 = scalar_lea.sflag [#allocation6], %s1851_s21  ;;  %p1217_p12 = scmp.ne.s32.totalorder %s1655_s14, %s1216_s2 }
  0x89   : > { %s1221_s16 = scalar_lea.hbm %s1816_s1, 32  ;;  %p1222_p8 = scmp.lt.u32.totalorder %s1655_s14, %s1816_s1 }
  0x8a   : > { %p1219_p5 = pnand %p1217_p12, %p1622_p13  ;;  %p1223_p9 = scmp.lt.u32.totalorder %s1221_s16, %s1216_s2 }
  0x8b   : > { %p1225_p0 = scmp.lt.u32.totalorder %s1216_s2, %s1655_s14 }
  0x8c   : > { %p1220_p7 = pneg %p1219_p5  ;;  %p1224_p4 = por %p1223_p9, %p1222_p8 }
  0x8e   : > { %p1226_p1 = por %p1225_p0, %p1224_p4 }
  0x90   : > { %p1227_p11 = pnand %p1226_p1, %p1220_p7 }
  0x92   : > { %1230 = shalt.err (!%p1227_p11)
}
  0x93   : > { %s1231_s11 = scalar_lea.vmem %s350_s12, 16  ;;  %s1382_s17 = smov [#allocation5]  }
  0x94   : > { %p1232_p2 = scmp.ne.s32.totalorder %s350_s12, %s1231_s11  ;;  %s1236_s6 = sshll.u32 %s1382_s17, 4  ;;  %s1237_s6 = int_to_ptr.vmem [resolvable:$false] %s1236_s6 }
  0x95   : > { %s1238_s30 = scalar_lea.vmem %s1237_s6, 32  ;;  %p1239_p12 = scmp.lt.s32.totalorder %s350_s12, %s1237_s6 }
  0x96   : > { %p1234_p6 = pnand %p1232_p2, %p1622_p13  ;;  %p1240_p5 = scmp.lt.s32.totalorder %s1238_s30, %s1231_s11 }
  0x98   : > { %p1235_p3 = pneg %p1234_p6  ;;  %p1241_p10 = por %p1240_p5, %p1239_p12 }
  0x9a   : > { %p1242_p8 = pnand %p1241_p10, %p1235_p3 }
  0x9c   : > { %1245 = shalt.err (!%p1242_p8)
}
  0x9d   : > { %p1852_p9 = scmp.ne.s32.totalorder %s1848_s15, 0  ;;  %s885_s2 = sshll.u32 %s1587_s29, 6 }
  0x9e   : > { %s912_s21 = sshll.u32 %s1370_s25, 10  ;;  %s360_s18 = scalar_lea.vmem [#allocation11], %s885_s2 }
  0x9f   : > { %1021 = dma.hbm_to_vmem [thread:$0]  (!%p1852_p9), %s1655_s14, 16, %s350_s12, %s339_s0  }
  0xa0   : > { %s1681_s16 = scalar_lea.hbm %s1820_s5, %s912_s21  ;;  %s370_s28 = sshll.u32 %s360_s18, 4  ;;  %s1683_s28 = int_to_ptr.vmem [resolvable:$true] %s370_s28 }
  0xa1   : > { %s357_s11 = scalar_lea.sflag [#allocation12], %s1587_s29  ;;  %s1246_s17 = scalar_lea.hbm %s1681_s16, 1024 }
  0xa2   : > { %p1247_p10 = scmp.ne.s32.totalorder %s1681_s16, %s1246_s17  ;;  %s1251_s14 = scalar_lea.hbm %s1820_s5, 2048 }
  0xa3   : > { %p1252_p0 = scmp.lt.u32.totalorder %s1681_s16, %s1820_s5  ;;  %p1253_p1 = scmp.lt.u32.totalorder %s1251_s14, %s1246_s17 }
  0xa4   : > { %p1249_p7 = pnand %p1247_p10, %p1622_p13  ;;  %p1255_p2 = scmp.lt.u32.totalorder %s1246_s17, %s1681_s16 }
  0xa5   : > { %p1254_p11 = por %p1253_p1, %p1252_p0 }
  0xa6   : > { %p1250_p4 = pneg %p1249_p7 }
  0xa7   : > { %p1256_p6 = por %p1255_p2, %p1254_p11 }
  0xa9   : > { %p1257_p3 = pnand %p1256_p6, %p1250_p4 }
  0xab   : > { %1260 = shalt.err (!%p1257_p3)
}
  0xac   : > { %s1261_s2 = scalar_lea.vmem %s1683_s28, 1024  ;;  %s1383_s21 = smov [#allocation11]  }
  0xad   : > { %p1262_p12 = scmp.ne.s32.totalorder %s1683_s28, %s1261_s2  ;;  %s1266_s19 = sshll.u32 %s1383_s21, 4  ;;  %s1267_s19 = int_to_ptr.vmem [resolvable:$false] %s1266_s19 }
  0xae   : > { %s1268_s20 = scalar_lea.vmem %s1267_s19, 2048  ;;  %p1269_p10 = scmp.lt.s32.totalorder %s1683_s28, %s1267_s19 }
  0xaf   : > { %p1264_p5 = pnand %p1262_p12, %p1622_p13  ;;  %p1270_p7 = scmp.lt.s32.totalorder %s1268_s20, %s1261_s2 }
  0xb1   : > { %p1265_p8 = pneg %p1264_p5  ;;  %p1271_p0 = por %p1270_p7, %p1269_p10 }
  0xb3   : > { %p1272_p1 = pnand %p1271_p0, %p1265_p8 }
  0xb5   : > { %1275 = shalt.err (!%p1272_p1)
}
  0xb6   : > { %s1384_s18 = smov 128   ;;  %s1385_s17 = smov 8  }
  0xb7   : > { %1024 = dma.hbm_to_vmem [thread:$0]  (!%p1852_p9), %s1681_s16, 1024, %s1683_s28, %s357_s11, %s1384_s18, %s1384_s18, %s1385_s17  }
  0xb8   : > { %p1853_p13 = scmp.ne.s32.totalorder %s1843_s10, 0 }
  0xb9   : > { %s1712_s9 = sand.u32 (!%p1853_p13), 1, %s1358_s22   ;;  %p1854_p4 = scmp.ne.s32.totalorder (!%p1853_p13), %s1838_s7, 0 }
  0xba   : > { %382 = sbr.rel (%p1853_p13) target bundleno = 475 (0x1db), region = 44  ;;  %s889_s0 = sshll.u32 (!%p1853_p13), %s1712_s9, 5 }
  0xbb   : > { %s385_s12 = scalar_lea.sflag (!%p1853_p13), [#allocation3], %s1712_s9  ;;  %s1716_s14 = scalar_lea.vmem (!%p1853_p13), [#allocation2], %s889_s0 }
  0xc1   : > { %1329 = dma.done.wait (%p1854_p4), %s385_s12, 512  }
  0xc2   : > { %1331 = vsyncadd (%p1854_p4), %s385_s12, 4294966784  ;;  %s393_s10 = sand.u32 1, %s1455_s27   ;;  %s396_s15 = scalar_lea.vmem [#allocation5], %s1712_s9 }
  0xc3   : > { %s394_s29 = scalar_lea.sflag [#allocation6], %s393_s10 }
  0xc4   : > { %1333 = dma.done.wait (%p1854_p4), %s394_s29, 16  }
  0xc5   : > { %1335 = vsyncadd (%p1854_p4), %s394_s29, 4294967280  ;;  %p1855_p9 = scmp.eq.s32.totalorder %s1455_s27, 0 }
  0xc7   : > { %1337 = dma.done.wait (%p1855_p9), [#allocation6], 1024   ;;  %p1856_p11 = pmov %p1855_p9 }
  0xc8   : > { %p1857_p2 = pmov %p1855_p9 }
  0xc9   : > { %1339 = vsyncadd (%p1856_p11), [#allocation6], 4294966272 }
  0xca   : > { %1341 = dma.done.wait (%p1857_p2), [#allocation9], 32   ;;  %p1858_p6 = pmov %p1857_p2 }
  0xcb   : > { %s893_s16 = sshll.u32 %s1712_s9, 6  ;;  %s414_s28 = scalar_lea.sflag [#allocation12], %s1712_s9 }
  0xcc   : > { %1343 = vsyncadd (%p1858_p6), [#allocation9], 4294967264  ;;  %s1740_s11 = scalar_lea.vmem [#allocation11], %s893_s16 }
  0xcd   : > { %1345 = dma.done.wait (%p1854_p4), %s414_s28, 1024  }
  0xce   : > { %1347 = vsyncadd (%p1854_p4), %s414_s28, 4294966272  ;;  %v1094_v0 = vld [vmem:[#allocation7] sm:$0xff]   ;;  %v1095_v1 = vld [vmem:[#allocation7 + $0x8] sm:$0xff]   ;;  %s913_s27 = sshll.u32 %s1366_s24, 10  ;;  %s454_s7 = scalar_lea.vmem [#allocation13], %s893_s16 }
  0xcf   : > { %945 = vmatprep.subr.bf16.mxu0 %v1094_v0  ;;  %969 = vmatprep.subr.bf16.mxu1 %v1094_v0  ;;  %v1096_v2 = vld [vmem:[#allocation7 + $0x10] sm:$0xff]   ;;  %v1097_v3 = vld [vmem:[#allocation7 + $0x18] sm:$0xff]   ;;  %v1098_v14 = vld [vmem:[#allocation7 + $0x20] sm:$0xff]   ;;  %s695_s6 = sshll.u32 %s454_s7, 4  ;;  %s1859_s30 = sld [smem:[#allocation21_spill]]  ;;  %s1766_s6 = int_to_ptr.vmem [resolvable:$true] %s695_s6 }
  0xd0   : > { %946 = vmatpush3.bf16.msra.mxu0 %v1094_v0  ;;  %977 = vmatpush3.bf16.msra.mxu1 %v1094_v0  ;;  %v915_v4 = vld [vmem:[%s1716_s14] sm:$0xff]   ;;  %v931_v6 = vld [vmem:[%s1716_s14 + $0x10] sm:$0xff]   ;;  %v930_v19 = vld [vmem:[%s1716_s14 + $0x8] sm:$0xff]   ;;  %s1860_s21 = sld [smem:[#allocation25_spill]]  ;;  %s679_s18 = scalar_lea.sflag [#allocation4], %s1712_s9 }
  0xd1   : > { %947 = vmatprep.subr.bf16.mxu0 %v1095_v1  ;;  %970 = vmatprep.subr.bf16.mxu1 %v1095_v1  ;;  %v895_v5 = vld [vmem:[%s396_s15] ss:$0 sm:$0xff]  ;;  %v916_v7 = vunpack.c.l.bf16 %v915_v4  ;;  %v917_v8 = vunpack.c.h.bf16 %v915_v4  ;;  %v924_v9 = vunpack.c.l.bf16 %v931_v6  ;;  %v925_v10 = vunpack.c.h.bf16 %v931_v6  ;;  %v1099_v18 = vld [vmem:[#allocation7 + $0x28] sm:$0xff]   ;;  %v932_v20 = vld [vmem:[%s1716_s14 + $0x18] sm:$0xff]   ;;  %s1276_s17 = scalar_lea.vmem %s1766_s6, 1024  ;;  %s1386_s0 = smov [#allocation13]  }
  0xd2   : > { %v1100_v21 = vld [vmem:[#allocation7 + $0x30] sm:$0xff]   ;;  %v920_v22 = vunpack.c.l.bf16 %v930_v19  ;;  %v921_v23 = vunpack.c.h.bf16 %v930_v19  ;;  %v928_v24 = vunpack.c.l.bf16 %v932_v20  ;;  %v929_v25 = vunpack.c.h.bf16 %v932_v20  ;;  %v1101_v26 = vld [vmem:[#allocation7 + $0x38] sm:$0xff]   ;;  %v904_v33 = vld [vmem:[#allocation8] ss:$0 sm:$0xff]  ;;  %p1277_p3 = scmp.ne.s32.totalorder %s1766_s6, %s1276_s17  ;;  %s1280_s12 = sshll.u32 %s1386_s0, 4  ;;  %s1281_s12 = int_to_ptr.vmem [resolvable:$false] %s1280_s12 }
  0xd3   : > { %v483_v11 = vmul.f32 %v916_v7, %v895_v5  ;;  %v484_v12 = vmul.f32 %v917_v8, %v895_v5  ;;  %v487_v13 = vmul.f32 %v924_v9, %v895_v5  ;;  %v488_v15 = vmul.f32 %v925_v10, %v895_v5  ;;  %v905_v35 = vld [vmem:[#allocation10] ss:$0 sm:$0xff]  ;;  %v656_v41 = vld [vmem:[%s1740_s11 + $0x10] sm:$0xff]  ;;  %v654_v49 = vld [vmem:[%s1740_s11] sm:$0xff]  ;;  %s1282_s14 = scalar_lea.vmem %s1281_s12, 2048  ;;  %p1283_p10 = scmp.lt.s32.totalorder %s1766_s6, %s1281_s12 }
  0xd4   : > { %948 = vmatpush3.bf16.msra.mxu0 %v1095_v1  ;;  %978 = vmatpush3.bf16.msra.mxu1 %v1095_v1  ;;  %v485_v27 = vmul.f32 %v920_v22, %v895_v5  ;;  %v486_v28 = vmul.f32 %v921_v23, %v895_v5  ;;  %v489_v29 = vmul.f32 %v928_v24, %v895_v5  ;;  %v660_v42 = vld [vmem:[%s1740_s11 + $0x30] sm:$0xff]  ;;  %v658_v50 = vld [vmem:[%s1740_s11 + $0x20] sm:$0xff]  ;;  %v657_v57 = vld [vmem:[%s1740_s11 + $0x18] sm:$0xff]  ;;  %p1284_p7 = scmp.lt.s32.totalorder %s1282_s14, %s1276_s17 }
  0xd5   : > { %949 = vmatprep.subr.bf16.mxu0 %v1096_v2  ;;  %971 = vmatprep.subr.bf16.mxu1 %v1096_v2  ;;  %v491_v16 = vpack.c.bf16 %v484_v12, %v483_v11  ;;  %v493_v17 = vpack.c.bf16 %v488_v15, %v487_v13  ;;  %v490_v30 = vmul.f32 %v929_v25, %v895_v5  ;;  %v661_v58 = vld [vmem:[%s1740_s11 + $0x38] sm:$0xff]  ;;  %v655_v1 = vld [vmem:[%s1740_s11 + $0x8] sm:$0xff]  ;;  %p1862_p12 = scmp.ne.s32.totalorder %s1859_s30, 0 }
  0xd6   : > { %v492_v31 = vpack.c.bf16 %v486_v28, %v485_v27  ;;  %s1861_s19 = smov %s1860_s21  ;;  %s1764_s20 = scalar_lea.hbm %s1860_s21, %s913_s27 }
  0xd7   : > { %961 = vmatprep.mubr.bf16.mxu0 %v491_v16  ;;  %965 = vmatprep.mubr.bf16.mxu1 %v493_v17  ;;  %v494_v32 = vpack.c.bf16 %v490_v30, %v489_v29  ;;  %p1278_p5 = pnand %p1277_p3, %p1862_p12  ;;  %p1285_p0 = por %p1284_p7, %p1283_p10 }
  0xd8   : > { %950 = vmatpush3.bf16.msra.mxu0 %v1096_v2  ;;  %979 = vmatpush3.bf16.msra.mxu1 %v1096_v2  ;;  %v659_v2 = vld [vmem:[%s1740_s11 + $0x28] sm:$0xff] }
  0xd9   : > { %951 = vmatprep.subr.bf16.mxu0 %v1097_v3  ;;  %972 = vmatprep.subr.bf16.mxu1 %v1097_v3  ;;  %p1279_p8 = pneg %p1278_p5 }
  0xdb   : > { %p1286_p1 = pnand %p1285_p0, %p1279_p8 }
  0xdc   : > { %952 = vmatpush3.bf16.msra.mxu0 %v1097_v3  ;;  %980 = vmatpush3.bf16.msra.mxu1 %v1097_v3 }
  0xdd   : > { %953 = vmatprep.subr.bf16.mxu0 %v1098_v14  ;;  %973 = vmatprep.subr.bf16.mxu1 %v1098_v14 }
  0xe0   : > { %954 = vmatpush3.bf16.msra.mxu0 %v1098_v14  ;;  %981 = vmatpush3.bf16.msra.mxu1 %v1098_v14 }
  0xe1   : > { %955 = vmatprep.subr.bf16.mxu0 %v1099_v18  ;;  %974 = vmatprep.subr.bf16.mxu1 %v1099_v18 }
  0xe4   : > { %956 = vmatpush3.bf16.msra.mxu0 %v1099_v18  ;;  %982 = vmatpush3.bf16.msra.mxu1 %v1099_v18 }
  0xe5   : > { %957 = vmatprep.subr.bf16.mxu0 %v1100_v21  ;;  %975 = vmatprep.subr.bf16.mxu1 %v1100_v21 }
  0xe8   : > { %958 = vmatpush3.bf16.msra.mxu0 %v1100_v21  ;;  %983 = vmatpush3.bf16.msra.mxu1 %v1100_v21 }
  0xe9   : > { %959 = vmatprep.subr.bf16.mxu0 %v1101_v26  ;;  %976 = vmatprep.subr.bf16.mxu1 %v1101_v26 }
  0xec   : > { %960 = vmatpush3.bf16.msra.mxu0 %v1101_v26  ;;  %984 = vmatpush3.bf16.msra.mxu1 %v1101_v26 }
  0xef   : > { %962 = vmatmul.mubr.bf16.vlgmr.msra.gmra.mrb[0].mxu0 %v492_v31  ;;  %966 = vmatmul.mubr.bf16.vlgmr.msra.gmra.mrb[0].mxu1 %v494_v32 }
 0x1c2   : > { %v963_v34 = vpop.f32.mrb[0].mxu0  ;;  %v967_v36 = vpop.f32.mrb[0].mxu1 }
 0x1c3   : > { %v633_v37 = vmul.f32 %v963_v34, %v904_v33  ;;  %v637_v38 = vmul.f32 %v967_v36, %v904_v33  ;;  %v593_v39 = vpop.f32.mrb[1].mxu0  ;;  %v609_v40 = vpop.f32.mrb[1].mxu1 }
 0x1c4   : > { %v631_v43 = vmul.f32 %v904_v33, %v593_v39  ;;  %v635_v44 = vmul.f32 %v904_v33, %v609_v40  ;;  %v964_v45 = vpop.f32.mrb[2].mxu0  ;;  %v968_v46 = vpop.f32.mrb[2].mxu1 }
 0x1c5   : > { %v648_v47 = vadd.f32 %v905_v35, %v633_v37  ;;  %v652_v48 = vadd.f32 %v905_v35, %v637_v38  ;;  %v634_v51 = vmul.f32 %v964_v45, %v904_v33  ;;  %v638_v52 = vmul.f32 %v968_v46, %v904_v33  ;;  %v596_v53 = vpop.f32.mrb[3].mxu0  ;;  %v612_v54 = vpop.f32.mrb[3].mxu1 }
 0x1c6   : > { %v646_v55 = vadd.f32 %v905_v35, %v631_v43  ;;  %v650_v56 = vadd.f32 %v905_v35, %v635_v44  ;;  %v632_v59 = vmul.f32 %v904_v33, %v596_v53  ;;  %v636_v60 = vmul.f32 %v904_v33, %v612_v54 }
 0x1c7   : > { %v664_v61 = vadd.f32 %v656_v41, %v648_v47  ;;  %v668_v62 = vadd.f32 %v660_v42, %v652_v48  ;;  %v649_v63 = vadd.f32 %v905_v35, %v634_v51  ;;  %v653_v0 = vadd.f32 %v905_v35, %v638_v52 }
 0x1c8   : > { %v662_v3 = vadd.f32 %v654_v49, %v646_v55  ;;  %v666_v4 = vadd.f32 %v658_v50, %v650_v56  ;;  %v647_v5 = vadd.f32 %v905_v35, %v632_v59  ;;  %v651_v6 = vadd.f32 %v905_v35, %v636_v60 }
 0x1c9   : > { %672 = vst [vmem:[%s454_s7 + $0x10] sm:$0xff] %v664_v61  ;;  %676 = vst [vmem:[%s454_s7 + $0x30] sm:$0xff] %v668_v62  ;;  %v665_v7 = vadd.f32 %v657_v57, %v649_v63  ;;  %v669_v8 = vadd.f32 %v661_v58, %v653_v0 }
 0x1ca   : > { %670 = vst [vmem:[%s454_s7] sm:$0xff] %v662_v3  ;;  %674 = vst [vmem:[%s454_s7 + $0x20] sm:$0xff] %v666_v4  ;;  %v663_v9 = vadd.f32 %v655_v1, %v647_v5  ;;  %v667_v10 = vadd.f32 %v659_v2, %v651_v6 }
 0x1cb   : > { %673 = vst [vmem:[%s454_s7 + $0x18] sm:$0xff] %v665_v7  ;;  %677 = vst [vmem:[%s454_s7 + $0x38] sm:$0xff] %v669_v8 }
 0x1cc   : > { %671 = vst [vmem:[%s454_s7 + $0x8] sm:$0xff] %v663_v9  ;;  %675 = vst [vmem:[%s454_s7 + $0x28] sm:$0xff] %v667_v10 }
 0x1cd   : > { %1289 = shalt.err (!%p1286_p1)
}
 0x1ce   : > { %s1290_s10 = scalar_lea.hbm %s1764_s20, 1024  ;;  %s1294_s16 = scalar_lea.hbm %s1861_s19, 2048 }
 0x1cf   : > { %p1291_p13 = scmp.ne.s32.totalorder %s1764_s20, %s1290_s10  ;;  %p1295_p11 = scmp.lt.u32.totalorder %s1764_s20, %s1861_s19 }
 0x1d0   : > { %p1296_p2 = scmp.lt.u32.totalorder %s1294_s16, %s1290_s10  ;;  %p1298_p3 = scmp.lt.u32.totalorder %s1290_s10, %s1764_s20 }
 0x1d1   : > { %p1292_p4 = pnand %p1291_p13, %p1862_p12 }
 0x1d2   : > { %p1297_p6 = por %p1296_p2, %p1295_p11 }
 0x1d3   : > { %p1293_p9 = pneg %p1292_p4 }
 0x1d4   : > { %p1299_p5 = por %p1298_p3, %p1297_p6 }
 0x1d6   : > { %p1300_p8 = pnand %p1299_p5, %p1293_p9 }
 0x1d8   : > { %1303 = shalt.err (!%p1300_p8)
}
 0x1d9   : > { %s1387_s27 = smov 128   ;;  %s1388_s7 = smov 8  }
 0x1da   : > { %1003 = dma.vmem_to_hbm [thread:$0]  (%p1862_p12), %s1766_s6, 1024, %s1764_s20, %s679_s18, %s1387_s27, %s1387_s27, %s1388_s7  }
 0x1db PF: > { %s1863_s24 = sld [smem:[#allocation20_spill]]  ;;  %s1864_s2 = sld [smem:[#allocation22_spill]] }
 0x1dc   : > { %p1866_p7 = scmp.ge.s32.totalorder %s1374_s26, 2 }
 0x1e1   : > { %s710_s21 = sand.u32 1, %s1863_s24   ;;  %p1865_p10 = scmp.ne.s32.totalorder %s1864_s2, 0 }
 0x1e2   : > { %s711_s17 = scalar_lea.sflag [#allocation4], %s710_s21 }
 0x1e3   : > { %p1026_p0 = pnand %p1866_p7, %p1865_p10 }
 0x1e5   : > { %1349 = dma.done.wait (!%p1026_p0), %s711_s17, 1024  }
 0x1e6   : > { %1351 = vsyncadd (!%p1026_p0), %s711_s17, 4294966272  ;;  %s29_s26 = sadd.s32 1, %s1374_s26   ;;  %s1867_s21 = smov %s1358_s22 }
 0x1e7   : > { %p26_p1 = scmp.ge.s32.totalorder %s29_s26, 4   ;;  %s1868_s22 = smov %s1362_s23 }
 0x1e8   : > { %s1869_s23 = smov %s1615_s8  ;;  %s1870_s24 = smov %s1370_s25 }
 0x1e9   : > { %s1871_s25 = smov %s1873_s13  ;;  %28 = sbr.rel (!%p26_p1) target bundleno = 15 (0xf), region = 130 }
 0x1f0   :  { %716 = vsyncpa [#allocation3], 1 }
 0x1f1   :  { %718 = vsyncpa [#allocation3 + $0x1], 1 }
 0x1f2   :  { %719 = vsyncpa [#allocation6], 1 }
 0x1f3   :  { %721 = vsyncpa [#allocation6 + $0x1], 1 }
 0x1f4   :  { %722 = vsyncpa [#allocation9], 1 }
 0x1f5   :  { %723 = vsyncpa [#allocation12], 1 }
 0x1f6   :  { %725 = vsyncpa [#allocation12 + $0x1], 1 }
 0x1f7   :  { %726 = vsyncpa [#allocation4], 1 }
 0x1f8   :  { %728 = vsyncpa [#allocation4 + $0x1], 1 }

// kernel: efficientnet_baseline_forward.11
= control target key start
LH: loop header
LB: loop body
LE: loop exit
PB: predicated region body
PF: predicated region fallthrough
CT: control target
= control target key end

     0   :  { %11 = vsyncpa [#allocation3], 0  ;;  %s1619_s0 = inlined_call_operand.hbm [shape: bf16[2,64,32], index: 0, kind: input, shape index: {}]   ;;  %s1620_s1 = inlined_call_operand.hbm [shape: bf16[32,64], index: 1, kind: input, shape index: {}]   ;;  %s1621_s2 = inlined_call_operand.hbm [shape: f32[1,64], index: 2, kind: input, shape index: {}]   ;;  %s1622_s3 = inlined_call_operand.hbm [shape: f32[1,64], index: 3, kind: input, shape index: {}]   ;;  %s1623_s4 = inlined_call_operand.hbm [shape: bf16[64,128], index: 4, kind: input, shape index: {}]   ;;  %s1624_s5 = inlined_call_operand.hbm [shape: f32[1,128], index: 5, kind: input, shape index: {}]   ;;  %s1625_s6 = inlined_call_operand.hbm [shape: f32[2,1,128], index: 6, kind: output, shape index: {}]  }
   0x1   :  { %13 = vsyncpa [#allocation3 + $0x1], 0 }
   0x2   :  { %14 = vsyncpa [#allocation6], 0 }
   0x3   :  { %15 = vsyncpa [#allocation9], 0 }
   0x4   :  { %16 = vsyncpa [#allocation12], 0 }
   0x5   :  { %17 = vsyncpa [#allocation4], 0 }
   0x6   :  { %19 = vsyncpa [#allocation4 + $0x1], 0  ;;  %s1295_s21 = smov 0   ;;  %s1297_s22 = smov 0  }
   0x7   :  { %s1299_s23 = smov 0   ;;  %s1301_s24 = smov 0  }
   0x8 LB: > { %s1249_s25 = smov [#allocation5]   ;;  %s1316_s27 = sadd.s32 4294967295, %s1247_s24   ;;  %s1247_s24 = sphi %s1301_s24, %s1650_s24   ;;  %s1243_s23 = sphi %s1299_s23, %s1649_s23   ;;  %s1239_s22 = sphi %s1297_s22, %s1648_s22   ;;  %s1235_s21 = sphi %s1295_s21, %s1647_s21  }
   0x9   : > { %s199_s26 = sshll.u32 %s1249_s25, 4  ;;  %p775_p0 = scmp.ge.s32.totalorder %s1247_s24, 1  ;;  %s1321_s26 = int_to_ptr.vmem [resolvable:$true] %s199_s26 }
   0xa   : > { %p1626_p1 = scmp.eq.s32.totalorder %s1316_s27, 0  ;;  %p187_p2 = scmp.lt.s32.totalorder %s1247_s24, 3 }
   0xb   : > { %s1250_s29 = smov [#allocation8]   ;;  %s1251_s8 = smov [#allocation7]  }
   0xc   : > { %p1323_p3 = pnand %p775_p0, %p187_p2  ;;  %s224_s30 = sshll.u32 %s1250_s29, 4  ;;  %s1336_s30 = int_to_ptr.vmem [resolvable:$true] %s224_s30 }
   0xd   : > { %s213_s9 = sshll.u32 %s1251_s8, 4  ;;  %s999_s12 = scalar_lea.hbm %s1620_s1, 256  ;;  %s1338_s9 = int_to_ptr.vmem [resolvable:$true] %s213_s9 }
   0xe   : > { %s1629_s28 = scalar_select %p1323_p3, 1, 0 }
   0xf   : > { %p880_p5 = pneg %p1323_p3  ;;  %p1000_p7 = scmp.ne.s32.totalorder %s1620_s1, %s999_s12 }
  0x10   : > { %p1006_p11 = scmp.lt.u32.totalorder %s999_s12, %s1620_s1 }
  0x11   : > { %p1332_p6 = pnand %p880_p5, %p1626_p1 }
  0x13   : > { %p1348_p8 = pneg %p1332_p6 }
  0x15   : > { %p1002_p9 = pnand %p1348_p8, %p1000_p7 }
  0x17   : > { %p1003_p10 = pneg %p1002_p9 }
  0x19   : > { %p1008_p12 = pnand %p1006_p11, %p1003_p10 }
  0x1b   : > { %1011 = shalt.err (!%p1008_p12)
}
  0x1c   : > { %s1012_s18 = scalar_lea.vmem %s1321_s26, 256  ;;  %p1020_p5 = scmp.lt.s32.totalorder %s1321_s26, %s1321_s26 }
  0x1d   : > { %p1013_p13 = scmp.ne.s32.totalorder %s1321_s26, %s1012_s18  ;;  %p1021_p4 = scmp.lt.s32.totalorder %s1012_s18, %s1012_s18 }
  0x1f   : > { %p1015_p0 = pnand %p1013_p13, %p1348_p8  ;;  %p1022_p7 = por %p1021_p4, %p1020_p5 }
  0x21   : > { %p1016_p2 = pneg %p1015_p0 }
  0x23   : > { %p1023_p9 = pnand %p1022_p7, %p1016_p2 }
  0x25   : > { %1026 = shalt.err (!%p1023_p9)
}
  0x26   : > { %s1252_s19 = smov 64   ;;  %s1253_s20 = smov 4  }
  0x27   : > { %883 = dma.hbm_to_vmem [thread:$0]  (!%p1332_p6), %s1620_s1, 256, %s1321_s26, [#allocation6], %s1252_s19, %s1252_s19, %s1253_s20  }
  0x28   : > { %s1027_s11 = scalar_lea.hbm %s1622_s3, 16 }
  0x29   : > { %p1028_p4 = scmp.ne.s32.totalorder %s1622_s3, %s1027_s11  ;;  %p1034_p12 = scmp.lt.u32.totalorder %s1027_s11, %s1622_s3 }
  0x2b   : > { %p1030_p10 = pnand %p1028_p4, %p1348_p8 }
  0x2d   : > { %p1031_p11 = pneg %p1030_p10 }
  0x2f   : > { %p1036_p13 = pnand %p1034_p12, %p1031_p11 }
  0x31   : > { %1039 = shalt.err (!%p1036_p13)
}
  0x32   : > { %s1040_s26 = scalar_lea.vmem %s1336_s30, 16  ;;  %s1047_s17 = scalar_lea.vmem %s1336_s30, 32 }
  0x33   : > { %p1041_p0 = scmp.ne.s32.totalorder %s1336_s30, %s1040_s26  ;;  %p1048_p7 = scmp.lt.s32.totalorder %s1336_s30, %s1336_s30 }
  0x34   : > { %p1049_p9 = scmp.lt.s32.totalorder %s1047_s17, %s1040_s26 }
  0x35   : > { %p1043_p2 = pnand %p1041_p0, %p1348_p8 }
  0x36   : > { %p1050_p4 = por %p1049_p9, %p1048_p7 }
  0x37   : > { %p1044_p5 = pneg %p1043_p2 }
  0x39   : > { %p1051_p10 = pnand %p1050_p4, %p1044_p5 }
  0x3b   : > { %1054 = shalt.err (!%p1051_p10)
}
  0x3c   : > { %889 = dma.hbm_to_vmem [thread:$0]  (!%p1332_p6), %s1622_s3, 16, %s1336_s30, [#allocation9]  }
  0x3d   : > { %s1055_s10 = scalar_lea.hbm %s1621_s2, 16 }
  0x3e   : > { %p1056_p11 = scmp.ne.s32.totalorder %s1621_s2, %s1055_s10  ;;  %p1062_p0 = scmp.lt.u32.totalorder %s1055_s10, %s1621_s2 }
  0x40   : > { %p1058_p12 = pnand %p1056_p11, %p1348_p8 }
  0x42   : > { %p1059_p13 = pneg %p1058_p12 }
  0x44   : > { %p1064_p2 = pnand %p1062_p0, %p1059_p13 }
  0x46   : > { %1067 = shalt.err (!%p1064_p2)
}
  0x47   : > { %s1068_s30 = scalar_lea.vmem %s1338_s9, 16  ;;  %s1075_s16 = scalar_lea.vmem %s1338_s9, 32 }
  0x48   : > { %p1069_p5 = scmp.ne.s32.totalorder %s1338_s9, %s1068_s30  ;;  %p1076_p4 = scmp.lt.s32.totalorder %s1338_s9, %s1338_s9 }
  0x49   : > { %p1077_p10 = scmp.lt.s32.totalorder %s1075_s16, %s1068_s30 }
  0x4a   : > { %p1071_p7 = pnand %p1069_p5, %p1348_p8 }
  0x4b   : > { %p1078_p11 = por %p1077_p10, %p1076_p4 }
  0x4c   : > { %p1072_p9 = pneg %p1071_p7 }
  0x4e   : > { %p1079_p12 = pnand %p1078_p11, %p1072_p9 }
  0x50   : > { %1082 = shalt.err (!%p1079_p12)
}
  0x51   : > { %886 = dma.hbm_to_vmem [thread:$0]  (!%p1332_p6), %s1621_s2, 16, %s1338_s9, [#allocation6]  }
  0x52   : > { %s1254_s18 = smov [#allocation10]   ;;  %s1255_s29 = smov [#allocation11]  }
  0x53   : > { %s234_s25 = sshll.u32 %s1254_s18, 4  ;;  %s248_s8 = sshll.u32 %s1255_s29, 4  ;;  %s235_s25 = int_to_ptr.vmem [resolvable:$true] %s234_s25  ;;  %s249_s8 = int_to_ptr.vmem [resolvable:$true] %s248_s8 }
  0x54   : > { %s1083_s12 = scalar_lea.hbm %s1623_s4, 512 }
  0x55   : > { %p1084_p13 = scmp.ne.s32.totalorder %s1623_s4, %s1083_s12  ;;  %p1090_p5 = scmp.lt.u32.totalorder %s1083_s12, %s1623_s4 }
  0x57   : > { %p1086_p0 = pnand %p1084_p13, %p1348_p8 }
  0x59   : > { %p1087_p2 = pneg %p1086_p0 }
  0x5b   : > { %p1092_p7 = pnand %p1090_p5, %p1087_p2 }
  0x5d   : > { %1095 = shalt.err (!%p1092_p7)
}
  0x5e   : > { %s1096_s9 = scalar_lea.vmem %s235_s25, 512  ;;  %p1104_p11 = scmp.lt.s32.totalorder %s235_s25, %s235_s25 }
  0x5f   : > { %p1097_p9 = scmp.ne.s32.totalorder %s235_s25, %s1096_s9  ;;  %p1105_p12 = scmp.lt.s32.totalorder %s1096_s9, %s1096_s9 }
  0x61   : > { %p1099_p4 = pnand %p1097_p9, %p1348_p8  ;;  %p1106_p1 = por %p1105_p12, %p1104_p11 }
  0x63   : > { %p1100_p10 = pneg %p1099_p4 }
  0x65   : > { %p1107_p3 = pnand %p1106_p1, %p1100_p10 }
  0x67   : > { %1110 = shalt.err (!%p1107_p3)
}
  0x68   : > { %892 = dma.hbm_to_vmem [thread:$0]  (!%p1332_p6), %s1623_s4, 512, %s235_s25, [#allocation9], %s1252_s19, %s1252_s19, %s1253_s20  }
  0x69   : > { %s1111_s10 = scalar_lea.hbm %s1624_s5, 16 }
  0x6a   : > { %p1112_p1 = scmp.ne.s32.totalorder %s1624_s5, %s1111_s10  ;;  %p1118_p0 = scmp.lt.u32.totalorder %s1111_s10, %s1624_s5 }
  0x6c   : > { %p1114_p3 = pnand %p1112_p1, %p1348_p8 }
  0x6e   : > { %p1115_p13 = pneg %p1114_p3 }
  0x70   : > { %p1120_p2 = pnand %p1118_p0, %p1115_p13 }
  0x72   : > { %1123 = shalt.err (!%p1120_p2)
}
  0x73   : > { %s1124_s30 = scalar_lea.vmem %s249_s8, 16  ;;  %s1131_s25 = scalar_lea.vmem %s249_s8, 32 }
  0x74   : > { %p1125_p5 = scmp.ne.s32.totalorder %s249_s8, %s1124_s30  ;;  %p1132_p4 = scmp.lt.s32.totalorder %s249_s8, %s249_s8 }
  0x75   : > { %p1133_p10 = scmp.lt.s32.totalorder %s1131_s25, %s1124_s30 }
  0x76   : > { %p1127_p7 = pnand %p1125_p5, %p1348_p8 }
  0x77   : > { %p1134_p11 = por %p1133_p10, %p1132_p4 }
  0x78   : > { %p1128_p9 = pneg %p1127_p7 }
  0x7a   : > { %p1135_p12 = pnand %p1134_p11, %p1128_p9 }
  0x7c   : > { %1138 = shalt.err (!%p1135_p12)
}
  0x7d   : > { %895 = dma.hbm_to_vmem [thread:$0]  (!%p1332_p6), %s1624_s5, 16, %s249_s8, [#allocation12]  }
  0x7e   : > { %s774_s15 = sadd.s32 4294967294, %s1247_s24   ;;  %s1461_s7 = sadd.s32 1, %s1247_s24  }
  0x7f   : > { %s32_s26 = sadd.s32 1, %s1243_s23  ;;  %s29_s17 = ssub.s32 %s1247_s24, %s1461_s7 }
  0x80   : > { %p39_p8 = scmp.ne.s32.totalorder %s1243_s23, %s1239_s22  ;;  %p30_p1 = scmp.eq.s32.totalorder %s29_s17, 0 }
  0x81   : > { %p40_p3 = scmp.eq.s32.totalorder %s1247_s24, 0  ;;  %p45_p13 = scmp.ne.s32.totalorder %s1239_s22, %s1235_s21 }
  0x82   : > { %p174_p0 = scmp.eq.s32.totalorder %s1316_s27, 1  ;;  %p1632_p5 = scmp.eq.s32.totalorder %s1316_s27, 0 }
  0x83   : > { %s1473_s18 = scalar_select %p30_p1, %s1243_s23, %s32_s26  }
  0x84   : > { %p41_p2 = por %p40_p3, %p39_p8  ;;  %p1477_p7 = por %p1632_p5, %p45_p13 }
  0x85   : > { %p1481_p6 = por %p174_p0, %p39_p8  ;;  %p180_p9 = scmp.eq.s32.totalorder %s774_s15, 1 }
  0x86   : > { %p909_p4 = scmp.lt.s32.totalorder %s1247_s24, 2  ;;  %s259_s10 = sand.u32 1, %s1243_s23  }
  0x87   : > { %s1634_s8 = scalar_select %p1481_p6, 1, 0 }
  0x88   : > { %p1487_p10 = por %p180_p9, %p45_p13  ;;  %s782_s12 = sshll.u32 %s259_s10, 5 }
  0x89   : > { %s820_s13 = sshll.u32 %s1247_s24, 9  ;;  %s263_s16 = scalar_lea.vmem [#allocation2], %s782_s12 }
  0x8a   : > { %s1635_s11 = scalar_select %p1487_p10, 1, 0 }
  0x8b   : > { %s1495_s25 = scalar_lea.hbm %s1619_s0, %s820_s13  ;;  %s270_s9 = sshll.u32 %s263_s16, 4  ;;  %s1501_s9 = int_to_ptr.vmem [resolvable:$true] %s270_s9 }
  0x8c   : > { %p1497_p11 = pnand %p909_p4, %p41_p2  ;;  %s1503_s26 = scalar_lea.sflag [#allocation3], %s259_s10 }
  0x8d   : > { %s1139_s17 = scalar_lea.hbm %s1495_s25, 512  ;;  %s1144_s14 = scalar_lea.hbm %s1619_s0, 1024 }
  0x8e   : > { %p1140_p12 = scmp.ne.s32.totalorder %s1495_s25, %s1139_s17  ;;  %p1141_p8 = pneg %p1497_p11 }
  0x8f   : > { %p1145_p13 = scmp.lt.u32.totalorder %s1495_s25, %s1619_s0  ;;  %p1146_p0 = scmp.lt.u32.totalorder %s1144_s14, %s1139_s17 }
  0x90   : > { %p1142_p1 = pnand %p1141_p8, %p1140_p12  ;;  %p1148_p5 = scmp.lt.u32.totalorder %s1139_s17, %s1495_s25 }
  0x91   : > { %p1147_p2 = por %p1146_p0, %p1145_p13 }
  0x92   : > { %p1143_p3 = pneg %p1142_p1 }
  0x93   : > { %p1149_p9 = por %p1148_p5, %p1147_p2 }
  0x95   : > { %p1150_p4 = pnand %p1149_p9, %p1143_p3 }
  0x97   : > { %1153 = shalt.err (!%p1150_p4)
}
  0x98   : > { %s1154_s10 = scalar_lea.vmem %s1501_s9, 512  ;;  %s1256_s12 = smov [#allocation2]  }
  0x99   : > { %p1155_p12 = scmp.ne.s32.totalorder %s1501_s9, %s1154_s10  ;;  %s1159_s13 = sshll.u32 %s1256_s12, 4  ;;  %s1160_s13 = int_to_ptr.vmem [resolvable:$false] %s1159_s13 }
  0x9a   : > { %s1161_s30 = scalar_lea.vmem %s1160_s13, 1024  ;;  %p1162_p6 = scmp.lt.s32.totalorder %s1501_s9, %s1160_s13 }
  0x9b   : > { %p1157_p1 = pnand %p1155_p12, %p1141_p8  ;;  %p1163_p13 = scmp.lt.s32.totalorder %s1161_s30, %s1154_s10 }
  0x9d   : > { %p1158_p10 = pneg %p1157_p1  ;;  %p1164_p0 = por %p1163_p13, %p1162_p6 }
  0x9f   : > { %p1165_p2 = pnand %p1164_p0, %p1158_p10 }
  0xa1   : > { %1168 = shalt.err (!%p1165_p2)
}
  0xa2   : > { %899 = dma.hbm_to_vmem [thread:$0]  (!%p1497_p11), %s1495_s25, 512, %s1501_s9, %s1503_s26, %s1252_s19, %s1252_s19, %s1253_s20  }
  0xa3   : > { %p1637_p8 = scmp.ne.s32.totalorder %s1629_s28, 0 }
  0xa4   : > { %s1537_s17 = sand.u32 (!%p1637_p8), 1, %s1239_s22  }
  0xa5   : > { %282 = sbr.rel (%p1637_p8) target bundleno = 698 (0x2ba), region = 44  ;;  %s786_s14 = sshll.u32 (!%p1637_p8), %s1537_s17, 5 }
  0xa6   : > { %s285_s16 = scalar_lea.sflag (!%p1637_p8), [#allocation3], %s1537_s17  ;;  %s288_s10 = scalar_lea.vmem (!%p1637_p8), [#allocation2], %s786_s14 }
  0xac   : > { %1214 = dma.done.wait (%p1477_p7), %s285_s16, 512  }
  0xad   : > { %1216 = vsyncadd (%p1477_p7), %s285_s16, 4294966784  ;;  %p1638_p6 = scmp.eq.s32.totalorder %s1316_s27, 0 }
  0xaf   : > { %1218 = dma.done.wait (%p1638_p6), [#allocation6], 272   ;;  %p1639_p10 = pmov %p1638_p6 }
  0xb0   : > { %p1640_p11 = pmov %p1638_p6 }
  0xb1   : > { %1220 = vsyncadd (%p1639_p10), [#allocation6], 4294967024 }
  0xb2   : > { %1222 = dma.done.wait (%p1640_p11), [#allocation9], 528   ;;  %p1641_p3 = pmov %p1638_p6 }
  0xb4   : > { %1224 = vsyncadd (%p1641_p3), [#allocation9], 4294966768  ;;  %p1642_p5 = pmov %p1641_p3 }
  0xb5   : > { %p1643_p9 = pmov %p1641_p3 }
  0xb6   : > { %1226 = dma.done.wait (%p1642_p5), [#allocation12], 16  }
  0xb7   : > { %1228 = vsyncadd (%p1643_p9), [#allocation12], 4294967280  ;;  %v957_v0 = vld [vmem:[#allocation5] sm:$0xff]   ;;  %v958_v1 = vld [vmem:[#allocation5 + $0x8] sm:$0xff]   ;;  %vm381_vm0 = vcmask 261120   ;;  %v1257_v7 = vmov 0.0  }
  0xb8   : > { %832 = vmatprep.subr.bf16.mxu0 %v957_v0  ;;  %v959_v2 = vld [vmem:[%s288_s10] sm:$0xff]   ;;  %v960_v3 = vld [vmem:[%s288_s10 + $0x8] sm:$0xff]   ;;  %v961_v4 = vld [vmem:[%s288_s10 + $0x10] sm:$0xff]   ;;  %844 = vmatprep.subr.bf16.mxu1 %v1257_v7  ;;  %vm1258_vm1 = vmmov 0   ;;  %vm545_vm2 = vcmask 523264   ;;  %s817_s28 = sshll.u32 %s1316_s27, 4 }
  0xb9   : > { %833 = vmatpush3.bf16.msra.mxu0 %v957_v0  ;;  %836 = vmatprep.mubr.msk.bf16.mxu0 %vm381_vm0, %v959_v2  ;;  %v962_v5 = vld [vmem:[%s288_s10 + $0x18] sm:$0xff]   ;;  %v965_v9 = vld [vmem:[#allocation10 + $0x10] sm:$0xff]   ;;  %v966_v10 = vld [vmem:[#allocation10 + $0x18] sm:$0xff]   ;;  %s335_s19 = scalar_lea.vmem [#allocation13], %s1537_s17  ;;  %s1575_s9 = scalar_lea.hbm %s1625_s6, %s817_s28 }
  0xba   : > { %834 = vmatprep.subr.bf16.mxu0 %v958_v1  ;;  %v963_v6 = vld [vmem:[#allocation10] sm:$0xff]   ;;  %v964_v8 = vld [vmem:[#allocation10 + $0x8] sm:$0xff]   ;;  %852 = vmatprep.mubr.msk.bf16.mxu1 %vm1258_vm1, %v1257_v7  ;;  %v802_v11 = vld [vmem:[#allocation7] ss:$0 sm:$0xff]  ;;  %s660_s20 = sshll.u32 %s335_s19, 4  ;;  %s648_s15 = scalar_lea.sflag [#allocation4], %s1537_s17  ;;  %s1577_s20 = int_to_ptr.vmem [resolvable:$true] %s660_s20 }
  0xbb   : > { %845 = vmatpush3.bf16.msra.mxu1 %v963_v6  ;;  %v803_v13 = vld [vmem:[#allocation8] ss:$0 sm:$0xff]  ;;  %s1169_s27 = scalar_lea.vmem %s1577_s20, 16  ;;  %p1644_p4 = scmp.ne.s32.totalorder %s1634_s8, 0 }
  0xbc   : > { %846 = vmatprep.subr.bf16.mxu1 %v1257_v7  ;;  %p1170_p7 = scmp.ne.s32.totalorder %s1577_s20, %s1169_s27  ;;  %s1259_s26 = smov [#allocation13]  }
  0xbd   : > { %835 = vmatpush3.bf16.msra.mxu0 %v958_v1  ;;  %s1173_s12 = sshll.u32 %s1259_s26, 4  ;;  %s1174_s12 = int_to_ptr.vmem [resolvable:$false] %s1173_s12 }
  0xbe   : > { %p1171_p12 = pnand %p1170_p7, %p1644_p4  ;;  %s1175_s13 = scalar_lea.vmem %s1174_s12, 32 }
  0xbf   : > { %847 = vmatpush3.bf16.msra.mxu1 %v964_v8  ;;  %p1176_p13 = scmp.lt.s32.totalorder %s1577_s20, %s1174_s12  ;;  %p1177_p0 = scmp.lt.s32.totalorder %s1175_s13, %s1169_s27 }
  0xc0   : > { %837 = vmatmul.mubr.msk.bf16.vlgmr.msra.gmra.mrb[0].mxu0 %vm381_vm0, %v960_v3  ;;  %848 = vmatprep.subr.bf16.mxu1 %v1257_v7  ;;  %p1172_p1 = pneg %p1171_p12 }
  0xc1   : > { %840 = vmatprep.mubr.msk.bf16.mxu0 %vm381_vm0, %v961_v4  ;;  %p1178_p2 = por %p1177_p0, %p1176_p13 }
  0xc3   : > { %849 = vmatpush3.bf16.msra.mxu1 %v965_v9  ;;  %p1179_p8 = pnand %p1178_p2, %p1172_p1 }
  0xc4   : > { %850 = vmatprep.subr.bf16.mxu1 %v1257_v7 }
  0xc7   : > { %851 = vmatpush3.bf16.msra.mxu1 %v966_v10 }
  0xc8   : > { %841 = vmatmul.mubr.msk.bf16.gmra.mrb[4].mxu0 %vm381_vm0, %v962_v5 }
 0x193   : > { %v838_v12 = vpop.f32.mrb[0].mxu0 }
 0x194   : > { %v468_v14 = vmul.f32 %v838_v12, %v802_v11  ;;  %v428_v15 = vpop.f32.mrb[1].mxu0 }
 0x195   : > { %v466_v16 = vmul.f32 %v802_v11, %v428_v15  ;;  %v839_v17 = vpop.f32.mrb[2].mxu0 }
 0x196   : > { %v1557_v18 = vadd.f32 %v803_v13, %v468_v14  ;;  %v469_v19 = vmul.f32 %v839_v17, %v802_v11  ;;  %v431_v20 = vpop.f32.mrb[3].mxu0 }
 0x197   : > { %v481_v21 = vadd.f32 %v803_v13, %v466_v16  ;;  %v467_v22 = vmul.f32 %v802_v11, %v431_v20 }
 0x198   : > { %v806_v23 = vmul.f32 -1.442695, %v1557_v18  ;;  %v484_v24 = vadd.f32 %v803_v13, %v469_v19 }
 0x199   : > { %v804_v25 = vmul.f32 -1.442695, %v481_v21  ;;  %v482_v26 = vadd.f32 %v803_v13, %v467_v22 }
 0x19a   : > { %967 = vpow2.f32 %v806_v23  ;;  %v807_v27 = vmul.f32 -1.442695, %v484_v24 }
 0x19b   : > { %969 = vpow2.f32 %v804_v25  ;;  %v805_v28 = vmul.f32 -1.442695, %v482_v26  ;;  %v842_v29 = vpop.f32.mrb[4].mxu0 }
 0x19c   : > { %971 = vpow2.f32 %v807_v27  ;;  %v472_v30 = vmul.f32 %v842_v29, %v802_v11  ;;  %v444_v31 = vpop.f32.mrb[5].mxu0 }
 0x19d   : > { %973 = vpow2.f32 %v805_v28  ;;  %v470_v32 = vmul.f32 %v802_v11, %v444_v31  ;;  %v843_v33 = vpop.f32.mrb[6].mxu0 }
 0x19e   : > { %v487_v34 = vadd.f32 %v803_v13, %v472_v30  ;;  %v473_v35 = vmul.f32 %v843_v33, %v802_v11  ;;  %v447_v36 = vpop.f32.mrb[7].mxu0 }
 0x19f   : > { %v485_v37 = vadd.f32 %v803_v13, %v470_v32  ;;  %v471_v38 = vmul.f32 %v802_v11, %v447_v36  ;;  %v578_v36 = vld [vmem:[#allocation11] sm:$0x1] }
 0x1a0   : > { %v810_v39 = vmul.f32 -1.442695, %v487_v34  ;;  %v488_v40 = vadd.f32 %v803_v13, %v473_v35 }
 0x1a1   : > { %v808_v41 = vmul.f32 -1.442695, %v485_v37  ;;  %v486_v42 = vadd.f32 %v803_v13, %v471_v38 }
 0x1a2   : > { %975 = vpow2.f32 %v810_v39  ;;  %v811_v43 = vmul.f32 -1.442695, %v488_v40 }
 0x1a3   : > { %977 = vpow2.f32 %v808_v41  ;;  %v809_v44 = vmul.f32 -1.442695, %v486_v42 }
 0x1a4   : > { %v968_v45 = vpop.eup %967  ;;  %979 = vpow2.f32 %v811_v43 }
 0x1a5   : > { %v970_v46 = vpop.eup %969  ;;  %v515_v47 = vadd.f32 1.0, %v968_v45  ;;  %981 = vpow2.f32 %v809_v44 }
 0x1a6   : > { %v972_v48 = vpop.eup %971  ;;  %v513_v49 = vadd.f32 1.0, %v970_v46 }
 0x1a7   : > { %v974_v50 = vpop.eup %973  ;;  %983 = vrcp.f32 %v515_v47  ;;  %v516_v51 = vadd.f32 1.0, %v972_v48 }
 0x1a8   : > { %985 = vrcp.f32 %v513_v49  ;;  %v514_v52 = vadd.f32 1.0, %v974_v50 }
 0x1a9   : > { %987 = vrcp.f32 %v516_v51 }
 0x1aa   : > { %989 = vrcp.f32 %v514_v52 }
 0x1ac   : > { %v976_v53 = vpop.eup %975 }
 0x1ad   : > { %v978_v54 = vpop.eup %977  ;;  %v519_v55 = vadd.f32 1.0, %v976_v53 }
 0x1ae   : > { %v980_v56 = vpop.eup %979  ;;  %v517_v57 = vadd.f32 1.0, %v978_v54 }
 0x1af   : > { %v982_v58 = vpop.eup %981  ;;  %991 = vrcp.f32 %v519_v55  ;;  %v520_v59 = vadd.f32 1.0, %v980_v56 }
 0x1b0   : > { %993 = vrcp.f32 %v517_v57  ;;  %v518_v60 = vadd.f32 1.0, %v982_v58 }
 0x1b1   : > { %v984_v61 = vpop.eup %983  ;;  %995 = vrcp.f32 %v520_v59 }
 0x1b2   : > { %v986_v62 = vpop.eup %985  ;;  %997 = vrcp.f32 %v518_v60  ;;  %v539_v2 = vmul.f32 %v984_v61, %v1557_v18 }
 0x1b3   : > { %v988_v63 = vpop.eup %987  ;;  %v537_v0 = vmul.f32 %v986_v62, %v481_v21 }
 0x1b4   : > { %v990_v1 = vpop.eup %989  ;;  %v540_v5 = vmul.f32 %v988_v63, %v484_v24  ;;  %v549_v9 = vsel %vm545_vm2, %v539_v2, 0.0 }
 0x1b5   : > { %v538_v3 = vmul.f32 %v990_v1, %v482_v26  ;;  %v546_v4 = vsel %vm545_vm2, %v537_v0, 0.0 }
 0x1b6   : > { %v551_v13 = vsel %vm545_vm2, %v540_v5, 0.0 }
 0x1b7   : > { %v547_v6 = vsel %vm545_vm2, %v538_v3, 0.0 }
 0x1b8   : > { %v548_v7 = vadd.f32 %v547_v6, %v546_v4 }
 0x1b9   : > { %v992_v8 = vpop.eup %991 }
 0x1ba   : > { %v994_v10 = vpop.eup %993  ;;  %v550_v11 = vadd.f32 %v549_v9, %v548_v7  ;;  %v543_v17 = vmul.f32 %v992_v8, %v487_v34 }
 0x1bb   : > { %v996_v12 = vpop.eup %995  ;;  %v541_v14 = vmul.f32 %v994_v10, %v485_v37 }
 0x1bc   : > { %v998_v15 = vpop.eup %997  ;;  %v552_v16 = vadd.f32 %v551_v13, %v550_v11  ;;  %v544_v21 = vmul.f32 %v996_v12, %v488_v40  ;;  %v557_v24 = vsel %vm545_vm2, %v543_v17, 0.0 }
 0x1bd   : > { %v553_v18 = vsel %vm545_vm2, %v541_v14, 0.0  ;;  %v542_v19 = vmul.f32 %v998_v15, %v486_v42 }
 0x1be   : > { %v554_v20 = vadd.f32 %v553_v18, %v552_v16  ;;  %v559_v26 = vsel %vm545_vm2, %v544_v21, 0.0 }
 0x1bf   : > { %v555_v22 = vsel %vm545_vm2, %v542_v19, 0.0 }
 0x1c0   : > { %v556_v23 = vadd.f32 %v555_v22, %v554_v20 }
 0x1c2   : > { %v558_v25 = vadd.f32 %v557_v24, %v556_v23 }
 0x1c4   : > { %v560_v27 = vadd.f32 %v559_v26, %v558_v25 }
 0x1c6   : > { %v561_v28 = vrot.slane %v560_v27, 4 }
 0x1c8   : > { %v562_v29 = vadd.f32 %v561_v28, %v560_v27 }
 0x1ca   : > { %v563_v30 = vrot.slane %v562_v29, 2 }
 0x1cc   : > { %v564_v31 = vadd.f32 %v563_v30, %v562_v29 }
 0x1ce   : > { %v565_v32 = vrot.slane %v564_v31, 1 }
 0x1d0   : > { %v566_v33 = vadd.f32 %v565_v32, %v564_v31 }
 0x1d2   : > { %v568_v34 = vmul.f32 0.015625, %v566_v33 }
 0x1d4   : > { %v569_v35 = vpack.c.bf16 %v568_v34, %v568_v34 }
 0x1d6   : > { %853 = vmatmul.mubr.msk.bf16.vlgmr.msra.gmra.mrb[0].mxu1 %vm545_vm2, %v569_v35 }
 0x2a9   : > { %v640_v37 = vpop.f32.mrb[0].mxu1 }
 0x2aa   : > { %v641_v38 = vadd.f32 %v640_v37, %v578_v36  ;;  %v854_v39 = vpop.f32.mrb[1].mxu1 }
 0x2ab   : > { %v643_v40 = vpop.f32.mrb[2].mxu1 }
 0x2ac   : > { %646 = vst [vmem:[%s335_s19] sm:$0x1] %v641_v38  ;;  %v855_v41 = vpop.f32.mrb[3].mxu1 }
 0x2ad   : > { %1182 = shalt.err (!%p1179_p8)
}
 0x2ae   : > { %s1183_s30 = scalar_lea.hbm %s1575_s9, 16  ;;  %s1187_s16 = scalar_lea.hbm %s1625_s6, 32 }
 0x2af   : > { %p1184_p6 = scmp.ne.s32.totalorder %s1575_s9, %s1183_s30  ;;  %p1188_p3 = scmp.lt.u32.totalorder %s1575_s9, %s1625_s6 }
 0x2b0   : > { %p1189_p5 = scmp.lt.u32.totalorder %s1187_s16, %s1183_s30  ;;  %p1191_p7 = scmp.lt.u32.totalorder %s1183_s30, %s1575_s9 }
 0x2b1   : > { %p1185_p10 = pnand %p1184_p6, %p1644_p4 }
 0x2b2   : > { %p1190_p9 = por %p1189_p5, %p1188_p3 }
 0x2b3   : > { %p1186_p11 = pneg %p1185_p10 }
 0x2b4   : > { %p1192_p12 = por %p1191_p7, %p1190_p9 }
 0x2b6   : > { %p1193_p1 = pnand %p1192_p12, %p1186_p11 }
 0x2b8   : > { %1196 = shalt.err (!%p1193_p1)
}
 0x2b9   : > { %878 = dma.vmem_to_hbm [thread:$0]  (%p1644_p4), %s1577_s20, 16, %s1575_s9, %s648_s15  }
 0x2ba PF: > { %s672_s19 = sand.u32 1, %s1235_s21   ;;  %p1645_p13 = scmp.ne.s32.totalorder %s1635_s11, 0 }
 0x2bb   : > { %p1646_p0 = scmp.ge.s32.totalorder %s1247_s24, 2  ;;  %s673_s29 = scalar_lea.sflag [#allocation4], %s672_s19 }
 0x2bd   : > { %p901_p2 = pnand %p1646_p0, %p1645_p13 }
 0x2bf   : > { %1230 = dma.done.wait (!%p901_p2), %s673_s29, 16  }
 0x2c0   : > { %1232 = vsyncadd (!%p901_p2), %s673_s29, 4294967280  ;;  %p22_p8 = scmp.ge.s32.totalorder %s1461_s7, 4   ;;  %s1647_s21 = smov %s1239_s22 }
 0x2c1   : > { %s1648_s22 = smov %s1243_s23  ;;  %s1649_s23 = smov %s1473_s18 }
 0x2c2   : > { %s1650_s24 = smov %s1461_s7  ;;  %24 = sbr.rel (!%p22_p8) target bundleno = 8 (0x8), region = 109 }
 0x2c9   :  { %677 = vsyncpa [#allocation3], 1 }
 0x2ca   :  { %679 = vsyncpa [#allocation3 + $0x1], 1 }
 0x2cb   :  { %680 = vsyncpa [#allocation6], 1 }
 0x2cc   :  { %681 = vsyncpa [#allocation9], 1 }
 0x2cd   :  { %682 = vsyncpa [#allocation12], 1 }
 0x2ce   :  { %683 = vsyncpa [#allocation4], 1 }
 0x2cf   :  { %685 = vsyncpa [#allocation4 + $0x1], 1 }

</bundles_post_ra>
